<compile_context>
chip_gen: v5e
topology: v5e:2x2
jax: 0.10.0
libtpu: 0.0.40
codegen_flags: <defaults>
</compile_context>

<pallas_src>
import functools

import jax
import jax.numpy as jnp
from jax.experimental import pallas as pl
from jax.experimental.pallas import tpu as pltpu

LN_EPS = 1e-5          # ESM2 layer_norm_eps
NEG_INF = -1e9


def _pick_tile(dim, target, aligns):
    """Largest tile <= target dividing dim, preferring coarser alignments.
    If dim <= target (or nothing fits) use the full dimension (always legal)."""
    if dim <= target:
        return dim
    for align in aligns:
        t = (target // align) * align
        while t >= align:
            if dim % t == 0:
                return t
            t -= align
    return dim


def _compiler_params(semantics, vmem_bytes_est):
    return pltpu.CompilerParams(
        dimension_semantics=semantics,
        vmem_limit_bytes=int(min(vmem_bytes_est + (16 << 20), 100 << 20)))


# ----------------------- tiled dense: X @ W + b [+gelu] [+res] ----------------
def _dense_kernel(x_ref, w_ref, b_ref, o_ref, acc_ref, *, activation):
    @pl.when(pl.program_id(2) == 0)
    def _init():
        acc_ref[...] = jnp.zeros_like(acc_ref)

    acc_ref[...] += jnp.dot(x_ref[...], w_ref[...],
                            preferred_element_type=jnp.float32)

    @pl.when(pl.program_id(2) == pl.num_programs(2) - 1)
    def _finalize():
        out = acc_ref[...] + b_ref[...].astype(jnp.float32)
        if activation == "gelu":
            # TODO(synk): HF ESM2 uses exact (erf) GELU; tanh approximation here.
            out = jax.nn.gelu(out, approximate=True)
        o_ref[...] = out.astype(o_ref.dtype)


def _dense_res_kernel(x_ref, w_ref, b_ref, r_ref, o_ref, acc_ref, *, activation):
    @pl.when(pl.program_id(2) == 0)
    def _init():
        acc_ref[...] = jnp.zeros_like(acc_ref)

    acc_ref[...] += jnp.dot(x_ref[...], w_ref[...],
                            preferred_element_type=jnp.float32)

    @pl.when(pl.program_id(2) == pl.num_programs(2) - 1)
    def _finalize():
        out = acc_ref[...] + b_ref[...].astype(jnp.float32)
        if activation == "gelu":
            out = jax.nn.gelu(out, approximate=True)
        out = out + r_ref[...].astype(jnp.float32)
        o_ref[...] = out.astype(o_ref.dtype)


def dense(x, w, b, *, activation=None, residual=None, out_dtype=jnp.bfloat16,
          tm=512, tn=512, tk=512):
    M, K = x.shape
    N = w.shape[1]
    tm = _pick_tile(M, tm, (8,))
    tn = _pick_tile(N, tn, (256, 128))       # MXU-width aligned on v6e/v7x
    tk = _pick_tile(K, tk, (256, 128))
    grid = (M // tm, N // tn, K // tk)

    x_spec = pl.BlockSpec((tm, tk), lambda i, j, k: (i, k))
    w_spec = pl.BlockSpec((tk, tn), lambda i, j, k: (k, j))
    b_spec = pl.BlockSpec((1, tn), lambda i, j, k: (0, j))
    o_spec = pl.BlockSpec((tm, tn), lambda i, j, k: (i, j))

    in_specs = [x_spec, w_spec, b_spec]
    args = [x.astype(jnp.bfloat16), w.astype(jnp.bfloat16),
            b.reshape(1, N).astype(jnp.float32)]
    out_bytes = jnp.dtype(out_dtype).itemsize
    vmem_est = (2 * (tm * tk + tk * tn) * 2      # bf16 x/w, double-buffered
                + 2 * tn * 4                     # bias
                + 2 * tm * tn * out_bytes        # output
                + tm * tn * 4)                   # f32 accumulator
    if residual is not None:
        in_specs.append(pl.BlockSpec((tm, tn), lambda i, j, k: (i, j)))
        args.append(residual)
        vmem_est += 2 * tm * tn * 2
        kern = functools.partial(_dense_res_kernel, activation=activation)
    else:
        kern = functools.partial(_dense_kernel, activation=activation)

    return pl.pallas_call(
        kern,
        grid=grid,
        in_specs=in_specs,
        out_specs=o_spec,
        out_shape=jax.ShapeDtypeStruct((M, N), out_dtype),
        scratch_shapes=[pltpu.VMEM((tm, tn), jnp.float32)],
        compiler_params=_compiler_params(
            ("parallel", "parallel", "arbitrary"), vmem_est),
    )(*args)


# --------------------------------- LayerNorm ----------------------------------
def _layernorm_kernel(x_ref, g_ref, b_ref, o_ref):
    x = x_ref[...].astype(jnp.float32)
    mu = jnp.mean(x, axis=-1, keepdims=True)
    var = jnp.mean(jnp.square(x - mu), axis=-1, keepdims=True)
    y = (x - mu) * jax.lax.rsqrt(var + LN_EPS)
    o_ref[...] = (y * g_ref[...].astype(jnp.float32)
                  + b_ref[...].astype(jnp.float32)).astype(o_ref.dtype)


def layer_norm(x, g, b, *, out_dtype=jnp.bfloat16, tm=512):
    M, D = x.shape
    tm = _pick_tile(M, tm, (8,))
    vmem_est = (2 * tm * D * x.dtype.itemsize + 4 * D * 4
                + 2 * tm * D * jnp.dtype(out_dtype).itemsize)
    return pl.pallas_call(
        _layernorm_kernel,
        grid=(M // tm,),
        in_specs=[pl.BlockSpec((tm, D), lambda i: (i, 0)),
                  pl.BlockSpec((1, D), lambda i: (0, 0)),
                  pl.BlockSpec((1, D), lambda i: (0, 0))],
        out_specs=pl.BlockSpec((tm, D), lambda i: (i, 0)),
        out_shape=jax.ShapeDtypeStruct((M, D), out_dtype),
        compiler_params=_compiler_params(("parallel",), vmem_est),
    )(x, g.reshape(1, D), b.reshape(1, D))


# ----------- rotary transform, applied ONCE per layer on fused QKV ------------
def _rope_split_kernel(qkv_ref, cos_ref, sinp_ref, sinn_ref,
                       q_ref, k_ref, v_ref, *, d_model, half, scale):
    D = d_model
    qkv = qkv_ref[...]                                   # (tr, 3D) bf16
    cos = cos_ref[...].astype(jnp.float32)
    sinp = sinp_ref[...].astype(jnp.float32)
    sinn = sinn_ref[...].astype(jnp.float32)

    def rope(x):
        # Per-head rotate_half as two full-width rolls with sign-folded tables
        # (zero entries mask out cross-head contamination).
        return (x * cos
                + pltpu.roll(x, shift=half, axis=1) * sinp
                + pltpu.roll(x, shift=D - half, axis=1) * sinn)

    q = qkv[:, 0:D].astype(jnp.float32)
    k = qkv[:, D:2 * D].astype(jnp.float32)
    q_ref[...] = (rope(q) * scale).astype(q_ref.dtype)   # pre-scaled by Dh^-0.5
    k_ref[...] = rope(k).astype(k_ref.dtype)
    v_ref[...] = qkv[:, 2 * D:3 * D].astype(v_ref.dtype)


def rope_split(qkv, cos, sin_p, sin_n, *, head_dim, tr_target=512):
    B, L, threeD = qkv.shape
    D = threeD // 3
    tr = _pick_tile(L, tr_target, (8,))
    half = head_dim // 2
    scale = head_dim ** -0.5

    qkv_spec = pl.BlockSpec((pl.Squeezed(), tr, threeD), lambda b, r: (b, r, 0))
    tab_spec = pl.BlockSpec((tr, D), lambda b, r: (r, 0))
    out_spec = pl.BlockSpec((pl.Squeezed(), tr, D), lambda b, r: (b, r, 0))

    vmem_est = (2 * tr * threeD * 2          # qkv in
                + 2 * 3 * tr * D * 2         # bf16 tables
                + 2 * 3 * tr * D * 2)        # q/k/v out
    out_sds = jax.ShapeDtypeStruct((B, L, D), jnp.bfloat16)
    return pl.pallas_call(
        functools.partial(_rope_split_kernel, d_model=D, half=half, scale=scale),
        grid=(B, L // tr),
        in_specs=[qkv_spec, tab_spec, tab_spec, tab_spec],
        out_specs=(out_spec, out_spec, out_spec),
        out_shape=(out_sds, out_sds, out_sds),
        compiler_params=_compiler_params(("parallel", "parallel"), vmem_est),
    )(qkv, cos, sin_p, sin_n)


# -------- flash self-attention: online softmax over kv blocks, per-head -------
def _flash_attn_kernel(q_ref, k_ref, v_ref, bias_ref, o_ref,
                       m_sc, l_sc, acc_sc, *, n_heads, head_dim):
    H, Dh = n_heads, head_dim
    kv = pl.program_id(2)

    @pl.when(kv == 0)
    def _init():
        m_sc[...] = jnp.full_like(m_sc, -jnp.inf)
        l_sc[...] = jnp.zeros_like(l_sc)
        acc_sc[...] = jnp.zeros_like(acc_sc)

    q = q_ref[...]                                       # (tq, D)  roped+scaled
    k = k_ref[...]                                       # (tkv, D) roped
    v = v_ref[...]                                       # (tkv, D)
    bias = bias_ref[...].astype(jnp.float32)             # (1, tkv) additive mask

    dn_qk = (((1,), (1,)), ((), ()))                     # contract last axes
    for h in range(H):                                   # static head loop
        sl = slice(h * Dh, (h + 1) * Dh)
        s = jax.lax.dot_general(q[:, sl], k[:, sl], dn_qk,
                                preferred_element_type=jnp.float32)  # (tq, tkv)
        s = s + bias
        m_prev = m_sc[:, h:h + 1]
        m_new = jnp.maximum(m_prev, jnp.max(s, axis=-1, keepdims=True))
        alpha = jnp.exp(m_prev - m_new)
        p = jnp.exp(s - m_new)
        l_sc[:, h:h + 1] = alpha * l_sc[:, h:h + 1] + jnp.sum(p, axis=-1,
                                                              keepdims=True)
        acc_sc[:, sl] = alpha * acc_sc[:, sl] + jnp.dot(
            p.astype(jnp.bfloat16), v[:, sl], preferred_element_type=jnp.float32)
        m_sc[:, h:h + 1] = m_new

    @pl.when(kv == pl.num_programs(2) - 1)
    def _finalize():
        for h in range(H):
            sl = slice(h * Dh, (h + 1) * Dh)
            o_ref[:, sl] = (acc_sc[:, sl]
                            * pl.reciprocal(l_sc[:, h:h + 1], approx=True)
                            ).astype(o_ref.dtype)


def flash_attention(q, k, v, bias, *, n_heads, out_dtype=jnp.bfloat16,
                    tq_target=512, tkv_target=512):
    B, L, D = q.shape
    Dh = D // n_heads
    tq = _pick_tile(L, tq_target, (8,))
    tkv = _pick_tile(L, tkv_target, (128, 8))

    q_spec = pl.BlockSpec((pl.Squeezed(), tq, D), lambda b, i, j: (b, i, 0))
    kv_spec = pl.BlockSpec((pl.Squeezed(), tkv, D), lambda b, i, j: (b, j, 0))
    bias_spec = pl.BlockSpec((pl.Squeezed(), 1, tkv), lambda b, i, j: (b, 0, j))
    out_spec = pl.BlockSpec((pl.Squeezed(), tq, D), lambda b, i, j: (b, i, 0))

    vmem_est = (2 * tq * D * 2               # q
                + 2 * 2 * tkv * D * 2        # k, v
                + 2 * tkv * 4                # bias
                + 2 * tq * D * 2             # output
                + tq * (2 * n_heads + D) * 4)  # scratch stats + accumulator

    return pl.pallas_call(
        functools.partial(_flash_attn_kernel, n_heads=n_heads, head_dim=Dh),
        grid=(B, L // tq, L // tkv),
        in_specs=[q_spec, kv_spec, kv_spec, bias_spec],
        out_specs=out_spec,
        out_shape=jax.ShapeDtypeStruct((B, L, D), out_dtype),
        scratch_shapes=[pltpu.VMEM((tq, n_heads), jnp.float32),
                        pltpu.VMEM((tq, n_heads), jnp.float32),
                        pltpu.VMEM((tq, D), jnp.float32)],
        compiler_params=_compiler_params(
            ("parallel", "parallel", "arbitrary"), vmem_est),
    )(q, k, v, bias)


# ------------ softmax over vocab + (max prob, argmax), lane-dense out ---------
def _softmax_max_kernel(logit_ref, out_ref):
    x = logit_ref[...].astype(jnp.float32)               # (tl, Vp)
    R, V = x.shape
    m = jnp.max(x, axis=-1, keepdims=True)
    denom = jnp.sum(jnp.exp(x - m), axis=-1, keepdims=True)
    conf = 1.0 / denom                                   # exact (user-visible)
    iota = jax.lax.broadcasted_iota(jnp.int32, (R, V), 1)
    ids = jnp.min(jnp.where(x == m, iota, V), axis=-1, keepdims=True)
    lane = jax.lax.broadcasted_iota(jnp.int32, (R, out_ref.shape[-1]), 1)
    out_ref[...] = jnp.where(lane == 0, conf,
                             jnp.where(lane == 1, ids.astype(jnp.float32), 0.0))


def softmax_max(logits, *, tl_target=512):
    B, L, Vp = logits.shape
    PACK = 128
    tl = _pick_tile(L, tl_target, (8,))
    vmem_est = 2 * (tl * Vp * 4 + tl * PACK * 4)
    out = pl.pallas_call(
        _softmax_max_kernel,
        grid=(B, L // tl),
        in_specs=[pl.BlockSpec((pl.Squeezed(), tl, Vp), lambda b, r: (b, r, 0))],
        out_specs=pl.BlockSpec((pl.Squeezed(), tl, PACK), lambda b, r: (b, r, 0)),
        out_shape=jax.ShapeDtypeStruct((B, L, PACK), jnp.float32),
        compiler_params=_compiler_params(("parallel", "parallel"), vmem_est),
    )(logits)
    confs = out[:, :, 0]
    pred_ids = out[:, :, 1].astype(jnp.int32)            # exact for vocab < 2^24
    return confs, pred_ids


# ------------------------------ model assembly --------------------------------
def rotary_tables(L, D, Dh):
    """Sign-folded rotary tables, tiled to full hidden width D = H*Dh (bf16)."""
    half = Dh // 2
    inv_freq = 1.0 / (10000.0 ** (jnp.arange(0, Dh, 2, dtype=jnp.float32) / Dh))
    t = jnp.arange(L, dtype=jnp.float32)
    freqs = jnp.outer(t, inv_freq)                       # (L, Dh/2)
    emb = jnp.concatenate([freqs, freqs], axis=-1)       # (L, Dh)
    cos_h, sin_h = jnp.cos(emb), jnp.sin(emb)
    H = D // Dh
    cos = jnp.tile(cos_h, (1, H))                        # (L, D)
    sin = jnp.tile(sin_h, (1, H))
    off = jnp.arange(D) % Dh
    sin_p = jnp.where(off >= half, sin, 0.0)             # pairs with roll(+half)
    sin_n = jnp.where(off < half, -sin, 0.0)             # pairs with roll(D-half)
    return (cos.astype(jnp.bfloat16), sin_p.astype(jnp.bfloat16),
            sin_n.astype(jnp.bfloat16))


def init_params(key, *, vocab, d_model, n_layers, d_ffn):
    vocab_pad = ((vocab + 127) // 128) * 128
    keys = jax.random.split(key, 8 + 8 * n_layers)
    it = iter(keys)

    def w(shape, scale=0.02):
        return (scale * jax.random.normal(next(it), shape, jnp.float32)
                ).astype(jnp.bfloat16)

    ones = lambda n: jnp.ones((n,), jnp.float32)
    zeros = lambda n: jnp.zeros((n,), jnp.float32)

    dec_w = jnp.pad(w((d_model, vocab)).astype(jnp.float32),
                    ((0, 0), (0, vocab_pad - vocab))).astype(jnp.bfloat16)
    dec_b = jnp.concatenate([zeros(vocab),
                             jnp.full((vocab_pad - vocab,), NEG_INF, jnp.float32)])

    params = {
        "word_emb": 0.02 * jax.random.normal(next(it), (vocab, d_model),
                                             jnp.float32),
        "layers": [],
        "final_ln_g": ones(d_model), "final_ln_b": zeros(d_model),
        "lm_dense_w": w((d_model, d_model)), "lm_dense_b": zeros(d_model),
        "lm_ln_g": ones(d_model), "lm_ln_b": zeros(d_model),
        "decoder_w": dec_w, "decoder_b": dec_b,
    }
    for _ in range(n_layers):
        params["layers"].append({
            "ln1_g": ones(d_model), "ln1_b": zeros(d_model),
            "wqkv": w((d_model, 3 * d_model)), "bqkv": zeros(3 * d_model),
            "wo": w((d_model, d_model)), "bo": zeros(d_model),
            "ln2_g": ones(d_model), "ln2_b": zeros(d_model),
            "w1": w((d_model, d_ffn)), "b1": zeros(d_ffn),
            "w2": w((d_ffn, d_model)), "b2": zeros(d_model),
        })
    return params


def pretrain_esm_forward(params, input_ids, attention_mask, *, n_heads):
    """Mirrors PretrainESM_Model.forward(batch) with a synthetic ESM2 encoder."""
    B, L = input_ids.shape
    _, D = params["word_emb"].shape
    Dh = D // n_heads

    amask = attention_mask.astype(jnp.float32)
    # Embedding gather (glue) + ESM-style mask multiply.
    x = jnp.take(params["word_emb"], input_ids, axis=0) * amask[..., None]
    # TODO(synk): ESM2 token-dropout mask-token rescaling not implemented.
    x2 = x.reshape(B * L, D).astype(jnp.bfloat16)

    cos, sin_p, sin_n = rotary_tables(L, D, Dh)
    mask_bias = ((1.0 - amask) * NEG_INF).reshape(B, 1, L)

    for lyr in params["layers"]:
        # --- pre-LN self-attention block (fused QKV projection) ---
        ln1 = layer_norm(x2, lyr["ln1_g"], lyr["ln1_b"])
        qkv = dense(ln1, lyr["wqkv"], lyr["bqkv"])                   # (B*L, 3D)
        q, k, v = rope_split(qkv.reshape(B, L, 3 * D), cos, sin_p, sin_n,
                             head_dim=Dh)                            # 3x (B,L,D)
        attn = flash_attention(q, k, v, mask_bias, n_heads=n_heads)  # (B, L, D)
        x2 = dense(attn.reshape(B * L, D), lyr["wo"], lyr["bo"], residual=x2)
        # --- pre-LN feed-forward block ---
        ln2 = layer_norm(x2, lyr["ln2_g"], lyr["ln2_b"])
        h = dense(ln2, lyr["w1"], lyr["b1"], activation="gelu")
        x2 = dense(h, lyr["w2"], lyr["b2"], residual=x2)

    hid = layer_norm(x2, params["final_ln_g"], params["final_ln_b"],
                     out_dtype=jnp.float32)
    embeds = hid.reshape(B, L, D)

    # LM head: dense -> gelu -> layernorm -> decoder(+bias, vocab lane-padded)
    h = dense(hid, params["lm_dense_w"], params["lm_dense_b"], activation="gelu")
    h = layer_norm(h, params["lm_ln_g"], params["lm_ln_b"])
    Vp = params["decoder_w"].shape[1]
    logits = dense(h, params["decoder_w"], params["decoder_b"],
                   out_dtype=jnp.float32).reshape(B, L, Vp)

    confs, pred_ids = softmax_max(logits)
    # TODO(synk): HF outputs.hidden_states is a tuple of per-layer states; only
    # the final hidden states are returned here.
    return {"pred_ids": pred_ids, "confs": confs,
            "embeds": embeds, "attention_mask": attention_mask}


if __name__ == "__main__":
    B, L = 2, 16         # batch, sequence length
    D, H = 128, 4        # hidden size, heads (head_dim = 32)
    FFN = 256            # intermediate size
    LAYERS = 2
    VOCAB = 33           # ESM2 vocab size

    key = jax.random.PRNGKey(0)
    k_params, k_ids = jax.random.split(key)
    params = init_params(k_params, vocab=VOCAB, d_model=D,
                         n_layers=LAYERS, d_ffn=FFN)

    # 'pred_ids' and 'attention_mask' as in the PyTorch batch dict.
    input_ids = jax.random.randint(k_ids, (B, L), 4, 24, dtype=jnp.int32)
    attention_mask = jnp.ones((B, L), jnp.float32).at[1, 12:].set(0.0)

    fwd = jax.jit(functools.partial(pretrain_esm_forward, n_heads=H))
    out = jax.block_until_ready(fwd(params, input_ids, attention_mask))

    assert out["pred_ids"].shape == (B, L)
    assert out["confs"].shape == (B, L)
    assert out["embeds"].shape == (B, L, D)
    assert int(out["pred_ids"].max()) < VOCAB          # vocab padding never wins
    print("KERNEL_OK")
</pallas_src>

<mosaic_0001>
module attributes {stable_mosaic.version = 11 : i64} {
  func.func @_dense_kernel(%arg0: i32, %arg1: i32, %arg2: i32, %arg3: memref<32x128xbf16, #tpu.memory_space<vmem>>, %arg4: memref<128x384xbf16, #tpu.memory_space<vmem>>, %arg5: memref<1x384xf32, #tpu.memory_space<vmem>>, %arg6: memref<32x384xbf16, #tpu.memory_space<vmem>>, %arg7: memref<32x384xf32, #tpu.memory_space<vmem>>) attributes {dimension_semantics = [#tpu.dimension_semantics<parallel>, #tpu.dimension_semantics<parallel>, #tpu.dimension_semantics<arbitrary>], iteration_bounds = array<i64: 1, 1, 1>, scalar_prefetch = 0 : i64, scratch_operands = 1 : i64, tpu.core_type = #tpu.core_type<tc>, window_params = [{transform_indices = @transform_0, window_bounds = array<i64: 32, 128>}, {transform_indices = @transform_1, window_bounds = array<i64: 128, 384>}, {transform_indices = @transform_2, window_bounds = array<i64: 1, 384>}, {transform_indices = @transform_3, window_bounds = array<i64: 32, 384>}]} {
    %c0_i32 = arith.constant 0 : i32
    %0 = arith.cmpi eq, %arg2, %c0_i32 : i32
    %1 = arith.extui %0 : i1 to i32
    %c0_i32_0 = arith.constant 0 : i32
    %2 = arith.cmpi ne, %1, %c0_i32_0 : i32
    scf.if %2 {
      %cst_10 = arith.constant 0.000000e+00 : f32
      %12 = vector.broadcast %cst_10 : f32 to vector<32x384xf32>
      %c0_11 = arith.constant 0 : index
      %c0_12 = arith.constant 0 : index
      %13 = vector.load %arg7[%c0_11, %c0_12] : memref<32x384xf32, #tpu.memory_space<vmem>>, vector<32x384xf32>
      tpu.vector_store %arg7[%c0_11, %c0_12], %12 {strides = array<i32>} : memref<32x384xf32, #tpu.memory_space<vmem>>, vector<32x384xf32>,
    } else {
    }
    %c0 = arith.constant 0 : index
    %c0_1 = arith.constant 0 : index
    %3 = vector.load %arg7[%c0, %c0_1] : memref<32x384xf32, #tpu.memory_space<vmem>>, vector<32x384xf32>
    %c0_2 = arith.constant 0 : index
    %c0_3 = arith.constant 0 : index
    %4 = vector.load %arg3[%c0_2, %c0_3] : memref<32x128xbf16, #tpu.memory_space<vmem>>, vector<32x128xbf16>
    %c0_4 = arith.constant 0 : index
    %c0_5 = arith.constant 0 : index
    %5 = vector.load %arg4[%c0_4, %c0_5] : memref<128x384xbf16, #tpu.memory_space<vmem>>, vector<128x384xbf16>
    %cst = arith.constant dense<0.000000e+00> : vector<32x384xf32>
    %6 = tpu.matmul %4, %5, %cst {dimension_numbers = #tpu.dot_dimension_numbers<[1], [0], [0], [1], [0, 0, 1, 1], [], []>} : vector<32x128xbf16>, vector<128x384xbf16>, vector<32x384xf32> -> vector<32x384xf32>
    %7 = arith.addf %3, %6 : vector<32x384xf32>
    %c0_6 = arith.constant 0 : index
    %c0_7 = arith.constant 0 : index
    %8 = vector.load %arg7[%c0_6, %c0_7] : memref<32x384xf32, #tpu.memory_space<vmem>>, vector<32x384xf32>
    tpu.vector_store %arg7[%c0_6, %c0_7], %7 {strides = array<i32>} : memref<32x384xf32, #tpu.memory_space<vmem>>, vector<32x384xf32>,
    %c0_i32_8 = arith.constant 0 : i32
    %9 = arith.cmpi eq, %arg2, %c0_i32_8 : i32
    %10 = arith.extui %9 : i1 to i32
    %c0_i32_9 = arith.constant 0 : i32
    %11 = arith.cmpi ne, %10, %c0_i32_9 : i32
    scf.if %11 {
      %c0_10 = arith.constant 0 : index
      %c0_11 = arith.constant 0 : index
      %12 = vector.load %arg7[%c0_10, %c0_11] : memref<32x384xf32, #tpu.memory_space<vmem>>, vector<32x384xf32>
      %c0_12 = arith.constant 0 : index
      %c0_13 = arith.constant 0 : index
      %13 = vector.load %arg5[%c0_12, %c0_13] : memref<1x384xf32, #tpu.memory_space<vmem>>, vector<1x384xf32>
      %14 = vector.broadcast %13 : vector<1x384xf32> to vector<32x384xf32>
      %15 = arith.addf %12, %14 : vector<32x384xf32>
      %16 = arith.truncf %15 : vector<32x384xf32> to vector<32x384xbf16>
      %c0_14 = arith.constant 0 : index
      %c0_15 = arith.constant 0 : index
      %17 = vector.load %arg6[%c0_14, %c0_15] : memref<32x384xbf16, #tpu.memory_space<vmem>>, vector<32x384xbf16>
      tpu.vector_store %arg6[%c0_14, %c0_15], %16 {strides = array<i32>} : memref<32x384xbf16, #tpu.memory_space<vmem>>, vector<32x384xbf16>,
    } else {
    }
    return
  }
  func.func @transform_0(%arg0: i32, %arg1: i32, %arg2: i32) -> (i32, i32) {
    %c0_i32 = arith.constant 0 : i32
    return %arg0, %arg2 : i32, i32
  }
  func.func @transform_1(%arg0: i32, %arg1: i32, %arg2: i32) -> (i32, i32) {
    %c0_i32 = arith.constant 0 : i32
    return %arg2, %arg1 : i32, i32
  }
  func.func @transform_2(%arg0: i32, %arg1: i32, %arg2: i32) -> (i32, i32) {
    %c0_i32 = arith.constant 0 : i32
    %c0_i32_0 = arith.constant 0 : i32
    return %c0_i32, %arg1 : i32, i32
  }
  func.func @transform_3(%arg0: i32, %arg1: i32, %arg2: i32) -> (i32, i32) {
    %c0_i32 = arith.constant 0 : i32
    return %arg0, %arg1 : i32, i32
  }
}

module attributes {stable_mosaic.version = 11 : i64} {
  func.func @_layernorm_kernel(%arg0: i32, %arg1: memref<32x128xbf16, #tpu.memory_space<vmem>>, %arg2: memref<1x128xf32, #tpu.memory_space<vmem>>, %arg3: memref<1x128xf32, #tpu.memory_space<vmem>>, %arg4: memref<32x128xbf16, #tpu.memory_space<vmem>>) attributes {dimension_semantics = [#tpu.dimension_semantics<parallel>], iteration_bounds = array<i64: 1>, scalar_prefetch = 0 : i64, scratch_operands = 0 : i64, tpu.core_type = #tpu.core_type<tc>, window_params = [{transform_indices = @transform_0, window_bounds = array<i64: 32, 128>}, {pipeline_mode = #tpu.pipeline_mode<synchronous>, transform_indices = @transform_1, window_bounds = array<i64: 1, 128>}, {pipeline_mode = #tpu.pipeline_mode<synchronous>, transform_indices = @transform_2, window_bounds = array<i64: 1, 128>}, {transform_indices = @transform_3, window_bounds = array<i64: 32, 128>}]} {
    %c0 = arith.constant 0 : index
    %c0_0 = arith.constant 0 : index
    %0 = vector.load %arg1[%c0, %c0_0] : memref<32x128xbf16, #tpu.memory_space<vmem>>, vector<32x128xbf16>
    %1 = arith.extf %0 : vector<32x128xbf16> to vector<32x128xf32>
    %cst = arith.constant dense<0.000000e+00> : vector<32xf32>
    %2 = vector.multi_reduction <add>, %1, %cst [1] : vector<32x128xf32> to vector<32xf32>
    %3 = vector.shape_cast %2 : vector<32xf32> to vector<32x1xf32>
    %cst_1 = arith.constant 1.280000e+02 : f32
    %4 = vector.broadcast %cst_1 : f32 to vector<32x1xf32>
    %5 = arith.divf %3, %4 : vector<32x1xf32>
    %6 = vector.broadcast %5 : vector<32x1xf32> to vector<32x128xf32>
    %7 = arith.subf %1, %6 : vector<32x128xf32>
    %8 = arith.mulf %7, %7 : vector<32x128xf32>
    %cst_2 = arith.constant dense<0.000000e+00> : vector<32xf32>
    %9 = vector.multi_reduction <add>, %8, %cst_2 [1] : vector<32x128xf32> to vector<32xf32>
    %10 = vector.shape_cast %9 : vector<32xf32> to vector<32x1xf32>
    %cst_3 = arith.constant 1.280000e+02 : f32
    %11 = vector.broadcast %cst_3 : f32 to vector<32x1xf32>
    %12 = arith.divf %10, %11 : vector<32x1xf32>
    %13 = vector.broadcast %5 : vector<32x1xf32> to vector<32x128xf32>
    %14 = arith.subf %1, %13 : vector<32x128xf32>
    %cst_4 = arith.constant 9.99999974E-6 : f32
    %15 = vector.broadcast %cst_4 : f32 to vector<32x1xf32>
    %16 = arith.addf %12, %15 : vector<32x1xf32>
    %17 = math.rsqrt %16 : vector<32x1xf32>
    %18 = vector.broadcast %17 : vector<32x1xf32> to vector<32x128xf32>
    %19 = arith.mulf %14, %18 : vector<32x128xf32>
    %c0_5 = arith.constant 0 : index
    %c0_6 = arith.constant 0 : index
    %20 = vector.load %arg2[%c0_5, %c0_6] : memref<1x128xf32, #tpu.memory_space<vmem>>, vector<1x128xf32>
    %21 = vector.broadcast %20 : vector<1x128xf32> to vector<32x128xf32>
    %22 = arith.mulf %19, %21 : vector<32x128xf32>
    %c0_7 = arith.constant 0 : index
    %c0_8 = arith.constant 0 : index
    %23 = vector.load %arg3[%c0_7, %c0_8] : memref<1x128xf32, #tpu.memory_space<vmem>>, vector<1x128xf32>
    %24 = vector.broadcast %23 : vector<1x128xf32> to vector<32x128xf32>
    %25 = arith.addf %22, %24 : vector<32x128xf32>
    %26 = arith.truncf %25 : vector<32x128xf32> to vector<32x128xbf16>
    %c0_9 = arith.constant 0 : index
    %c0_10 = arith.constant 0 : index
    %27 = vector.load %arg4[%c0_9, %c0_10] : memref<32x128xbf16, #tpu.memory_space<vmem>>, vector<32x128xbf16>
    tpu.vector_store %arg4[%c0_9, %c0_10], %26 {strides = array<i32>} : memref<32x128xbf16, #tpu.memory_space<vmem>>, vector<32x128xbf16>,
    return
  }
  func.func @transform_0(%arg0: i32) -> (i32, i32) {
    %c0_i32 = arith.constant 0 : i32
    %c0_i32_0 = arith.constant 0 : i32
    return %arg0, %c0_i32 : i32, i32
  }
  func.func @transform_1(%arg0: i32) -> (i32, i32) {
    %c0_i32 = arith.constant 0 : i32
    %c0_i32_0 = arith.constant 0 : i32
    %c0_i32_1 = arith.constant 0 : i32
    return %c0_i32, %c0_i32_0 : i32, i32
  }
  func.func @transform_2(%arg0: i32) -> (i32, i32) {
    %c0_i32 = arith.constant 0 : i32
    %c0_i32_0 = arith.constant 0 : i32
    %c0_i32_1 = arith.constant 0 : i32
    return %c0_i32, %c0_i32_0 : i32, i32
  }
  func.func @transform_3(%arg0: i32) -> (i32, i32) {
    %c0_i32 = arith.constant 0 : i32
    %c0_i32_0 = arith.constant 0 : i32
    return %arg0, %c0_i32 : i32, i32
  }
}

module attributes {stable_mosaic.version = 11 : i64} {
  func.func @_rope_split_kernel(%arg0: i32, %arg1: i32, %arg2: memref<1x16x384xbf16, #tpu.memory_space<vmem>>, %arg3: memref<16x128xbf16, #tpu.memory_space<vmem>>, %arg4: memref<16x128xbf16, #tpu.memory_space<vmem>>, %arg5: memref<16x128xbf16, #tpu.memory_space<vmem>>, %arg6: memref<1x16x128xbf16, #tpu.memory_space<vmem>>, %arg7: memref<1x16x128xbf16, #tpu.memory_space<vmem>>, %arg8: memref<1x16x128xbf16, #tpu.memory_space<vmem>>) attributes {dimension_semantics = [#tpu.dimension_semantics<parallel>, #tpu.dimension_semantics<parallel>], iteration_bounds = array<i64: 2, 1>, scalar_prefetch = 0 : i64, scratch_operands = 0 : i64, tpu.core_type = #tpu.core_type<tc>, window_params = [{transform_indices = @transform_0, window_bounds = array<i64: 1, 16, 384>}, {transform_indices = @transform_1, window_bounds = array<i64: 16, 128>}, {transform_indices = @transform_2, window_bounds = array<i64: 16, 128>}, {transform_indices = @transform_3, window_bounds = array<i64: 16, 128>}, {transform_indices = @transform_4, window_bounds = array<i64: 1, 16, 128>}, {transform_indices = @transform_5, window_bounds = array<i64: 1, 16, 128>}, {transform_indices = @transform_6, window_bounds = array<i64: 1, 16, 128>}]} {
    %c0 = arith.constant 0 : index
    %c0_0 = arith.constant 0 : index
    %c0_1 = arith.constant 0 : index
    %0 = vector.load %arg2[%c0, %c0_0, %c0_1] : memref<1x16x384xbf16, #tpu.memory_space<vmem>>, vector<1x16x384xbf16>
    %1 = vector.shape_cast %0 : vector<1x16x384xbf16> to vector<16x384xbf16>
    %c0_2 = arith.constant 0 : index
    %c0_3 = arith.constant 0 : index
    %2 = vector.load %arg3[%c0_2, %c0_3] : memref<16x128xbf16, #tpu.memory_space<vmem>>, vector<16x128xbf16>
    %3 = arith.extf %2 : vector<16x128xbf16> to vector<16x128xf32>
    %c0_4 = arith.constant 0 : index
    %c0_5 = arith.constant 0 : index
    %4 = vector.load %arg4[%c0_4, %c0_5] : memref<16x128xbf16, #tpu.memory_space<vmem>>, vector<16x128xbf16>
    %5 = arith.extf %4 : vector<16x128xbf16> to vector<16x128xf32>
    %c0_6 = arith.constant 0 : index
    %c0_7 = arith.constant 0 : index
    %6 = vector.load %arg5[%c0_6, %c0_7] : memref<16x128xbf16, #tpu.memory_space<vmem>>, vector<16x128xbf16>
    %7 = arith.extf %6 : vector<16x128xbf16> to vector<16x128xf32>
    %8 = vector.extract_strided_slice %1 {offsets = [0, 0], sizes = [16, 128], strides = [1, 1]} : vector<16x384xbf16> to vector<16x128xbf16>
    %9 = arith.extf %8 : vector<16x128xbf16> to vector<16x128xf32>
    %10 = vector.extract_strided_slice %1 {offsets = [0, 128], sizes = [16, 128], strides = [1, 1]} : vector<16x384xbf16> to vector<16x128xbf16>
    %11 = arith.extf %10 : vector<16x128xbf16> to vector<16x128xf32>
    %12 = arith.mulf %9, %3 : vector<16x128xf32>
    %c16_i32 = arith.constant 16 : i32
    %13 = tpu.dynamic_rotate %9 by %c16_i32 dim 1 : vector<16x128xf32>, i32 -> vector<16x128xf32>
    %14 = arith.mulf %13, %5 : vector<16x128xf32>
    %15 = arith.addf %12, %14 : vector<16x128xf32>
    %c112_i32 = arith.constant 112 : i32
    %16 = tpu.dynamic_rotate %9 by %c112_i32 dim 1 : vector<16x128xf32>, i32 -> vector<16x128xf32>
    %17 = arith.mulf %16, %7 : vector<16x128xf32>
    %18 = arith.addf %15, %17 : vector<16x128xf32>
    %cst = arith.constant 0.176776692 : f32
    %19 = vector.broadcast %cst : f32 to vector<16x128xf32>
    %20 = arith.mulf %18, %19 : vector<16x128xf32>
    %21 = arith.truncf %20 : vector<16x128xf32> to vector<16x128xbf16>
    %c0_8 = arith.constant 0 : index
    %c0_9 = arith.constant 0 : index
    %c0_10 = arith.constant 0 : index
    %22 = vector.load %arg6[%c0_8, %c0_9, %c0_10] : memref<1x16x128xbf16, #tpu.memory_space<vmem>>, vector<1x16x128xbf16>
    %23 = vector.shape_cast %22 : vector<1x16x128xbf16> to vector<16x128xbf16>
    %24 = vector.shape_cast %21 : vector<16x128xbf16> to vector<1x16x128xbf16>
    tpu.vector_store %arg6[%c0_8, %c0_9, %c0_10], %24 {strides = array<i32>} : memref<1x16x128xbf16, #tpu.memory_space<vmem>>, vector<1x16x128xbf16>,
    %25 = arith.mulf %11, %3 : vector<16x128xf32>
    %c16_i32_11 = arith.constant 16 : i32
    %26 = tpu.dynamic_rotate %11 by %c16_i32_11 dim 1 : vector<16x128xf32>, i32 -> vector<16x128xf32>
    %27 = arith.mulf %26, %5 : vector<16x128xf32>
    %28 = arith.addf %25, %27 : vector<16x128xf32>
    %c112_i32_12 = arith.constant 112 : i32
    %29 = tpu.dynamic_rotate %11 by %c112_i32_12 dim 1 : vector<16x128xf32>, i32 -> vector<16x128xf32>
    %30 = arith.mulf %29, %7 : vector<16x128xf32>
    %31 = arith.addf %28, %30 : vector<16x128xf32>
    %32 = arith.truncf %31 : vector<16x128xf32> to vector<16x128xbf16>
    %c0_13 = arith.constant 0 : index
    %c0_14 = arith.constant 0 : index
    %c0_15 = arith.constant 0 : index
    %33 = vector.load %arg7[%c0_13, %c0_14, %c0_15] : memref<1x16x128xbf16, #tpu.memory_space<vmem>>, vector<1x16x128xbf16>
    %34 = vector.shape_cast %33 : vector<1x16x128xbf16> to vector<16x128xbf16>
    %35 = vector.shape_cast %32 : vector<16x128xbf16> to vector<1x16x128xbf16>
    tpu.vector_store %arg7[%c0_13, %c0_14, %c0_15], %35 {strides = array<i32>} : memref<1x16x128xbf16, #tpu.memory_space<vmem>>, vector<1x16x128xbf16>,
    %36 = vector.extract_strided_slice %1 {offsets = [0, 256], sizes = [16, 128], strides = [1, 1]} : vector<16x384xbf16> to vector<16x128xbf16>
    %c0_16 = arith.constant 0 : index
    %c0_17 = arith.constant 0 : index
    %c0_18 = arith.constant 0 : index
    %37 = vector.load %arg8[%c0_16, %c0_17, %c0_18] : memref<1x16x128xbf16, #tpu.memory_space<vmem>>, vector<1x16x128xbf16>
    %38 = vector.shape_cast %37 : vector<1x16x128xbf16> to vector<16x128xbf16>
    %39 = vector.shape_cast %36 : vector<16x128xbf16> to vector<1x16x128xbf16>
    tpu.vector_store %arg8[%c0_16, %c0_17, %c0_18], %39 {strides = array<i32>} : memref<1x16x128xbf16, #tpu.memory_space<vmem>>, vector<1x16x128xbf16>,
    return
  }
  func.func @transform_0(%arg0: i32, %arg1: i32) -> (i32, i32, i32) {
    %c0_i32 = arith.constant 0 : i32
    %c0_i32_0 = arith.constant 0 : i32
    return %arg0, %arg1, %c0_i32 : i32, i32, i32
  }
  func.func @transform_1(%arg0: i32, %arg1: i32) -> (i32, i32) {
    %c0_i32 = arith.constant 0 : i32
    %c0_i32_0 = arith.constant 0 : i32
    return %arg1, %c0_i32 : i32, i32
  }
  func.func @transform_2(%arg0: i32, %arg1: i32) -> (i32, i32) {
    %c0_i32 = arith.constant 0 : i32
    %c0_i32_0 = arith.constant 0 : i32
    return %arg1, %c0_i32 : i32, i32
  }
  func.func @transform_3(%arg0: i32, %arg1: i32) -> (i32, i32) {
    %c0_i32 = arith.constant 0 : i32
    %c0_i32_0 = arith.constant 0 : i32
    return %arg1, %c0_i32 : i32, i32
  }
  func.func @transform_4(%arg0: i32, %arg1: i32) -> (i32, i32, i32) {
    %c0_i32 = arith.constant 0 : i32
    %c0_i32_0 = arith.constant 0 : i32
    return %arg0, %arg1, %c0_i32 : i32, i32, i32
  }
  func.func @transform_5(%arg0: i32, %arg1: i32) -> (i32, i32, i32) {
    %c0_i32 = arith.constant 0 : i32
    %c0_i32_0 = arith.constant 0 : i32
    return %arg0, %arg1, %c0_i32 : i32, i32, i32
  }
  func.func @transform_6(%arg0: i32, %arg1: i32) -> (i32, i32, i32) {
    %c0_i32 = arith.constant 0 : i32
    %c0_i32_0 = arith.constant 0 : i32
    return %arg0, %arg1, %c0_i32 : i32, i32, i32
  }
}

module attributes {stable_mosaic.version = 11 : i64} {
  func.func @_flash_attn_kernel(%arg0: i32, %arg1: i32, %arg2: i32, %arg3: memref<1x16x128xbf16, #tpu.memory_space<vmem>>, %arg4: memref<1x16x128xbf16, #tpu.memory_space<vmem>>, %arg5: memref<1x16x128xbf16, #tpu.memory_space<vmem>>, %arg6: memref<1x1x16xf32, #tpu.memory_space<vmem>>, %arg7: memref<1x16x128xbf16, #tpu.memory_space<vmem>>, %arg8: memref<16x4xf32, #tpu.memory_space<vmem>>, %arg9: memref<16x4xf32, #tpu.memory_space<vmem>>, %arg10: memref<16x128xf32, #tpu.memory_space<vmem>>) attributes {dimension_semantics = [#tpu.dimension_semantics<parallel>, #tpu.dimension_semantics<parallel>, #tpu.dimension_semantics<arbitrary>], iteration_bounds = array<i64: 2, 1, 1>, scalar_prefetch = 0 : i64, scratch_operands = 3 : i64, tpu.core_type = #tpu.core_type<tc>, window_params = [{transform_indices = @transform_0, window_bounds = array<i64: 1, 16, 128>}, {transform_indices = @transform_1, window_bounds = array<i64: 1, 16, 128>}, {transform_indices = @transform_2, window_bounds = array<i64: 1, 16, 128>}, {transform_indices = @transform_3, window_bounds = array<i64: 1, 1, 16>}, {transform_indices = @transform_4, window_bounds = array<i64: 1, 16, 128>}]} {
    %c0_i32 = arith.constant 0 : i32
    %0 = arith.cmpi eq, %arg2, %c0_i32 : i32
    %1 = arith.extui %0 : i1 to i32
    %c0_i32_0 = arith.constant 0 : i32
    %2 = arith.cmpi ne, %1, %c0_i32_0 : i32
    scf.if %2 {
      %cst_71 = arith.constant 0xFF800000 : f32
      %130 = vector.broadcast %cst_71 : f32 to vector<16x4xf32>
      %c0_72 = arith.constant 0 : index
      %c0_73 = arith.constant 0 : index
      %131 = vector.load %arg8[%c0_72, %c0_73] : memref<16x4xf32, #tpu.memory_space<vmem>>, vector<16x4xf32>
      tpu.vector_store %arg8[%c0_72, %c0_73], %130 {strides = array<i32>} : memref<16x4xf32, #tpu.memory_space<vmem>>, vector<16x4xf32>,
      %cst_74 = arith.constant 0.000000e+00 : f32
      %132 = vector.broadcast %cst_74 : f32 to vector<16x4xf32>
      %c0_75 = arith.constant 0 : index
      %c0_76 = arith.constant 0 : index
      %133 = vector.load %arg9[%c0_75, %c0_76] : memref<16x4xf32, #tpu.memory_space<vmem>>, vector<16x4xf32>
      tpu.vector_store %arg9[%c0_75, %c0_76], %132 {strides = array<i32>} : memref<16x4xf32, #tpu.memory_space<vmem>>, vector<16x4xf32>,
      %cst_77 = arith.constant 0.000000e+00 : f32
      %134 = vector.broadcast %cst_77 : f32 to vector<16x128xf32>
      %c0_78 = arith.constant 0 : index
      %c0_79 = arith.constant 0 : index
      %135 = vector.load %arg10[%c0_78, %c0_79] : memref<16x128xf32, #tpu.memory_space<vmem>>, vector<16x128xf32>
      tpu.vector_store %arg10[%c0_78, %c0_79], %134 {strides = array<i32>} : memref<16x128xf32, #tpu.memory_space<vmem>>, vector<16x128xf32>,
    } else {
    }
    %c0 = arith.constant 0 : index
    %c0_1 = arith.constant 0 : index
    %c0_2 = arith.constant 0 : index
    %3 = vector.load %arg3[%c0, %c0_1, %c0_2] : memref<1x16x128xbf16, #tpu.memory_space<vmem>>, vector<1x16x128xbf16>
    %4 = vector.shape_cast %3 : vector<1x16x128xbf16> to vector<16x128xbf16>
    %c0_3 = arith.constant 0 : index
    %c0_4 = arith.constant 0 : index
    %c0_5 = arith.constant 0 : index
    %5 = vector.load %arg4[%c0_3, %c0_4, %c0_5] : memref<1x16x128xbf16, #tpu.memory_space<vmem>>, vector<1x16x128xbf16>
    %6 = vector.shape_cast %5 : vector<1x16x128xbf16> to vector<16x128xbf16>
    %c0_6 = arith.constant 0 : index
    %c0_7 = arith.constant 0 : index
    %c0_8 = arith.constant 0 : index
    %7 = vector.load %arg5[%c0_6, %c0_7, %c0_8] : memref<1x16x128xbf16, #tpu.memory_space<vmem>>, vector<1x16x128xbf16>
    %8 = vector.shape_cast %7 : vector<1x16x128xbf16> to vector<16x128xbf16>
    %c0_9 = arith.constant 0 : index
    %c0_10 = arith.constant 0 : index
    %c0_11 = arith.constant 0 : index
    %9 = vector.load %arg6[%c0_9, %c0_10, %c0_11] : memref<1x1x16xf32, #tpu.memory_space<vmem>>, vector<1x1x16xf32>
    %10 = vector.shape_cast %9 : vector<1x1x16xf32> to vector<1x16xf32>
    %11 = vector.extract_strided_slice %4 {offsets = [0, 0], sizes = [16, 32], strides = [1, 1]} : vector<16x128xbf16> to vector<16x32xbf16>
    %12 = vector.extract_strided_slice %6 {offsets = [0, 0], sizes = [16, 32], strides = [1, 1]} : vector<16x128xbf16> to vector<16x32xbf16>
    %cst = arith.constant dense<0.000000e+00> : vector<16x16xf32>
    %13 = tpu.matmul %11, %12, %cst {dimension_numbers = #tpu.dot_dimension_numbers<[1], [1], [0], [0], [0, 0, 1, 0], [], []>} : vector<16x32xbf16>, vector<16x32xbf16>, vector<16x16xf32> -> vector<16x16xf32>
    %14 = vector.broadcast %10 : vector<1x16xf32> to vector<16x16xf32>
    %15 = arith.addf %13, %14 : vector<16x16xf32>
    %c0_12 = arith.constant 0 : index
    %c0_13 = arith.constant 0 : index
    %16 = vector.load %arg8[%c0_12, %c0_13] : memref<16x4xf32, #tpu.memory_space<vmem>>, vector<16x1xf32>
    %cst_14 = arith.constant dense<0xFF800000> : vector<16xf32>
    %17 = vector.multi_reduction <maximumf>, %15, %cst_14 [1] : vector<16x16xf32> to vector<16xf32>
    %18 = vector.shape_cast %17 : vector<16xf32> to vector<16x1xf32>
    %19 = arith.maximumf %16, %18 : vector<16x1xf32>
    %20 = arith.subf %16, %19 : vector<16x1xf32>
    %21 = math.exp %20 : vector<16x1xf32>
    %22 = vector.broadcast %19 : vector<16x1xf32> to vector<16x16xf32>
    %23 = arith.subf %15, %22 : vector<16x16xf32>
    %24 = math.exp %23 : vector<16x16xf32>
    %c0_15 = arith.constant 0 : index
    %c0_16 = arith.constant 0 : index
    %25 = vector.load %arg9[%c0_15, %c0_16] : memref<16x4xf32, #tpu.memory_space<vmem>>, vector<16x1xf32>
    %26 = arith.mulf %21, %25 : vector<16x1xf32>
    %cst_17 = arith.constant dense<0.000000e+00> : vector<16xf32>
    %27 = vector.multi_reduction <add>, %24, %cst_17 [1] : vector<16x16xf32> to vector<16xf32>
    %28 = vector.shape_cast %27 : vector<16xf32> to vector<16x1xf32>
    %29 = arith.addf %26, %28 : vector<16x1xf32>
    %c0_18 = arith.constant 0 : index
    %c0_19 = arith.constant 0 : index
    %30 = vector.load %arg9[%c0_18, %c0_19] : memref<16x4xf32, #tpu.memory_space<vmem>>, vector<16x1xf32>
    tpu.vector_store %arg9[%c0_18, %c0_19], %29 {strides = array<i32>} : memref<16x4xf32, #tpu.memory_space<vmem>>, vector<16x1xf32>,
    %c0_20 = arith.constant 0 : index
    %c0_21 = arith.constant 0 : index
    %31 = vector.load %arg10[%c0_20, %c0_21] : memref<16x128xf32, #tpu.memory_space<vmem>>, vector<16x32xf32>
    %32 = vector.broadcast %21 : vector<16x1xf32> to vector<16x32xf32>
    %33 = arith.mulf %32, %31 : vector<16x32xf32>
    %34 = arith.truncf %24 : vector<16x16xf32> to vector<16x16xbf16>
    %35 = vector.extract_strided_slice %8 {offsets = [0, 0], sizes = [16, 32], strides = [1, 1]} : vector<16x128xbf16> to vector<16x32xbf16>
    %cst_22 = arith.constant dense<0.000000e+00> : vector<16x32xf32>
    %36 = tpu.matmul %34, %35, %cst_22 {dimension_numbers = #tpu.dot_dimension_numbers<[1], [0], [0], [1], [0, 0, 1, 1], [], []>} : vector<16x16xbf16>, vector<16x32xbf16>, vector<16x32xf32> -> vector<16x32xf32>
    %37 = arith.addf %33, %36 : vector<16x32xf32>
    %c0_23 = arith.constant 0 : index
    %c0_24 = arith.constant 0 : index
    %38 = vector.load %arg10[%c0_23, %c0_24] : memref<16x128xf32, #tpu.memory_space<vmem>>, vector<16x32xf32>
    tpu.vector_store %arg10[%c0_23, %c0_24], %37 {strides = array<i32>} : memref<16x128xf32, #tpu.memory_space<vmem>>, vector<16x32xf32>,
    %c0_25 = arith.constant 0 : index
    %c0_26 = arith.constant 0 : index
    %39 = vector.load %arg8[%c0_25, %c0_26] : memref<16x4xf32, #tpu.memory_space<vmem>>, vector<16x1xf32>
    tpu.vector_store %arg8[%c0_25, %c0_26], %19 {strides = array<i32>} : memref<16x4xf32, #tpu.memory_space<vmem>>, vector<16x1xf32>,
    %40 = vector.extract_strided_slice %4 {offsets = [0, 32], sizes = [16, 32], strides = [1, 1]} : vector<16x128xbf16> to vector<16x32xbf16>
    %41 = vector.extract_strided_slice %6 {offsets = [0, 32], sizes = [16, 32], strides = [1, 1]} : vector<16x128xbf16> to vector<16x32xbf16>
    %cst_27 = arith.constant dense<0.000000e+00> : vector<16x16xf32>
    %42 = tpu.matmul %40, %41, %cst_27 {dimension_numbers = #tpu.dot_dimension_numbers<[1], [1], [0], [0], [0, 0, 1, 0], [], []>} : vector<16x32xbf16>, vector<16x32xbf16>, vector<16x16xf32> -> vector<16x16xf32>
    %43 = vector.broadcast %10 : vector<1x16xf32> to vector<16x16xf32>
    %44 = arith.addf %42, %43 : vector<16x16xf32>
    %c0_28 = arith.constant 0 : index
    %c1 = arith.constant 1 : index
    %45 = vector.load %arg8[%c0_28, %c1] : memref<16x4xf32, #tpu.memory_space<vmem>>, vector<16x1xf32>
    %cst_29 = arith.constant dense<0xFF800000> : vector<16xf32>
    %46 = vector.multi_reduction <maximumf>, %44, %cst_29 [1] : vector<16x16xf32> to vector<16xf32>
    %47 = vector.shape_cast %46 : vector<16xf32> to vector<16x1xf32>
    %48 = arith.maximumf %45, %47 : vector<16x1xf32>
    %49 = arith.subf %45, %48 : vector<16x1xf32>
    %50 = math.exp %49 : vector<16x1xf32>
    %51 = vector.broadcast %48 : vector<16x1xf32> to vector<16x16xf32>
    %52 = arith.subf %44, %51 : vector<16x16xf32>
    %53 = math.exp %52 : vector<16x16xf32>
    %c0_30 = arith.constant 0 : index
    %c1_31 = arith.constant 1 : index
    %54 = vector.load %arg9[%c0_30, %c1_31] : memref<16x4xf32, #tpu.memory_space<vmem>>, vector<16x1xf32>
    %55 = arith.mulf %50, %54 : vector<16x1xf32>
    %cst_32 = arith.constant dense<0.000000e+00> : vector<16xf32>
    %56 = vector.multi_reduction <add>, %53, %cst_32 [1] : vector<16x16xf32> to vector<16xf32>
    %57 = vector.shape_cast %56 : vector<16xf32> to vector<16x1xf32>
    %58 = arith.addf %55, %57 : vector<16x1xf32>
    %c0_33 = arith.constant 0 : index
    %c1_34 = arith.constant 1 : index
    %59 = vector.load %arg9[%c0_33, %c1_34] : memref<16x4xf32, #tpu.memory_space<vmem>>, vector<16x1xf32>
    tpu.vector_store %arg9[%c0_33, %c1_34], %58 {strides = array<i32>} : memref<16x4xf32, #tpu.memory_space<vmem>>, vector<16x1xf32>,
    %c0_35 = arith.constant 0 : index
    %c32 = arith.constant 32 : index
    %60 = vector.load %arg10[%c0_35, %c32] : memref<16x128xf32, #tpu.memory_space<vmem>>, vector<16x32xf32>
    %61 = vector.broadcast %50 : vector<16x1xf32> to vector<16x32xf32>
    %62 = arith.mulf %61, %60 : vector<16x32xf32>
    %63 = arith.truncf %53 : vector<16x16xf32> to vector<16x16xbf16>
    %64 = vector.extract_strided_slice %8 {offsets = [0, 32], sizes = [16, 32], strides = [1, 1]} : vector<16x128xbf16> to vector<16x32xbf16>
    %cst_36 = arith.constant dense<0.000000e+00> : vector<16x32xf32>
    %65 = tpu.matmul %63, %64, %cst_36 {dimension_numbers = #tpu.dot_dimension_numbers<[1], [0], [0], [1], [0, 0, 1, 1], [], []>} : vector<16x16xbf16>, vector<16x32xbf16>, vector<16x32xf32> -> vector<16x32xf32>
    %66 = arith.addf %62, %65 : vector<16x32xf32>
    %c0_37 = arith.constant 0 : index
    %c32_38 = arith.constant 32 : index
    %67 = vector.load %arg10[%c0_37, %c32_38] : memref<16x128xf32, #tpu.memory_space<vmem>>, vector<16x32xf32>
    tpu.vector_store %arg10[%c0_37, %c32_38], %66 {strides = array<i32>} : memref<16x128xf32, #tpu.memory_space<vmem>>, vector<16x32xf32>,
    %c0_39 = arith.constant 0 : index
    %c1_40 = arith.constant 1 : index
    %68 = vector.load %arg8[%c0_39, %c1_40] : memref<16x4xf32, #tpu.memory_space<vmem>>, vector<16x1xf32>
    tpu.vector_store %arg8[%c0_39, %c1_40], %48 {strides = array<i32>} : memref<16x4xf32, #tpu.memory_space<vmem>>, vector<16x1xf32>,
    %69 = vector.extract_strided_slice %4 {offsets = [0, 64], sizes = [16, 32], strides = [1, 1]} : vector<16x128xbf16> to vector<16x32xbf16>
    %70 = vector.extract_strided_slice %6 {offsets = [0, 64], sizes = [16, 32], strides = [1, 1]} : vector<16x128xbf16> to vector<16x32xbf16>
    %cst_41 = arith.constant dense<0.000000e+00> : vector<16x16xf32>
    %71 = tpu.matmul %69, %70, %cst_41 {dimension_numbers = #tpu.dot_dimension_numbers<[1], [1], [0], [0], [0, 0, 1, 0], [], []>} : vector<16x32xbf16>, vector<16x32xbf16>, vector<16x16xf32> -> vector<16x16xf32>
    %72 = vector.broadcast %10 : vector<1x16xf32> to vector<16x16xf32>
    %73 = arith.addf %71, %72 : vector<16x16xf32>
    %c0_42 = arith.constant 0 : index
    %c2 = arith.constant 2 : index
    %74 = vector.load %arg8[%c0_42, %c2] : memref<16x4xf32, #tpu.memory_space<vmem>>, vector<16x1xf32>
    %cst_43 = arith.constant dense<0xFF800000> : vector<16xf32>
    %75 = vector.multi_reduction <maximumf>, %73, %cst_43 [1] : vector<16x16xf32> to vector<16xf32>
    %76 = vector.shape_cast %75 : vector<16xf32> to vector<16x1xf32>
    %77 = arith.maximumf %74, %76 : vector<16x1xf32>
    %78 = arith.subf %74, %77 : vector<16x1xf32>
    %79 = math.exp %78 : vector<16x1xf32>
    %80 = vector.broadcast %77 : vector<16x1xf32> to vector<16x16xf32>
    %81 = arith.subf %73, %80 : vector<16x16xf32>
    %82 = math.exp %81 : vector<16x16xf32>
    %c0_44 = arith.constant 0 : index
    %c2_45 = arith.constant 2 : index
    %83 = vector.load %arg9[%c0_44, %c2_45] : memref<16x4xf32, #tpu.memory_space<vmem>>, vector<16x1xf32>
    %84 = arith.mulf %79, %83 : vector<16x1xf32>
    %cst_46 = arith.constant dense<0.000000e+00> : vector<16xf32>
    %85 = vector.multi_reduction <add>, %82, %cst_46 [1] : vector<16x16xf32> to vector<16xf32>
    %86 = vector.shape_cast %85 : vector<16xf32> to vector<16x1xf32>
    %87 = arith.addf %84, %86 : vector<16x1xf32>
    %c0_47 = arith.constant 0 : index
    %c2_48 = arith.constant 2 : index
    %88 = vector.load %arg9[%c0_47, %c2_48] : memref<16x4xf32, #tpu.memory_space<vmem>>, vector<16x1xf32>
    tpu.vector_store %arg9[%c0_47, %c2_48], %87 {strides = array<i32>} : memref<16x4xf32, #tpu.memory_space<vmem>>, vector<16x1xf32>,
    %c0_49 = arith.constant 0 : index
    %c64 = arith.constant 64 : index
    %89 = vector.load %arg10[%c0_49, %c64] : memref<16x128xf32, #tpu.memory_space<vmem>>, vector<16x32xf32>
    %90 = vector.broadcast %79 : vector<16x1xf32> to vector<16x32xf32>
    %91 = arith.mulf %90, %89 : vector<16x32xf32>
    %92 = arith.truncf %82 : vector<16x16xf32> to vector<16x16xbf16>
    %93 = vector.extract_strided_slice %8 {offsets = [0, 64], sizes = [16, 32], strides = [1, 1]} : vector<16x128xbf16> to vector<16x32xbf16>
    %cst_50 = arith.constant dense<0.000000e+00> : vector<16x32xf32>
    %94 = tpu.matmul %92, %93, %cst_50 {dimension_numbers = #tpu.dot_dimension_numbers<[1], [0], [0], [1], [0, 0, 1, 1], [], []>} : vector<16x16xbf16>, vector<16x32xbf16>, vector<16x32xf32> -> vector<16x32xf32>
    %95 = arith.addf %91, %94 : vector<16x32xf32>
    %c0_51 = arith.constant 0 : index
    %c64_52 = arith.constant 64 : index
    %96 = vector.load %arg10[%c0_51, %c64_52] : memref<16x128xf32, #tpu.memory_space<vmem>>, vector<16x32xf32>
    tpu.vector_store %arg10[%c0_51, %c64_52], %95 {strides = array<i32>} : memref<16x128xf32, #tpu.memory_space<vmem>>, vector<16x32xf32>,
    %c0_53 = arith.constant 0 : index
    %c2_54 = arith.constant 2 : index
    %97 = vector.load %arg8[%c0_53, %c2_54] : memref<16x4xf32, #tpu.memory_space<vmem>>, vector<16x1xf32>
    tpu.vector_store %arg8[%c0_53, %c2_54], %77 {strides = array<i32>} : memref<16x4xf32, #tpu.memory_space<vmem>>, vector<16x1xf32>,
    %98 = vector.extract_strided_slice %4 {offsets = [0, 96], sizes = [16, 32], strides = [1, 1]} : vector<16x128xbf16> to vector<16x32xbf16>
    %99 = vector.extract_strided_slice %6 {offsets = [0, 96], sizes = [16, 32], strides = [1, 1]} : vector<16x128xbf16> to vector<16x32xbf16>
    %cst_55 = arith.constant dense<0.000000e+00> : vector<16x16xf32>
    %100 = tpu.matmul %98, %99, %cst_55 {dimension_numbers = #tpu.dot_dimension_numbers<[1], [1], [0], [0], [0, 0, 1, 0], [], []>} : vector<16x32xbf16>, vector<16x32xbf16>, vector<16x16xf32> -> vector<16x16xf32>
    %101 = vector.broadcast %10 : vector<1x16xf32> to vector<16x16xf32>
    %102 = arith.addf %100, %101 : vector<16x16xf32>
    %c0_56 = arith.constant 0 : index
    %c3 = arith.constant 3 : index
    %103 = vector.load %arg8[%c0_56, %c3] : memref<16x4xf32, #tpu.memory_space<vmem>>, vector<16x1xf32>
    %cst_57 = arith.constant dense<0xFF800000> : vector<16xf32>
    %104 = vector.multi_reduction <maximumf>, %102, %cst_57 [1] : vector<16x16xf32> to vector<16xf32>
    %105 = vector.shape_cast %104 : vector<16xf32> to vector<16x1xf32>
    %106 = arith.maximumf %103, %105 : vector<16x1xf32>
    %107 = arith.subf %103, %106 : vector<16x1xf32>
    %108 = math.exp %107 : vector<16x1xf32>
    %109 = vector.broadcast %106 : vector<16x1xf32> to vector<16x16xf32>
    %110 = arith.subf %102, %109 : vector<16x16xf32>
    %111 = math.exp %110 : vector<16x16xf32>
    %c0_58 = arith.constant 0 : index
    %c3_59 = arith.constant 3 : index
    %112 = vector.load %arg9[%c0_58, %c3_59] : memref<16x4xf32, #tpu.memory_space<vmem>>, vector<16x1xf32>
    %113 = arith.mulf %108, %112 : vector<16x1xf32>
    %cst_60 = arith.constant dense<0.000000e+00> : vector<16xf32>
    %114 = vector.multi_reduction <add>, %111, %cst_60 [1] : vector<16x16xf32> to vector<16xf32>
    %115 = vector.shape_cast %114 : vector<16xf32> to vector<16x1xf32>
    %116 = arith.addf %113, %115 : vector<16x1xf32>
    %c0_61 = arith.constant 0 : index
    %c3_62 = arith.constant 3 : index
    %117 = vector.load %arg9[%c0_61, %c3_62] : memref<16x4xf32, #tpu.memory_space<vmem>>, vector<16x1xf32>
    tpu.vector_store %arg9[%c0_61, %c3_62], %116 {strides = array<i32>} : memref<16x4xf32, #tpu.memory_space<vmem>>, vector<16x1xf32>,
    %c0_63 = arith.constant 0 : index
    %c96 = arith.constant 96 : index
    %118 = vector.load %arg10[%c0_63, %c96] : memref<16x128xf32, #tpu.memory_space<vmem>>, vector<16x32xf32>
    %119 = vector.broadcast %108 : vector<16x1xf32> to vector<16x32xf32>
    %120 = arith.mulf %119, %118 : vector<16x32xf32>
    %121 = arith.truncf %111 : vector<16x16xf32> to vector<16x16xbf16>
    %122 = vector.extract_strided_slice %8 {offsets = [0, 96], sizes = [16, 32], strides = [1, 1]} : vector<16x128xbf16> to vector<16x32xbf16>
    %cst_64 = arith.constant dense<0.000000e+00> : vector<16x32xf32>
    %123 = tpu.matmul %121, %122, %cst_64 {dimension_numbers = #tpu.dot_dimension_numbers<[1], [0], [0], [1], [0, 0, 1, 1], [], []>} : vector<16x16xbf16>, vector<16x32xbf16>, vector<16x32xf32> -> vector<16x32xf32>
    %124 = arith.addf %120, %123 : vector<16x32xf32>
    %c0_65 = arith.constant 0 : index
    %c96_66 = arith.constant 96 : index
    %125 = vector.load %arg10[%c0_65, %c96_66] : memref<16x128xf32, #tpu.memory_space<vmem>>, vector<16x32xf32>
    tpu.vector_store %arg10[%c0_65, %c96_66], %124 {strides = array<i32>} : memref<16x128xf32, #tpu.memory_space<vmem>>, vector<16x32xf32>,
    %c0_67 = arith.constant 0 : index
    %c3_68 = arith.constant 3 : index
    %126 = vector.load %arg8[%c0_67, %c3_68] : memref<16x4xf32, #tpu.memory_space<vmem>>, vector<16x1xf32>
    tpu.vector_store %arg8[%c0_67, %c3_68], %106 {strides = array<i32>} : memref<16x4xf32, #tpu.memory_space<vmem>>, vector<16x1xf32>,
    %c0_i32_69 = arith.constant 0 : i32
    %127 = arith.cmpi eq, %arg2, %c0_i32_69 : i32
    %128 = arith.extui %127 : i1 to i32
    %c0_i32_70 = arith.constant 0 : i32
    %129 = arith.cmpi ne, %128, %c0_i32_70 : i32
    scf.if %129 {
      %c0_71 = arith.constant 0 : index
      %c0_72 = arith.constant 0 : index
      %130 = vector.load %arg10[%c0_71, %c0_72] : memref<16x128xf32, #tpu.memory_space<vmem>>, vector<16x32xf32>
      %c0_73 = arith.constant 0 : index
      %c0_74 = arith.constant 0 : index
      %131 = vector.load %arg9[%c0_73, %c0_74] : memref<16x4xf32, #tpu.memory_space<vmem>>, vector<16x1xf32>
      %132 = tpu.reciprocal %131 {approx = true} : vector<16x1xf32> -> vector<16x1xf32>
      %133 = vector.broadcast %132 : vector<16x1xf32> to vector<16x32xf32>
      %134 = arith.mulf %130, %133 : vector<16x32xf32>
      %135 = arith.truncf %134 : vector<16x32xf32> to vector<16x32xbf16>
      %c0_75 = arith.constant 0 : index
      %c0_76 = arith.constant 0 : index
      %c0_77 = arith.constant 0 : index
      %136 = vector.load %arg7[%c0_75, %c0_76, %c0_77] : memref<1x16x128xbf16, #tpu.memory_space<vmem>>, vector<1x16x32xbf16>
      %137 = vector.shape_cast %136 : vector<1x16x32xbf16> to vector<16x32xbf16>
      %138 = vector.shape_cast %135 : vector<16x32xbf16> to vector<1x16x32xbf16>
      tpu.vector_store %arg7[%c0_75, %c0_76, %c0_77], %138 {strides = array<i32>} : memref<1x16x128xbf16, #tpu.memory_space<vmem>>, vector<1x16x32xbf16>,
      %c0_78 = arith.constant 0 : index
      %c32_79 = arith.constant 32 : index
      %139 = vector.load %arg10[%c0_78, %c32_79] : memref<16x128xf32, #tpu.memory_space<vmem>>, vector<16x32xf32>
      %c0_80 = arith.constant 0 : index
      %c1_81 = arith.constant 1 : index
      %140 = vector.load %arg9[%c0_80, %c1_81] : memref<16x4xf32, #tpu.memory_space<vmem>>, vector<16x1xf32>
      %141 = tpu.reciprocal %140 {approx = true} : vector<16x1xf32> -> vector<16x1xf32>
      %142 = vector.broadcast %141 : vector<16x1xf32> to vector<16x32xf32>
      %143 = arith.mulf %139, %142 : vector<16x32xf32>
      %144 = arith.truncf %143 : vector<16x32xf32> to vector<16x32xbf16>
      %c0_82 = arith.constant 0 : index
      %c0_83 = arith.constant 0 : index
      %c32_84 = arith.constant 32 : index
      %145 = vector.load %arg7[%c0_82, %c0_83, %c32_84] : memref<1x16x128xbf16, #tpu.memory_space<vmem>>, vector<1x16x32xbf16>
      %146 = vector.shape_cast %145 : vector<1x16x32xbf16> to vector<16x32xbf16>
      %147 = vector.shape_cast %144 : vector<16x32xbf16> to vector<1x16x32xbf16>
      tpu.vector_store %arg7[%c0_82, %c0_83, %c32_84], %147 {strides = array<i32>} : memref<1x16x128xbf16, #tpu.memory_space<vmem>>, vector<1x16x32xbf16>,
      %c0_85 = arith.constant 0 : index
      %c64_86 = arith.constant 64 : index
      %148 = vector.load %arg10[%c0_85, %c64_86] : memref<16x128xf32, #tpu.memory_space<vmem>>, vector<16x32xf32>
      %c0_87 = arith.constant 0 : index
      %c2_88 = arith.constant 2 : index
      %149 = vector.load %arg9[%c0_87, %c2_88] : memref<16x4xf32, #tpu.memory_space<vmem>>, vector<16x1xf32>
      %150 = tpu.reciprocal %149 {approx = true} : vector<16x1xf32> -> vector<16x1xf32>
      %151 = vector.broadcast %150 : vector<16x1xf32> to vector<16x32xf32>
      %152 = arith.mulf %148, %151 : vector<16x32xf32>
      %153 = arith.truncf %152 : vector<16x32xf32> to vector<16x32xbf16>
      %c0_89 = arith.constant 0 : index
      %c0_90 = arith.constant 0 : index
      %c64_91 = arith.constant 64 : index
      %154 = vector.load %arg7[%c0_89, %c0_90, %c64_91] : memref<1x16x128xbf16, #tpu.memory_space<vmem>>, vector<1x16x32xbf16>
      %155 = vector.shape_cast %154 : vector<1x16x32xbf16> to vector<16x32xbf16>
      %156 = vector.shape_cast %153 : vector<16x32xbf16> to vector<1x16x32xbf16>
      tpu.vector_store %arg7[%c0_89, %c0_90, %c64_91], %156 {strides = array<i32>} : memref<1x16x128xbf16, #tpu.memory_space<vmem>>, vector<1x16x32xbf16>,
      %c0_92 = arith.constant 0 : index
      %c96_93 = arith.constant 96 : index
      %157 = vector.load %arg10[%c0_92, %c96_93] : memref<16x128xf32, #tpu.memory_space<vmem>>, vector<16x32xf32>
      %c0_94 = arith.constant 0 : index
      %c3_95 = arith.constant 3 : index
      %158 = vector.load %arg9[%c0_94, %c3_95] : memref<16x4xf32, #tpu.memory_space<vmem>>, vector<16x1xf32>
      %159 = tpu.reciprocal %158 {approx = true} : vector<16x1xf32> -> vector<16x1xf32>
      %160 = vector.broadcast %159 : vector<16x1xf32> to vector<16x32xf32>
      %161 = arith.mulf %157, %160 : vector<16x32xf32>
      %162 = arith.truncf %161 : vector<16x32xf32> to vector<16x32xbf16>
      %c0_96 = arith.constant 0 : index
      %c0_97 = arith.constant 0 : index
      %c96_98 = arith.constant 96 : index
      %163 = vector.load %arg7[%c0_96, %c0_97, %c96_98] : memref<1x16x128xbf16, #tpu.memory_space<vmem>>, vector<1x16x32xbf16>
      %164 = vector.shape_cast %163 : vector<1x16x32xbf16> to vector<16x32xbf16>
      %165 = vector.shape_cast %162 : vector<16x32xbf16> to vector<1x16x32xbf16>
      tpu.vector_store %arg7[%c0_96, %c0_97, %c96_98], %165 {strides = array<i32>} : memref<1x16x128xbf16, #tpu.memory_space<vmem>>, vector<1x16x32xbf16>,
    } else {
    }
    return
  }
  func.func @transform_0(%arg0: i32, %arg1: i32, %arg2: i32) -> (i32, i32, i32) {
    %c0_i32 = arith.constant 0 : i32
    %c0_i32_0 = arith.constant 0 : i32
    return %arg0, %arg1, %c0_i32 : i32, i32, i32
  }
  func.func @transform_1(%arg0: i32, %arg1: i32, %arg2: i32) -> (i32, i32, i32) {
    %c0_i32 = arith.constant 0 : i32
    %c0_i32_0 = arith.constant 0 : i32
    return %arg0, %arg2, %c0_i32 : i32, i32, i32
  }
  func.func @transform_2(%arg0: i32, %arg1: i32, %arg2: i32) -> (i32, i32, i32) {
    %c0_i32 = arith.constant 0 : i32
    %c0_i32_0 = arith.constant 0 : i32
    return %arg0, %arg2, %c0_i32 : i32, i32, i32
  }
  func.func @transform_3(%arg0: i32, %arg1: i32, %arg2: i32) -> (i32, i32, i32) {
    %c0_i32 = arith.constant 0 : i32
    %c0_i32_0 = arith.constant 0 : i32
    return %arg0, %c0_i32, %arg2 : i32, i32, i32
  }
  func.func @transform_4(%arg0: i32, %arg1: i32, %arg2: i32) -> (i32, i32, i32) {
    %c0_i32 = arith.constant 0 : i32
    %c0_i32_0 = arith.constant 0 : i32
    return %arg0, %arg1, %c0_i32 : i32, i32, i32
  }
}

module attributes {stable_mosaic.version = 11 : i64} {
  func.func @_dense_kernel(%arg0: i32, %arg1: i32, %arg2: i32, %arg3: memref<32x128xbf16, #tpu.memory_space<vmem>>, %arg4: memref<128x256xbf16, #tpu.memory_space<vmem>>, %arg5: memref<1x256xf32, #tpu.memory_space<vmem>>, %arg6: memref<32x256xbf16, #tpu.memory_space<vmem>>, %arg7: memref<32x256xf32, #tpu.memory_space<vmem>>) attributes {dimension_semantics = [#tpu.dimension_semantics<parallel>, #tpu.dimension_semantics<parallel>, #tpu.dimension_semantics<arbitrary>], iteration_bounds = array<i64: 1, 1, 1>, scalar_prefetch = 0 : i64, scratch_operands = 1 : i64, tpu.core_type = #tpu.core_type<tc>, window_params = [{transform_indices = @transform_0, window_bounds = array<i64: 32, 128>}, {transform_indices = @transform_1, window_bounds = array<i64: 128, 256>}, {transform_indices = @transform_2, window_bounds = array<i64: 1, 256>}, {transform_indices = @transform_3, window_bounds = array<i64: 32, 256>}]} {
    %c0_i32 = arith.constant 0 : i32
    %0 = arith.cmpi eq, %arg2, %c0_i32 : i32
    %1 = arith.extui %0 : i1 to i32
    %c0_i32_0 = arith.constant 0 : i32
    %2 = arith.cmpi ne, %1, %c0_i32_0 : i32
    scf.if %2 {
      %cst_10 = arith.constant 0.000000e+00 : f32
      %12 = vector.broadcast %cst_10 : f32 to vector<32x256xf32>
      %c0_11 = arith.constant 0 : index
      %c0_12 = arith.constant 0 : index
      %13 = vector.load %arg7[%c0_11, %c0_12] : memref<32x256xf32, #tpu.memory_space<vmem>>, vector<32x256xf32>
      tpu.vector_store %arg7[%c0_11, %c0_12], %12 {strides = array<i32>} : memref<32x256xf32, #tpu.memory_space<vmem>>, vector<32x256xf32>,
    } else {
    }
    %c0 = arith.constant 0 : index
    %c0_1 = arith.constant 0 : index
    %3 = vector.load %arg7[%c0, %c0_1] : memref<32x256xf32, #tpu.memory_space<vmem>>, vector<32x256xf32>
    %c0_2 = arith.constant 0 : index
    %c0_3 = arith.constant 0 : index
    %4 = vector.load %arg3[%c0_2, %c0_3] : memref<32x128xbf16, #tpu.memory_space<vmem>>, vector<32x128xbf16>
    %c0_4 = arith.constant 0 : index
    %c0_5 = arith.constant 0 : index
    %5 = vector.load %arg4[%c0_4, %c0_5] : memref<128x256xbf16, #tpu.memory_space<vmem>>, vector<128x256xbf16>
    %cst = arith.constant dense<0.000000e+00> : vector<32x256xf32>
    %6 = tpu.matmul %4, %5, %cst {dimension_numbers = #tpu.dot_dimension_numbers<[1], [0], [0], [1], [0, 0, 1, 1], [], []>} : vector<32x128xbf16>, vector<128x256xbf16>, vector<32x256xf32> -> vector<32x256xf32>
    %7 = arith.addf %3, %6 : vector<32x256xf32>
    %c0_6 = arith.constant 0 : index
    %c0_7 = arith.constant 0 : index
    %8 = vector.load %arg7[%c0_6, %c0_7] : memref<32x256xf32, #tpu.memory_space<vmem>>, vector<32x256xf32>
    tpu.vector_store %arg7[%c0_6, %c0_7], %7 {strides = array<i32>} : memref<32x256xf32, #tpu.memory_space<vmem>>, vector<32x256xf32>,
    %c0_i32_8 = arith.constant 0 : i32
    %9 = arith.cmpi eq, %arg2, %c0_i32_8 : i32
    %10 = arith.extui %9 : i1 to i32
    %c0_i32_9 = arith.constant 0 : i32
    %11 = arith.cmpi ne, %10, %c0_i32_9 : i32
    scf.if %11 {
      %c0_10 = arith.constant 0 : index
      %c0_11 = arith.constant 0 : index
      %12 = vector.load %arg7[%c0_10, %c0_11] : memref<32x256xf32, #tpu.memory_space<vmem>>, vector<32x256xf32>
      %c0_12 = arith.constant 0 : index
      %c0_13 = arith.constant 0 : index
      %13 = vector.load %arg5[%c0_12, %c0_13] : memref<1x256xf32, #tpu.memory_space<vmem>>, vector<1x256xf32>
      %14 = vector.broadcast %13 : vector<1x256xf32> to vector<32x256xf32>
      %15 = arith.addf %12, %14 : vector<32x256xf32>
      %16 = arith.mulf %15, %15 : vector<32x256xf32>
      %17 = arith.mulf %15, %16 : vector<32x256xf32>
      %cst_14 = arith.constant 4.471500e-02 : f32
      %18 = vector.broadcast %cst_14 : f32 to vector<32x256xf32>
      %19 = arith.mulf %18, %17 : vector<32x256xf32>
      %20 = arith.addf %15, %19 : vector<32x256xf32>
      %cst_15 = arith.constant 0.797884583 : f32
      %21 = vector.broadcast %cst_15 : f32 to vector<32x256xf32>
      %22 = arith.mulf %21, %20 : vector<32x256xf32>
      %23 = math.tanh %22 : vector<32x256xf32>
      %cst_16 = arith.constant 1.000000e+00 : f32
      %24 = vector.broadcast %cst_16 : f32 to vector<32x256xf32>
      %25 = arith.addf %24, %23 : vector<32x256xf32>
      %cst_17 = arith.constant 5.000000e-01 : f32
      %26 = vector.broadcast %cst_17 : f32 to vector<32x256xf32>
      %27 = arith.mulf %26, %25 : vector<32x256xf32>
      %28 = arith.mulf %15, %27 : vector<32x256xf32>
      %29 = arith.truncf %28 : vector<32x256xf32> to vector<32x256xbf16>
      %c0_18 = arith.constant 0 : index
      %c0_19 = arith.constant 0 : index
      %30 = vector.load %arg6[%c0_18, %c0_19] : memref<32x256xbf16, #tpu.memory_space<vmem>>, vector<32x256xbf16>
      tpu.vector_store %arg6[%c0_18, %c0_19], %29 {strides = array<i32>} : memref<32x256xbf16, #tpu.memory_space<vmem>>, vector<32x256xbf16>,
    } else {
    }
    return
  }
  func.func @transform_0(%arg0: i32, %arg1: i32, %arg2: i32) -> (i32, i32) {
    %c0_i32 = arith.constant 0 : i32
    return %arg0, %arg2 : i32, i32
  }
  func.func @transform_1(%arg0: i32, %arg1: i32, %arg2: i32) -> (i32, i32) {
    %c0_i32 = arith.constant 0 : i32
    return %arg2, %arg1 : i32, i32
  }
  func.func @transform_2(%arg0: i32, %arg1: i32, %arg2: i32) -> (i32, i32) {
    %c0_i32 = arith.constant 0 : i32
    %c0_i32_0 = arith.constant 0 : i32
    return %c0_i32, %arg1 : i32, i32
  }
  func.func @transform_3(%arg0: i32, %arg1: i32, %arg2: i32) -> (i32, i32) {
    %c0_i32 = arith.constant 0 : i32
    return %arg0, %arg1 : i32, i32
  }
}

module attributes {stable_mosaic.version = 11 : i64} {
  func.func @_dense_res_kernel(%arg0: i32, %arg1: i32, %arg2: i32, %arg3: memref<32x128xbf16, #tpu.memory_space<vmem>>, %arg4: memref<128x128xbf16, #tpu.memory_space<vmem>>, %arg5: memref<1x128xf32, #tpu.memory_space<vmem>>, %arg6: memref<32x128xbf16, #tpu.memory_space<vmem>>, %arg7: memref<32x128xbf16, #tpu.memory_space<vmem>>, %arg8: memref<32x128xf32, #tpu.memory_space<vmem>>) attributes {dimension_semantics = [#tpu.dimension_semantics<parallel>, #tpu.dimension_semantics<parallel>, #tpu.dimension_semantics<arbitrary>], iteration_bounds = array<i64: 1, 1, 1>, scalar_prefetch = 0 : i64, scratch_operands = 1 : i64, tpu.core_type = #tpu.core_type<tc>, window_params = [{transform_indices = @transform_0, window_bounds = array<i64: 32, 128>}, {transform_indices = @transform_1, window_bounds = array<i64: 128, 128>}, {transform_indices = @transform_2, window_bounds = array<i64: 1, 128>}, {transform_indices = @transform_3, window_bounds = array<i64: 32, 128>}, {transform_indices = @transform_4, window_bounds = array<i64: 32, 128>}]} {
    %c0_i32 = arith.constant 0 : i32
    %0 = arith.cmpi eq, %arg2, %c0_i32 : i32
    %1 = arith.extui %0 : i1 to i32
    %c0_i32_0 = arith.constant 0 : i32
    %2 = arith.cmpi ne, %1, %c0_i32_0 : i32
    scf.if %2 {
      %cst_10 = arith.constant 0.000000e+00 : f32
      %12 = vector.broadcast %cst_10 : f32 to vector<32x128xf32>
      %c0_11 = arith.constant 0 : index
      %c0_12 = arith.constant 0 : index
      %13 = vector.load %arg8[%c0_11, %c0_12] : memref<32x128xf32, #tpu.memory_space<vmem>>, vector<32x128xf32>
      tpu.vector_store %arg8[%c0_11, %c0_12], %12 {strides = array<i32>} : memref<32x128xf32, #tpu.memory_space<vmem>>, vector<32x128xf32>,
    } else {
    }
    %c0 = arith.constant 0 : index
    %c0_1 = arith.constant 0 : index
    %3 = vector.load %arg8[%c0, %c0_1] : memref<32x128xf32, #tpu.memory_space<vmem>>, vector<32x128xf32>
    %c0_2 = arith.constant 0 : index
    %c0_3 = arith.constant 0 : index
    %4 = vector.load %arg3[%c0_2, %c0_3] : memref<32x128xbf16, #tpu.memory_space<vmem>>, vector<32x128xbf16>
    %c0_4 = arith.constant 0 : index
    %c0_5 = arith.constant 0 : index
    %5 = vector.load %arg4[%c0_4, %c0_5] : memref<128x128xbf16, #tpu.memory_space<vmem>>, vector<128x128xbf16>
    %cst = arith.constant dense<0.000000e+00> : vector<32x128xf32>
    %6 = tpu.matmul %4, %5, %cst {dimension_numbers = #tpu.dot_dimension_numbers<[1], [0], [0], [1], [0, 0, 1, 1], [], []>} : vector<32x128xbf16>, vector<128x128xbf16>, vector<32x128xf32> -> vector<32x128xf32>
    %7 = arith.addf %3, %6 : vector<32x128xf32>
    %c0_6 = arith.constant 0 : index
    %c0_7 = arith.constant 0 : index
    %8 = vector.load %arg8[%c0_6, %c0_7] : memref<32x128xf32, #tpu.memory_space<vmem>>, vector<32x128xf32>
    tpu.vector_store %arg8[%c0_6, %c0_7], %7 {strides = array<i32>} : memref<32x128xf32, #tpu.memory_space<vmem>>, vector<32x128xf32>,
    %c0_i32_8 = arith.constant 0 : i32
    %9 = arith.cmpi eq, %arg2, %c0_i32_8 : i32
    %10 = arith.extui %9 : i1 to i32
    %c0_i32_9 = arith.constant 0 : i32
    %11 = arith.cmpi ne, %10, %c0_i32_9 : i32
    scf.if %11 {
      %c0_10 = arith.constant 0 : index
      %c0_11 = arith.constant 0 : index
      %12 = vector.load %arg8[%c0_10, %c0_11] : memref<32x128xf32, #tpu.memory_space<vmem>>, vector<32x128xf32>
      %c0_12 = arith.constant 0 : index
      %c0_13 = arith.constant 0 : index
      %13 = vector.load %arg5[%c0_12, %c0_13] : memref<1x128xf32, #tpu.memory_space<vmem>>, vector<1x128xf32>
      %14 = vector.broadcast %13 : vector<1x128xf32> to vector<32x128xf32>
      %15 = arith.addf %12, %14 : vector<32x128xf32>
      %c0_14 = arith.constant 0 : index
      %c0_15 = arith.constant 0 : index
      %16 = vector.load %arg6[%c0_14, %c0_15] : memref<32x128xbf16, #tpu.memory_space<vmem>>, vector<32x128xbf16>
      %17 = arith.extf %16 : vector<32x128xbf16> to vector<32x128xf32>
      %18 = arith.addf %15, %17 : vector<32x128xf32>
      %19 = arith.truncf %18 : vector<32x128xf32> to vector<32x128xbf16>
      %c0_16 = arith.constant 0 : index
      %c0_17 = arith.constant 0 : index
      %20 = vector.load %arg7[%c0_16, %c0_17] : memref<32x128xbf16, #tpu.memory_space<vmem>>, vector<32x128xbf16>
      tpu.vector_store %arg7[%c0_16, %c0_17], %19 {strides = array<i32>} : memref<32x128xbf16, #tpu.memory_space<vmem>>, vector<32x128xbf16>,
    } else {
    }
    return
  }
  func.func @transform_0(%arg0: i32, %arg1: i32, %arg2: i32) -> (i32, i32) {
    %c0_i32 = arith.constant 0 : i32
    return %arg0, %arg2 : i32, i32
  }
  func.func @transform_1(%arg0: i32, %arg1: i32, %arg2: i32) -> (i32, i32) {
    %c0_i32 = arith.constant 0 : i32
    return %arg2, %arg1 : i32, i32
  }
  func.func @transform_2(%arg0: i32, %arg1: i32, %arg2: i32) -> (i32, i32) {
    %c0_i32 = arith.constant 0 : i32
    %c0_i32_0 = arith.constant 0 : i32
    return %c0_i32, %arg1 : i32, i32
  }
  func.func @transform_3(%arg0: i32, %arg1: i32, %arg2: i32) -> (i32, i32) {
    %c0_i32 = arith.constant 0 : i32
    return %arg0, %arg1 : i32, i32
  }
  func.func @transform_4(%arg0: i32, %arg1: i32, %arg2: i32) -> (i32, i32) {
    %c0_i32 = arith.constant 0 : i32
    return %arg0, %arg1 : i32, i32
  }
}

module attributes {stable_mosaic.version = 11 : i64} {
  func.func @_dense_res_kernel(%arg0: i32, %arg1: i32, %arg2: i32, %arg3: memref<32x128xbf16, #tpu.memory_space<vmem>>, %arg4: memref<128x128xbf16, #tpu.memory_space<vmem>>, %arg5: memref<1x128xf32, #tpu.memory_space<vmem>>, %arg6: memref<32x128xbf16, #tpu.memory_space<vmem>>, %arg7: memref<32x128xbf16, #tpu.memory_space<vmem>>, %arg8: memref<32x128xf32, #tpu.memory_space<vmem>>) attributes {dimension_semantics = [#tpu.dimension_semantics<parallel>, #tpu.dimension_semantics<parallel>, #tpu.dimension_semantics<arbitrary>], iteration_bounds = array<i64: 1, 1, 1>, scalar_prefetch = 0 : i64, scratch_operands = 1 : i64, tpu.core_type = #tpu.core_type<tc>, window_params = [{transform_indices = @transform_0, window_bounds = array<i64: 32, 128>}, {transform_indices = @transform_1, window_bounds = array<i64: 128, 128>}, {transform_indices = @transform_2, window_bounds = array<i64: 1, 128>}, {transform_indices = @transform_3, window_bounds = array<i64: 32, 128>}, {transform_indices = @transform_4, window_bounds = array<i64: 32, 128>}]} {
    %c0_i32 = arith.constant 0 : i32
    %0 = arith.cmpi eq, %arg2, %c0_i32 : i32
    %1 = arith.extui %0 : i1 to i32
    %c0_i32_0 = arith.constant 0 : i32
    %2 = arith.cmpi ne, %1, %c0_i32_0 : i32
    scf.if %2 {
      %cst_10 = arith.constant 0.000000e+00 : f32
      %12 = vector.broadcast %cst_10 : f32 to vector<32x128xf32>
      %c0_11 = arith.constant 0 : index
      %c0_12 = arith.constant 0 : index
      %13 = vector.load %arg8[%c0_11, %c0_12] : memref<32x128xf32, #tpu.memory_space<vmem>>, vector<32x128xf32>
      tpu.vector_store %arg8[%c0_11, %c0_12], %12 {strides = array<i32>} : memref<32x128xf32, #tpu.memory_space<vmem>>, vector<32x128xf32>,
    } else {
    }
    %c0 = arith.constant 0 : index
    %c0_1 = arith.constant 0 : index
    %3 = vector.load %arg8[%c0, %c0_1] : memref<32x128xf32, #tpu.memory_space<vmem>>, vector<32x128xf32>
    %c0_2 = arith.constant 0 : index
    %c0_3 = arith.constant 0 : index
    %4 = vector.load %arg3[%c0_2, %c0_3] : memref<32x128xbf16, #tpu.memory_space<vmem>>, vector<32x128xbf16>
    %c0_4 = arith.constant 0 : index
    %c0_5 = arith.constant 0 : index
    %5 = vector.load %arg4[%c0_4, %c0_5] : memref<128x128xbf16, #tpu.memory_space<vmem>>, vector<128x128xbf16>
    %cst = arith.constant dense<0.000000e+00> : vector<32x128xf32>
    %6 = tpu.matmul %4, %5, %cst {dimension_numbers = #tpu.dot_dimension_numbers<[1], [0], [0], [1], [0, 0, 1, 1], [], []>} : vector<32x128xbf16>, vector<128x128xbf16>, vector<32x128xf32> -> vector<32x128xf32>
    %7 = arith.addf %3, %6 : vector<32x128xf32>
    %c0_6 = arith.constant 0 : index
    %c0_7 = arith.constant 0 : index
    %8 = vector.load %arg8[%c0_6, %c0_7] : memref<32x128xf32, #tpu.memory_space<vmem>>, vector<32x128xf32>
    tpu.vector_store %arg8[%c0_6, %c0_7], %7 {strides = array<i32>} : memref<32x128xf32, #tpu.memory_space<vmem>>, vector<32x128xf32>,
    %c0_i32_8 = arith.constant 0 : i32
    %9 = arith.cmpi eq, %arg2, %c0_i32_8 : i32
    %10 = arith.extui %9 : i1 to i32
    %c0_i32_9 = arith.constant 0 : i32
    %11 = arith.cmpi ne, %10, %c0_i32_9 : i32
    scf.if %11 {
      %c0_10 = arith.constant 0 : index
      %c0_11 = arith.constant 0 : index
      %12 = vector.load %arg8[%c0_10, %c0_11] : memref<32x128xf32, #tpu.memory_space<vmem>>, vector<32x128xf32>
      %c0_12 = arith.constant 0 : index
      %c0_13 = arith.constant 0 : index
      %13 = vector.load %arg5[%c0_12, %c0_13] : memref<1x128xf32, #tpu.memory_space<vmem>>, vector<1x128xf32>
      %14 = vector.broadcast %13 : vector<1x128xf32> to vector<32x128xf32>
      %15 = arith.addf %12, %14 : vector<32x128xf32>
      %c0_14 = arith.constant 0 : index
      %c0_15 = arith.constant 0 : index
      %16 = vector.load %arg6[%c0_14, %c0_15] : memref<32x128xbf16, #tpu.memory_space<vmem>>, vector<32x128xbf16>
      %17 = arith.extf %16 : vector<32x128xbf16> to vector<32x128xf32>
      %18 = arith.addf %15, %17 : vector<32x128xf32>
      %19 = arith.truncf %18 : vector<32x128xf32> to vector<32x128xbf16>
      %c0_16 = arith.constant 0 : index
      %c0_17 = arith.constant 0 : index
      %20 = vector.load %arg7[%c0_16, %c0_17] : memref<32x128xbf16, #tpu.memory_space<vmem>>, vector<32x128xbf16>
      tpu.vector_store %arg7[%c0_16, %c0_17], %19 {strides = array<i32>} : memref<32x128xbf16, #tpu.memory_space<vmem>>, vector<32x128xbf16>,
    } else {
    }
    return
  }
  func.func @transform_0(%arg0: i32, %arg1: i32, %arg2: i32) -> (i32, i32) {
    %c0_i32 = arith.constant 0 : i32
    return %arg0, %arg2 : i32, i32
  }
  func.func @transform_1(%arg0: i32, %arg1: i32, %arg2: i32) -> (i32, i32) {
    %c0_i32 = arith.constant 0 : i32
    return %arg2, %arg1 : i32, i32
  }
  func.func @transform_2(%arg0: i32, %arg1: i32, %arg2: i32) -> (i32, i32) {
    %c0_i32 = arith.constant 0 : i32
    %c0_i32_0 = arith.constant 0 : i32
    return %c0_i32, %arg1 : i32, i32
  }
  func.func @transform_3(%arg0: i32, %arg1: i32, %arg2: i32) -> (i32, i32) {
    %c0_i32 = arith.constant 0 : i32
    return %arg0, %arg1 : i32, i32
  }
  func.func @transform_4(%arg0: i32, %arg1: i32, %arg2: i32) -> (i32, i32) {
    %c0_i32 = arith.constant 0 : i32
    return %arg0, %arg1 : i32, i32
  }
}

module attributes {stable_mosaic.version = 11 : i64} {
  func.func @_dense_res_kernel(%arg0: i32, %arg1: i32, %arg2: i32, %arg3: memref<32x256xbf16, #tpu.memory_space<vmem>>, %arg4: memref<256x128xbf16, #tpu.memory_space<vmem>>, %arg5: memref<1x128xf32, #tpu.memory_space<vmem>>, %arg6: memref<32x128xbf16, #tpu.memory_space<vmem>>, %arg7: memref<32x128xbf16, #tpu.memory_space<vmem>>, %arg8: memref<32x128xf32, #tpu.memory_space<vmem>>) attributes {dimension_semantics = [#tpu.dimension_semantics<parallel>, #tpu.dimension_semantics<parallel>, #tpu.dimension_semantics<arbitrary>], iteration_bounds = array<i64: 1, 1, 1>, scalar_prefetch = 0 : i64, scratch_operands = 1 : i64, tpu.core_type = #tpu.core_type<tc>, window_params = [{transform_indices = @transform_0, window_bounds = array<i64: 32, 256>}, {transform_indices = @transform_1, window_bounds = array<i64: 256, 128>}, {transform_indices = @transform_2, window_bounds = array<i64: 1, 128>}, {transform_indices = @transform_3, window_bounds = array<i64: 32, 128>}, {transform_indices = @transform_4, window_bounds = array<i64: 32, 128>}]} {
    %c0_i32 = arith.constant 0 : i32
    %0 = arith.cmpi eq, %arg2, %c0_i32 : i32
    %1 = arith.extui %0 : i1 to i32
    %c0_i32_0 = arith.constant 0 : i32
    %2 = arith.cmpi ne, %1, %c0_i32_0 : i32
    scf.if %2 {
      %cst_10 = arith.constant 0.000000e+00 : f32
      %12 = vector.broadcast %cst_10 : f32 to vector<32x128xf32>
      %c0_11 = arith.constant 0 : index
      %c0_12 = arith.constant 0 : index
      %13 = vector.load %arg8[%c0_11, %c0_12] : memref<32x128xf32, #tpu.memory_space<vmem>>, vector<32x128xf32>
      tpu.vector_store %arg8[%c0_11, %c0_12], %12 {strides = array<i32>} : memref<32x128xf32, #tpu.memory_space<vmem>>, vector<32x128xf32>,
    } else {
    }
    %c0 = arith.constant 0 : index
    %c0_1 = arith.constant 0 : index
    %3 = vector.load %arg8[%c0, %c0_1] : memref<32x128xf32, #tpu.memory_space<vmem>>, vector<32x128xf32>
    %c0_2 = arith.constant 0 : index
    %c0_3 = arith.constant 0 : index
    %4 = vector.load %arg3[%c0_2, %c0_3] : memref<32x256xbf16, #tpu.memory_space<vmem>>, vector<32x256xbf16>
    %c0_4 = arith.constant 0 : index
    %c0_5 = arith.constant 0 : index
    %5 = vector.load %arg4[%c0_4, %c0_5] : memref<256x128xbf16, #tpu.memory_space<vmem>>, vector<256x128xbf16>
    %cst = arith.constant dense<0.000000e+00> : vector<32x128xf32>
    %6 = tpu.matmul %4, %5, %cst {dimension_numbers = #tpu.dot_dimension_numbers<[1], [0], [0], [1], [0, 0, 1, 1], [], []>} : vector<32x256xbf16>, vector<256x128xbf16>, vector<32x128xf32> -> vector<32x128xf32>
    %7 = arith.addf %3, %6 : vector<32x128xf32>
    %c0_6 = arith.constant 0 : index
    %c0_7 = arith.constant 0 : index
    %8 = vector.load %arg8[%c0_6, %c0_7] : memref<32x128xf32, #tpu.memory_space<vmem>>, vector<32x128xf32>
    tpu.vector_store %arg8[%c0_6, %c0_7], %7 {strides = array<i32>} : memref<32x128xf32, #tpu.memory_space<vmem>>, vector<32x128xf32>,
    %c0_i32_8 = arith.constant 0 : i32
    %9 = arith.cmpi eq, %arg2, %c0_i32_8 : i32
    %10 = arith.extui %9 : i1 to i32
    %c0_i32_9 = arith.constant 0 : i32
    %11 = arith.cmpi ne, %10, %c0_i32_9 : i32
    scf.if %11 {
      %c0_10 = arith.constant 0 : index
      %c0_11 = arith.constant 0 : index
      %12 = vector.load %arg8[%c0_10, %c0_11] : memref<32x128xf32, #tpu.memory_space<vmem>>, vector<32x128xf32>
      %c0_12 = arith.constant 0 : index
      %c0_13 = arith.constant 0 : index
      %13 = vector.load %arg5[%c0_12, %c0_13] : memref<1x128xf32, #tpu.memory_space<vmem>>, vector<1x128xf32>
      %14 = vector.broadcast %13 : vector<1x128xf32> to vector<32x128xf32>
      %15 = arith.addf %12, %14 : vector<32x128xf32>
      %c0_14 = arith.constant 0 : index
      %c0_15 = arith.constant 0 : index
      %16 = vector.load %arg6[%c0_14, %c0_15] : memref<32x128xbf16, #tpu.memory_space<vmem>>, vector<32x128xbf16>
      %17 = arith.extf %16 : vector<32x128xbf16> to vector<32x128xf32>
      %18 = arith.addf %15, %17 : vector<32x128xf32>
      %19 = arith.truncf %18 : vector<32x128xf32> to vector<32x128xbf16>
      %c0_16 = arith.constant 0 : index
      %c0_17 = arith.constant 0 : index
      %20 = vector.load %arg7[%c0_16, %c0_17] : memref<32x128xbf16, #tpu.memory_space<vmem>>, vector<32x128xbf16>
      tpu.vector_store %arg7[%c0_16, %c0_17], %19 {strides = array<i32>} : memref<32x128xbf16, #tpu.memory_space<vmem>>, vector<32x128xbf16>,
    } else {
    }
    return
  }
  func.func @transform_0(%arg0: i32, %arg1: i32, %arg2: i32) -> (i32, i32) {
    %c0_i32 = arith.constant 0 : i32
    return %arg0, %arg2 : i32, i32
  }
  func.func @transform_1(%arg0: i32, %arg1: i32, %arg2: i32) -> (i32, i32) {
    %c0_i32 = arith.constant 0 : i32
    return %arg2, %arg1 : i32, i32
  }
  func.func @transform_2(%arg0: i32, %arg1: i32, %arg2: i32) -> (i32, i32) {
    %c0_i32 = arith.constant 0 : i32
    %c0_i32_0 = arith.constant 0 : i32
    return %c0_i32, %arg1 : i32, i32
  }
  func.func @transform_3(%arg0: i32, %arg1: i32, %arg2: i32) -> (i32, i32) {
    %c0_i32 = arith.constant 0 : i32
    return %arg0, %arg1 : i32, i32
  }
  func.func @transform_4(%arg0: i32, %arg1: i32, %arg2: i32) -> (i32, i32) {
    %c0_i32 = arith.constant 0 : i32
    return %arg0, %arg1 : i32, i32
  }
}

module attributes {stable_mosaic.version = 11 : i64} {
  func.func @_dense_kernel(%arg0: i32, %arg1: i32, %arg2: i32, %arg3: memref<32x128xbf16, #tpu.memory_space<vmem>>, %arg4: memref<128x256xbf16, #tpu.memory_space<vmem>>, %arg5: memref<1x256xf32, #tpu.memory_space<vmem>>, %arg6: memref<32x256xbf16, #tpu.memory_space<vmem>>, %arg7: memref<32x256xf32, #tpu.memory_space<vmem>>) attributes {dimension_semantics = [#tpu.dimension_semantics<parallel>, #tpu.dimension_semantics<parallel>, #tpu.dimension_semantics<arbitrary>], iteration_bounds = array<i64: 1, 1, 1>, scalar_prefetch = 0 : i64, scratch_operands = 1 : i64, tpu.core_type = #tpu.core_type<tc>, window_params = [{transform_indices = @transform_0, window_bounds = array<i64: 32, 128>}, {transform_indices = @transform_1, window_bounds = array<i64: 128, 256>}, {transform_indices = @transform_2, window_bounds = array<i64: 1, 256>}, {transform_indices = @transform_3, window_bounds = array<i64: 32, 256>}]} {
    %c0_i32 = arith.constant 0 : i32
    %0 = arith.cmpi eq, %arg2, %c0_i32 : i32
    %1 = arith.extui %0 : i1 to i32
    %c0_i32_0 = arith.constant 0 : i32
    %2 = arith.cmpi ne, %1, %c0_i32_0 : i32
    scf.if %2 {
      %cst_10 = arith.constant 0.000000e+00 : f32
      %12 = vector.broadcast %cst_10 : f32 to vector<32x256xf32>
      %c0_11 = arith.constant 0 : index
      %c0_12 = arith.constant 0 : index
      %13 = vector.load %arg7[%c0_11, %c0_12] : memref<32x256xf32, #tpu.memory_space<vmem>>, vector<32x256xf32>
      tpu.vector_store %arg7[%c0_11, %c0_12], %12 {strides = array<i32>} : memref<32x256xf32, #tpu.memory_space<vmem>>, vector<32x256xf32>,
    } else {
    }
    %c0 = arith.constant 0 : index
    %c0_1 = arith.constant 0 : index
    %3 = vector.load %arg7[%c0, %c0_1] : memref<32x256xf32, #tpu.memory_space<vmem>>, vector<32x256xf32>
    %c0_2 = arith.constant 0 : index
    %c0_3 = arith.constant 0 : index
    %4 = vector.load %arg3[%c0_2, %c0_3] : memref<32x128xbf16, #tpu.memory_space<vmem>>, vector<32x128xbf16>
    %c0_4 = arith.constant 0 : index
    %c0_5 = arith.constant 0 : index
    %5 = vector.load %arg4[%c0_4, %c0_5] : memref<128x256xbf16, #tpu.memory_space<vmem>>, vector<128x256xbf16>
    %cst = arith.constant dense<0.000000e+00> : vector<32x256xf32>
    %6 = tpu.matmul %4, %5, %cst {dimension_numbers = #tpu.dot_dimension_numbers<[1], [0], [0], [1], [0, 0, 1, 1], [], []>} : vector<32x128xbf16>, vector<128x256xbf16>, vector<32x256xf32> -> vector<32x256xf32>
    %7 = arith.addf %3, %6 : vector<32x256xf32>
    %c0_6 = arith.constant 0 : index
    %c0_7 = arith.constant 0 : index
    %8 = vector.load %arg7[%c0_6, %c0_7] : memref<32x256xf32, #tpu.memory_space<vmem>>, vector<32x256xf32>
    tpu.vector_store %arg7[%c0_6, %c0_7], %7 {strides = array<i32>} : memref<32x256xf32, #tpu.memory_space<vmem>>, vector<32x256xf32>,
    %c0_i32_8 = arith.constant 0 : i32
    %9 = arith.cmpi eq, %arg2, %c0_i32_8 : i32
    %10 = arith.extui %9 : i1 to i32
    %c0_i32_9 = arith.constant 0 : i32
    %11 = arith.cmpi ne, %10, %c0_i32_9 : i32
    scf.if %11 {
      %c0_10 = arith.constant 0 : index
      %c0_11 = arith.constant 0 : index
      %12 = vector.load %arg7[%c0_10, %c0_11] : memref<32x256xf32, #tpu.memory_space<vmem>>, vector<32x256xf32>
      %c0_12 = arith.constant 0 : index
      %c0_13 = arith.constant 0 : index
      %13 = vector.load %arg5[%c0_12, %c0_13] : memref<1x256xf32, #tpu.memory_space<vmem>>, vector<1x256xf32>
      %14 = vector.broadcast %13 : vector<1x256xf32> to vector<32x256xf32>
      %15 = arith.addf %12, %14 : vector<32x256xf32>
      %16 = arith.mulf %15, %15 : vector<32x256xf32>
      %17 = arith.mulf %15, %16 : vector<32x256xf32>
      %cst_14 = arith.constant 4.471500e-02 : f32
      %18 = vector.broadcast %cst_14 : f32 to vector<32x256xf32>
      %19 = arith.mulf %18, %17 : vector<32x256xf32>
      %20 = arith.addf %15, %19 : vector<32x256xf32>
      %cst_15 = arith.constant 0.797884583 : f32
      %21 = vector.broadcast %cst_15 : f32 to vector<32x256xf32>
      %22 = arith.mulf %21, %20 : vector<32x256xf32>
      %23 = math.tanh %22 : vector<32x256xf32>
      %cst_16 = arith.constant 1.000000e+00 : f32
      %24 = vector.broadcast %cst_16 : f32 to vector<32x256xf32>
      %25 = arith.addf %24, %23 : vector<32x256xf32>
      %cst_17 = arith.constant 5.000000e-01 : f32
      %26 = vector.broadcast %cst_17 : f32 to vector<32x256xf32>
      %27 = arith.mulf %26, %25 : vector<32x256xf32>
      %28 = arith.mulf %15, %27 : vector<32x256xf32>
      %29 = arith.truncf %28 : vector<32x256xf32> to vector<32x256xbf16>
      %c0_18 = arith.constant 0 : index
      %c0_19 = arith.constant 0 : index
      %30 = vector.load %arg6[%c0_18, %c0_19] : memref<32x256xbf16, #tpu.memory_space<vmem>>, vector<32x256xbf16>
      tpu.vector_store %arg6[%c0_18, %c0_19], %29 {strides = array<i32>} : memref<32x256xbf16, #tpu.memory_space<vmem>>, vector<32x256xbf16>,
    } else {
    }
    return
  }
  func.func @transform_0(%arg0: i32, %arg1: i32, %arg2: i32) -> (i32, i32) {
    %c0_i32 = arith.constant 0 : i32
    return %arg0, %arg2 : i32, i32
  }
  func.func @transform_1(%arg0: i32, %arg1: i32, %arg2: i32) -> (i32, i32) {
    %c0_i32 = arith.constant 0 : i32
    return %arg2, %arg1 : i32, i32
  }
  func.func @transform_2(%arg0: i32, %arg1: i32, %arg2: i32) -> (i32, i32) {
    %c0_i32 = arith.constant 0 : i32
    %c0_i32_0 = arith.constant 0 : i32
    return %c0_i32, %arg1 : i32, i32
  }
  func.func @transform_3(%arg0: i32, %arg1: i32, %arg2: i32) -> (i32, i32) {
    %c0_i32 = arith.constant 0 : i32
    return %arg0, %arg1 : i32, i32
  }
}

module attributes {stable_mosaic.version = 11 : i64} {
  func.func @_dense_res_kernel(%arg0: i32, %arg1: i32, %arg2: i32, %arg3: memref<32x256xbf16, #tpu.memory_space<vmem>>, %arg4: memref<256x128xbf16, #tpu.memory_space<vmem>>, %arg5: memref<1x128xf32, #tpu.memory_space<vmem>>, %arg6: memref<32x128xbf16, #tpu.memory_space<vmem>>, %arg7: memref<32x128xbf16, #tpu.memory_space<vmem>>, %arg8: memref<32x128xf32, #tpu.memory_space<vmem>>) attributes {dimension_semantics = [#tpu.dimension_semantics<parallel>, #tpu.dimension_semantics<parallel>, #tpu.dimension_semantics<arbitrary>], iteration_bounds = array<i64: 1, 1, 1>, scalar_prefetch = 0 : i64, scratch_operands = 1 : i64, tpu.core_type = #tpu.core_type<tc>, window_params = [{transform_indices = @transform_0, window_bounds = array<i64: 32, 256>}, {transform_indices = @transform_1, window_bounds = array<i64: 256, 128>}, {transform_indices = @transform_2, window_bounds = array<i64: 1, 128>}, {transform_indices = @transform_3, window_bounds = array<i64: 32, 128>}, {transform_indices = @transform_4, window_bounds = array<i64: 32, 128>}]} {
    %c0_i32 = arith.constant 0 : i32
    %0 = arith.cmpi eq, %arg2, %c0_i32 : i32
    %1 = arith.extui %0 : i1 to i32
    %c0_i32_0 = arith.constant 0 : i32
    %2 = arith.cmpi ne, %1, %c0_i32_0 : i32
    scf.if %2 {
      %cst_10 = arith.constant 0.000000e+00 : f32
      %12 = vector.broadcast %cst_10 : f32 to vector<32x128xf32>
      %c0_11 = arith.constant 0 : index
      %c0_12 = arith.constant 0 : index
      %13 = vector.load %arg8[%c0_11, %c0_12] : memref<32x128xf32, #tpu.memory_space<vmem>>, vector<32x128xf32>
      tpu.vector_store %arg8[%c0_11, %c0_12], %12 {strides = array<i32>} : memref<32x128xf32, #tpu.memory_space<vmem>>, vector<32x128xf32>,
    } else {
    }
    %c0 = arith.constant 0 : index
    %c0_1 = arith.constant 0 : index
    %3 = vector.load %arg8[%c0, %c0_1] : memref<32x128xf32, #tpu.memory_space<vmem>>, vector<32x128xf32>
    %c0_2 = arith.constant 0 : index
    %c0_3 = arith.constant 0 : index
    %4 = vector.load %arg3[%c0_2, %c0_3] : memref<32x256xbf16, #tpu.memory_space<vmem>>, vector<32x256xbf16>
    %c0_4 = arith.constant 0 : index
    %c0_5 = arith.constant 0 : index
    %5 = vector.load %arg4[%c0_4, %c0_5] : memref<256x128xbf16, #tpu.memory_space<vmem>>, vector<256x128xbf16>
    %cst = arith.constant dense<0.000000e+00> : vector<32x128xf32>
    %6 = tpu.matmul %4, %5, %cst {dimension_numbers = #tpu.dot_dimension_numbers<[1], [0], [0], [1], [0, 0, 1, 1], [], []>} : vector<32x256xbf16>, vector<256x128xbf16>, vector<32x128xf32> -> vector<32x128xf32>
    %7 = arith.addf %3, %6 : vector<32x128xf32>
    %c0_6 = arith.constant 0 : index
    %c0_7 = arith.constant 0 : index
    %8 = vector.load %arg8[%c0_6, %c0_7] : memref<32x128xf32, #tpu.memory_space<vmem>>, vector<32x128xf32>
    tpu.vector_store %arg8[%c0_6, %c0_7], %7 {strides = array<i32>} : memref<32x128xf32, #tpu.memory_space<vmem>>, vector<32x128xf32>,
    %c0_i32_8 = arith.constant 0 : i32
    %9 = arith.cmpi eq, %arg2, %c0_i32_8 : i32
    %10 = arith.extui %9 : i1 to i32
    %c0_i32_9 = arith.constant 0 : i32
    %11 = arith.cmpi ne, %10, %c0_i32_9 : i32
    scf.if %11 {
      %c0_10 = arith.constant 0 : index
      %c0_11 = arith.constant 0 : index
      %12 = vector.load %arg8[%c0_10, %c0_11] : memref<32x128xf32, #tpu.memory_space<vmem>>, vector<32x128xf32>
      %c0_12 = arith.constant 0 : index
      %c0_13 = arith.constant 0 : index
      %13 = vector.load %arg5[%c0_12, %c0_13] : memref<1x128xf32, #tpu.memory_space<vmem>>, vector<1x128xf32>
      %14 = vector.broadcast %13 : vector<1x128xf32> to vector<32x128xf32>
      %15 = arith.addf %12, %14 : vector<32x128xf32>
      %c0_14 = arith.constant 0 : index
      %c0_15 = arith.constant 0 : index
      %16 = vector.load %arg6[%c0_14, %c0_15] : memref<32x128xbf16, #tpu.memory_space<vmem>>, vector<32x128xbf16>
      %17 = arith.extf %16 : vector<32x128xbf16> to vector<32x128xf32>
      %18 = arith.addf %15, %17 : vector<32x128xf32>
      %19 = arith.truncf %18 : vector<32x128xf32> to vector<32x128xbf16>
      %c0_16 = arith.constant 0 : index
      %c0_17 = arith.constant 0 : index
      %20 = vector.load %arg7[%c0_16, %c0_17] : memref<32x128xbf16, #tpu.memory_space<vmem>>, vector<32x128xbf16>
      tpu.vector_store %arg7[%c0_16, %c0_17], %19 {strides = array<i32>} : memref<32x128xbf16, #tpu.memory_space<vmem>>, vector<32x128xbf16>,
    } else {
    }
    return
  }
  func.func @transform_0(%arg0: i32, %arg1: i32, %arg2: i32) -> (i32, i32) {
    %c0_i32 = arith.constant 0 : i32
    return %arg0, %arg2 : i32, i32
  }
  func.func @transform_1(%arg0: i32, %arg1: i32, %arg2: i32) -> (i32, i32) {
    %c0_i32 = arith.constant 0 : i32
    return %arg2, %arg1 : i32, i32
  }
  func.func @transform_2(%arg0: i32, %arg1: i32, %arg2: i32) -> (i32, i32) {
    %c0_i32 = arith.constant 0 : i32
    %c0_i32_0 = arith.constant 0 : i32
    return %c0_i32, %arg1 : i32, i32
  }
  func.func @transform_3(%arg0: i32, %arg1: i32, %arg2: i32) -> (i32, i32) {
    %c0_i32 = arith.constant 0 : i32
    return %arg0, %arg1 : i32, i32
  }
  func.func @transform_4(%arg0: i32, %arg1: i32, %arg2: i32) -> (i32, i32) {
    %c0_i32 = arith.constant 0 : i32
    return %arg0, %arg1 : i32, i32
  }
}

module attributes {stable_mosaic.version = 11 : i64} {
  func.func @_layernorm_kernel(%arg0: i32, %arg1: memref<32x128xbf16, #tpu.memory_space<vmem>>, %arg2: memref<1x128xf32, #tpu.memory_space<vmem>>, %arg3: memref<1x128xf32, #tpu.memory_space<vmem>>, %arg4: memref<32x128xf32, #tpu.memory_space<vmem>>) attributes {dimension_semantics = [#tpu.dimension_semantics<parallel>], iteration_bounds = array<i64: 1>, scalar_prefetch = 0 : i64, scratch_operands = 0 : i64, tpu.core_type = #tpu.core_type<tc>, window_params = [{transform_indices = @transform_0, window_bounds = array<i64: 32, 128>}, {pipeline_mode = #tpu.pipeline_mode<synchronous>, transform_indices = @transform_1, window_bounds = array<i64: 1, 128>}, {pipeline_mode = #tpu.pipeline_mode<synchronous>, transform_indices = @transform_2, window_bounds = array<i64: 1, 128>}, {transform_indices = @transform_3, window_bounds = array<i64: 32, 128>}]} {
    %c0 = arith.constant 0 : index
    %c0_0 = arith.constant 0 : index
    %0 = vector.load %arg1[%c0, %c0_0] : memref<32x128xbf16, #tpu.memory_space<vmem>>, vector<32x128xbf16>
    %1 = arith.extf %0 : vector<32x128xbf16> to vector<32x128xf32>
    %cst = arith.constant dense<0.000000e+00> : vector<32xf32>
    %2 = vector.multi_reduction <add>, %1, %cst [1] : vector<32x128xf32> to vector<32xf32>
    %3 = vector.shape_cast %2 : vector<32xf32> to vector<32x1xf32>
    %cst_1 = arith.constant 1.280000e+02 : f32
    %4 = vector.broadcast %cst_1 : f32 to vector<32x1xf32>
    %5 = arith.divf %3, %4 : vector<32x1xf32>
    %6 = vector.broadcast %5 : vector<32x1xf32> to vector<32x128xf32>
    %7 = arith.subf %1, %6 : vector<32x128xf32>
    %8 = arith.mulf %7, %7 : vector<32x128xf32>
    %cst_2 = arith.constant dense<0.000000e+00> : vector<32xf32>
    %9 = vector.multi_reduction <add>, %8, %cst_2 [1] : vector<32x128xf32> to vector<32xf32>
    %10 = vector.shape_cast %9 : vector<32xf32> to vector<32x1xf32>
    %cst_3 = arith.constant 1.280000e+02 : f32
    %11 = vector.broadcast %cst_3 : f32 to vector<32x1xf32>
    %12 = arith.divf %10, %11 : vector<32x1xf32>
    %13 = vector.broadcast %5 : vector<32x1xf32> to vector<32x128xf32>
    %14 = arith.subf %1, %13 : vector<32x128xf32>
    %cst_4 = arith.constant 9.99999974E-6 : f32
    %15 = vector.broadcast %cst_4 : f32 to vector<32x1xf32>
    %16 = arith.addf %12, %15 : vector<32x1xf32>
    %17 = math.rsqrt %16 : vector<32x1xf32>
    %18 = vector.broadcast %17 : vector<32x1xf32> to vector<32x128xf32>
    %19 = arith.mulf %14, %18 : vector<32x128xf32>
    %c0_5 = arith.constant 0 : index
    %c0_6 = arith.constant 0 : index
    %20 = vector.load %arg2[%c0_5, %c0_6] : memref<1x128xf32, #tpu.memory_space<vmem>>, vector<1x128xf32>
    %21 = vector.broadcast %20 : vector<1x128xf32> to vector<32x128xf32>
    %22 = arith.mulf %19, %21 : vector<32x128xf32>
    %c0_7 = arith.constant 0 : index
    %c0_8 = arith.constant 0 : index
    %23 = vector.load %arg3[%c0_7, %c0_8] : memref<1x128xf32, #tpu.memory_space<vmem>>, vector<1x128xf32>
    %24 = vector.broadcast %23 : vector<1x128xf32> to vector<32x128xf32>
    %25 = arith.addf %22, %24 : vector<32x128xf32>
    %c0_9 = arith.constant 0 : index
    %c0_10 = arith.constant 0 : index
    %26 = vector.load %arg4[%c0_9, %c0_10] : memref<32x128xf32, #tpu.memory_space<vmem>>, vector<32x128xf32>
    tpu.vector_store %arg4[%c0_9, %c0_10], %25 {strides = array<i32>} : memref<32x128xf32, #tpu.memory_space<vmem>>, vector<32x128xf32>,
    return
  }
  func.func @transform_0(%arg0: i32) -> (i32, i32) {
    %c0_i32 = arith.constant 0 : i32
    %c0_i32_0 = arith.constant 0 : i32
    return %arg0, %c0_i32 : i32, i32
  }
  func.func @transform_1(%arg0: i32) -> (i32, i32) {
    %c0_i32 = arith.constant 0 : i32
    %c0_i32_0 = arith.constant 0 : i32
    %c0_i32_1 = arith.constant 0 : i32
    return %c0_i32, %c0_i32_0 : i32, i32
  }
  func.func @transform_2(%arg0: i32) -> (i32, i32) {
    %c0_i32 = arith.constant 0 : i32
    %c0_i32_0 = arith.constant 0 : i32
    %c0_i32_1 = arith.constant 0 : i32
    return %c0_i32, %c0_i32_0 : i32, i32
  }
  func.func @transform_3(%arg0: i32) -> (i32, i32) {
    %c0_i32 = arith.constant 0 : i32
    %c0_i32_0 = arith.constant 0 : i32
    return %arg0, %c0_i32 : i32, i32
  }
}

module attributes {stable_mosaic.version = 11 : i64} {
  func.func @_dense_kernel(%arg0: i32, %arg1: i32, %arg2: i32, %arg3: memref<32x128xbf16, #tpu.memory_space<vmem>>, %arg4: memref<128x128xbf16, #tpu.memory_space<vmem>>, %arg5: memref<1x128xf32, #tpu.memory_space<vmem>>, %arg6: memref<32x128xbf16, #tpu.memory_space<vmem>>, %arg7: memref<32x128xf32, #tpu.memory_space<vmem>>) attributes {dimension_semantics = [#tpu.dimension_semantics<parallel>, #tpu.dimension_semantics<parallel>, #tpu.dimension_semantics<arbitrary>], iteration_bounds = array<i64: 1, 1, 1>, scalar_prefetch = 0 : i64, scratch_operands = 1 : i64, tpu.core_type = #tpu.core_type<tc>, window_params = [{transform_indices = @transform_0, window_bounds = array<i64: 32, 128>}, {transform_indices = @transform_1, window_bounds = array<i64: 128, 128>}, {transform_indices = @transform_2, window_bounds = array<i64: 1, 128>}, {transform_indices = @transform_3, window_bounds = array<i64: 32, 128>}]} {
    %c0_i32 = arith.constant 0 : i32
    %0 = arith.cmpi eq, %arg2, %c0_i32 : i32
    %1 = arith.extui %0 : i1 to i32
    %c0_i32_0 = arith.constant 0 : i32
    %2 = arith.cmpi ne, %1, %c0_i32_0 : i32
    scf.if %2 {
      %cst_10 = arith.constant 0.000000e+00 : f32
      %12 = vector.broadcast %cst_10 : f32 to vector<32x128xf32>
      %c0_11 = arith.constant 0 : index
      %c0_12 = arith.constant 0 : index
      %13 = vector.load %arg7[%c0_11, %c0_12] : memref<32x128xf32, #tpu.memory_space<vmem>>, vector<32x128xf32>
      tpu.vector_store %arg7[%c0_11, %c0_12], %12 {strides = array<i32>} : memref<32x128xf32, #tpu.memory_space<vmem>>, vector<32x128xf32>,
    } else {
    }
    %c0 = arith.constant 0 : index
    %c0_1 = arith.constant 0 : index
    %3 = vector.load %arg7[%c0, %c0_1] : memref<32x128xf32, #tpu.memory_space<vmem>>, vector<32x128xf32>
    %c0_2 = arith.constant 0 : index
    %c0_3 = arith.constant 0 : index
    %4 = vector.load %arg3[%c0_2, %c0_3] : memref<32x128xbf16, #tpu.memory_space<vmem>>, vector<32x128xbf16>
    %c0_4 = arith.constant 0 : index
    %c0_5 = arith.constant 0 : index
    %5 = vector.load %arg4[%c0_4, %c0_5] : memref<128x128xbf16, #tpu.memory_space<vmem>>, vector<128x128xbf16>
    %cst = arith.constant dense<0.000000e+00> : vector<32x128xf32>
    %6 = tpu.matmul %4, %5, %cst {dimension_numbers = #tpu.dot_dimension_numbers<[1], [0], [0], [1], [0, 0, 1, 1], [], []>} : vector<32x128xbf16>, vector<128x128xbf16>, vector<32x128xf32> -> vector<32x128xf32>
    %7 = arith.addf %3, %6 : vector<32x128xf32>
    %c0_6 = arith.constant 0 : index
    %c0_7 = arith.constant 0 : index
    %8 = vector.load %arg7[%c0_6, %c0_7] : memref<32x128xf32, #tpu.memory_space<vmem>>, vector<32x128xf32>
    tpu.vector_store %arg7[%c0_6, %c0_7], %7 {strides = array<i32>} : memref<32x128xf32, #tpu.memory_space<vmem>>, vector<32x128xf32>,
    %c0_i32_8 = arith.constant 0 : i32
    %9 = arith.cmpi eq, %arg2, %c0_i32_8 : i32
    %10 = arith.extui %9 : i1 to i32
    %c0_i32_9 = arith.constant 0 : i32
    %11 = arith.cmpi ne, %10, %c0_i32_9 : i32
    scf.if %11 {
      %c0_10 = arith.constant 0 : index
      %c0_11 = arith.constant 0 : index
      %12 = vector.load %arg7[%c0_10, %c0_11] : memref<32x128xf32, #tpu.memory_space<vmem>>, vector<32x128xf32>
      %c0_12 = arith.constant 0 : index
      %c0_13 = arith.constant 0 : index
      %13 = vector.load %arg5[%c0_12, %c0_13] : memref<1x128xf32, #tpu.memory_space<vmem>>, vector<1x128xf32>
      %14 = vector.broadcast %13 : vector<1x128xf32> to vector<32x128xf32>
      %15 = arith.addf %12, %14 : vector<32x128xf32>
      %16 = arith.mulf %15, %15 : vector<32x128xf32>
      %17 = arith.mulf %15, %16 : vector<32x128xf32>
      %cst_14 = arith.constant 4.471500e-02 : f32
      %18 = vector.broadcast %cst_14 : f32 to vector<32x128xf32>
      %19 = arith.mulf %18, %17 : vector<32x128xf32>
      %20 = arith.addf %15, %19 : vector<32x128xf32>
      %cst_15 = arith.constant 0.797884583 : f32
      %21 = vector.broadcast %cst_15 : f32 to vector<32x128xf32>
      %22 = arith.mulf %21, %20 : vector<32x128xf32>
      %23 = math.tanh %22 : vector<32x128xf32>
      %cst_16 = arith.constant 1.000000e+00 : f32
      %24 = vector.broadcast %cst_16 : f32 to vector<32x128xf32>
      %25 = arith.addf %24, %23 : vector<32x128xf32>
      %cst_17 = arith.constant 5.000000e-01 : f32
      %26 = vector.broadcast %cst_17 : f32 to vector<32x128xf32>
      %27 = arith.mulf %26, %25 : vector<32x128xf32>
      %28 = arith.mulf %15, %27 : vector<32x128xf32>
      %29 = arith.truncf %28 : vector<32x128xf32> to vector<32x128xbf16>
      %c0_18 = arith.constant 0 : index
      %c0_19 = arith.constant 0 : index
      %30 = vector.load %arg6[%c0_18, %c0_19] : memref<32x128xbf16, #tpu.memory_space<vmem>>, vector<32x128xbf16>
      tpu.vector_store %arg6[%c0_18, %c0_19], %29 {strides = array<i32>} : memref<32x128xbf16, #tpu.memory_space<vmem>>, vector<32x128xbf16>,
    } else {
    }
    return
  }
  func.func @transform_0(%arg0: i32, %arg1: i32, %arg2: i32) -> (i32, i32) {
    %c0_i32 = arith.constant 0 : i32
    return %arg0, %arg2 : i32, i32
  }
  func.func @transform_1(%arg0: i32, %arg1: i32, %arg2: i32) -> (i32, i32) {
    %c0_i32 = arith.constant 0 : i32
    return %arg2, %arg1 : i32, i32
  }
  func.func @transform_2(%arg0: i32, %arg1: i32, %arg2: i32) -> (i32, i32) {
    %c0_i32 = arith.constant 0 : i32
    %c0_i32_0 = arith.constant 0 : i32
    return %c0_i32, %arg1 : i32, i32
  }
  func.func @transform_3(%arg0: i32, %arg1: i32, %arg2: i32) -> (i32, i32) {
    %c0_i32 = arith.constant 0 : i32
    return %arg0, %arg1 : i32, i32
  }
}

module attributes {stable_mosaic.version = 11 : i64} {
  func.func @_dense_kernel(%arg0: i32, %arg1: i32, %arg2: i32, %arg3: memref<32x128xbf16, #tpu.memory_space<vmem>>, %arg4: memref<128x128xbf16, #tpu.memory_space<vmem>>, %arg5: memref<1x128xf32, #tpu.memory_space<vmem>>, %arg6: memref<32x128xf32, #tpu.memory_space<vmem>>, %arg7: memref<32x128xf32, #tpu.memory_space<vmem>>) attributes {dimension_semantics = [#tpu.dimension_semantics<parallel>, #tpu.dimension_semantics<parallel>, #tpu.dimension_semantics<arbitrary>], iteration_bounds = array<i64: 1, 1, 1>, scalar_prefetch = 0 : i64, scratch_operands = 1 : i64, tpu.core_type = #tpu.core_type<tc>, window_params = [{transform_indices = @transform_0, window_bounds = array<i64: 32, 128>}, {transform_indices = @transform_1, window_bounds = array<i64: 128, 128>}, {transform_indices = @transform_2, window_bounds = array<i64: 1, 128>}, {transform_indices = @transform_3, window_bounds = array<i64: 32, 128>}]} {
    %c0_i32 = arith.constant 0 : i32
    %0 = arith.cmpi eq, %arg2, %c0_i32 : i32
    %1 = arith.extui %0 : i1 to i32
    %c0_i32_0 = arith.constant 0 : i32
    %2 = arith.cmpi ne, %1, %c0_i32_0 : i32
    scf.if %2 {
      %cst_10 = arith.constant 0.000000e+00 : f32
      %12 = vector.broadcast %cst_10 : f32 to vector<32x128xf32>
      %c0_11 = arith.constant 0 : index
      %c0_12 = arith.constant 0 : index
      %13 = vector.load %arg7[%c0_11, %c0_12] : memref<32x128xf32, #tpu.memory_space<vmem>>, vector<32x128xf32>
      tpu.vector_store %arg7[%c0_11, %c0_12], %12 {strides = array<i32>} : memref<32x128xf32, #tpu.memory_space<vmem>>, vector<32x128xf32>,
    } else {
    }
    %c0 = arith.constant 0 : index
    %c0_1 = arith.constant 0 : index
    %3 = vector.load %arg7[%c0, %c0_1] : memref<32x128xf32, #tpu.memory_space<vmem>>, vector<32x128xf32>
    %c0_2 = arith.constant 0 : index
    %c0_3 = arith.constant 0 : index
    %4 = vector.load %arg3[%c0_2, %c0_3] : memref<32x128xbf16, #tpu.memory_space<vmem>>, vector<32x128xbf16>
    %c0_4 = arith.constant 0 : index
    %c0_5 = arith.constant 0 : index
    %5 = vector.load %arg4[%c0_4, %c0_5] : memref<128x128xbf16, #tpu.memory_space<vmem>>, vector<128x128xbf16>
    %cst = arith.constant dense<0.000000e+00> : vector<32x128xf32>
    %6 = tpu.matmul %4, %5, %cst {dimension_numbers = #tpu.dot_dimension_numbers<[1], [0], [0], [1], [0, 0, 1, 1], [], []>} : vector<32x128xbf16>, vector<128x128xbf16>, vector<32x128xf32> -> vector<32x128xf32>
    %7 = arith.addf %3, %6 : vector<32x128xf32>
    %c0_6 = arith.constant 0 : index
    %c0_7 = arith.constant 0 : index
    %8 = vector.load %arg7[%c0_6, %c0_7] : memref<32x128xf32, #tpu.memory_space<vmem>>, vector<32x128xf32>
    tpu.vector_store %arg7[%c0_6, %c0_7], %7 {strides = array<i32>} : memref<32x128xf32, #tpu.memory_space<vmem>>, vector<32x128xf32>,
    %c0_i32_8 = arith.constant 0 : i32
    %9 = arith.cmpi eq, %arg2, %c0_i32_8 : i32
    %10 = arith.extui %9 : i1 to i32
    %c0_i32_9 = arith.constant 0 : i32
    %11 = arith.cmpi ne, %10, %c0_i32_9 : i32
    scf.if %11 {
      %c0_10 = arith.constant 0 : index
      %c0_11 = arith.constant 0 : index
      %12 = vector.load %arg7[%c0_10, %c0_11] : memref<32x128xf32, #tpu.memory_space<vmem>>, vector<32x128xf32>
      %c0_12 = arith.constant 0 : index
      %c0_13 = arith.constant 0 : index
      %13 = vector.load %arg5[%c0_12, %c0_13] : memref<1x128xf32, #tpu.memory_space<vmem>>, vector<1x128xf32>
      %14 = vector.broadcast %13 : vector<1x128xf32> to vector<32x128xf32>
      %15 = arith.addf %12, %14 : vector<32x128xf32>
      %c0_14 = arith.constant 0 : index
      %c0_15 = arith.constant 0 : index
      %16 = vector.load %arg6[%c0_14, %c0_15] : memref<32x128xf32, #tpu.memory_space<vmem>>, vector<32x128xf32>
      tpu.vector_store %arg6[%c0_14, %c0_15], %15 {strides = array<i32>} : memref<32x128xf32, #tpu.memory_space<vmem>>, vector<32x128xf32>,
    } else {
    }
    return
  }
  func.func @transform_0(%arg0: i32, %arg1: i32, %arg2: i32) -> (i32, i32) {
    %c0_i32 = arith.constant 0 : i32
    return %arg0, %arg2 : i32, i32
  }
  func.func @transform_1(%arg0: i32, %arg1: i32, %arg2: i32) -> (i32, i32) {
    %c0_i32 = arith.constant 0 : i32
    return %arg2, %arg1 : i32, i32
  }
  func.func @transform_2(%arg0: i32, %arg1: i32, %arg2: i32) -> (i32, i32) {
    %c0_i32 = arith.constant 0 : i32
    %c0_i32_0 = arith.constant 0 : i32
    return %c0_i32, %arg1 : i32, i32
  }
  func.func @transform_3(%arg0: i32, %arg1: i32, %arg2: i32) -> (i32, i32) {
    %c0_i32 = arith.constant 0 : i32
    return %arg0, %arg1 : i32, i32
  }
}

module attributes {stable_mosaic.version = 11 : i64} {
  func.func @_softmax_max_kernel(%arg0: i32, %arg1: i32, %arg2: memref<1x16x128xf32, #tpu.memory_space<vmem>>, %arg3: memref<1x16x128xf32, #tpu.memory_space<vmem>>) attributes {dimension_semantics = [#tpu.dimension_semantics<parallel>, #tpu.dimension_semantics<parallel>], iteration_bounds = array<i64: 2, 1>, scalar_prefetch = 0 : i64, scratch_operands = 0 : i64, tpu.core_type = #tpu.core_type<tc>, window_params = [{transform_indices = @transform_0, window_bounds = array<i64: 1, 16, 128>}, {transform_indices = @transform_1, window_bounds = array<i64: 1, 16, 128>}]} {
    %c0 = arith.constant 0 : index
    %c0_0 = arith.constant 0 : index
    %c0_1 = arith.constant 0 : index
    %0 = vector.load %arg2[%c0, %c0_0, %c0_1] : memref<1x16x128xf32, #tpu.memory_space<vmem>>, vector<1x16x128xf32>
    %1 = vector.shape_cast %0 : vector<1x16x128xf32> to vector<16x128xf32>
    %cst = arith.constant dense<0xFF800000> : vector<16xf32>
    %2 = vector.multi_reduction <maximumf>, %1, %cst [1] : vector<16x128xf32> to vector<16xf32>
    %3 = vector.shape_cast %2 : vector<16xf32> to vector<16x1xf32>
    %4 = vector.broadcast %3 : vector<16x1xf32> to vector<16x128xf32>
    %5 = arith.subf %1, %4 : vector<16x128xf32>
    %6 = math.exp %5 : vector<16x128xf32>
    %cst_2 = arith.constant dense<0.000000e+00> : vector<16xf32>
    %7 = vector.multi_reduction <add>, %6, %cst_2 [1] : vector<16x128xf32> to vector<16xf32>
    %8 = vector.shape_cast %7 : vector<16xf32> to vector<16x1xf32>
    %cst_3 = arith.constant 1.000000e+00 : f32
    %9 = vector.broadcast %cst_3 : f32 to vector<16x1xf32>
    %10 = arith.divf %9, %8 : vector<16x1xf32>
    %11 = tpu.iota {dimensions = array<i32: 1>} : vector<16x128xi32>
    %12 = vector.broadcast %3 : vector<16x1xf32> to vector<16x128xf32>
    %13 = arith.cmpf oeq, %1, %12 : vector<16x128xf32>
    %c128_i32 = arith.constant 128 : i32
    %14 = vector.broadcast %c128_i32 : i32 to vector<16x128xi32>
    %15 = arith.select %13, %11, %14 : vector<16x128xi1>, vector<16x128xi32>
    %cst_4 = arith.constant dense<2147483647> : vector<16xi32>
    %16 = vector.multi_reduction <minsi>, %15, %cst_4 [1] : vector<16x128xi32> to vector<16xi32>
    %17 = vector.shape_cast %16 : vector<16xi32> to vector<16x1xi32>
    %18 = tpu.iota {dimensions = array<i32: 1>} : vector<16x128xi32>
    %c0_i32 = arith.constant 0 : i32
    %19 = vector.broadcast %c0_i32 : i32 to vector<16x128xi32>
    %20 = arith.cmpi eq, %18, %19 : vector<16x128xi32>
    %c1_i32 = arith.constant 1 : i32
    %21 = vector.broadcast %c1_i32 : i32 to vector<16x128xi32>
    %22 = arith.cmpi eq, %18, %21 : vector<16x128xi32>
    %23 = arith.sitofp %17 : vector<16x1xi32> to vector<16x1xf32>
    %cst_5 = arith.constant 0.000000e+00 : f32
    %24 = vector.shape_cast %23 : vector<16x1xf32> to vector<16x1xf32>
    %25 = vector.broadcast %24 : vector<16x1xf32> to vector<16x128xf32>
    %26 = vector.broadcast %cst_5 : f32 to vector<16x128xf32>
    %27 = arith.select %22, %25, %26 : vector<16x128xi1>, vector<16x128xf32>
    %28 = vector.shape_cast %10 : vector<16x1xf32> to vector<16x1xf32>
    %29 = vector.broadcast %28 : vector<16x1xf32> to vector<16x128xf32>
    %30 = arith.select %20, %29, %27 : vector<16x128xi1>, vector<16x128xf32>
    %c0_6 = arith.constant 0 : index
    %c0_7 = arith.constant 0 : index
    %c0_8 = arith.constant 0 : index
    %31 = vector.load %arg3[%c0_6, %c0_7, %c0_8] : memref<1x16x128xf32, #tpu.memory_space<vmem>>, vector<1x16x128xf32>
    %32 = vector.shape_cast %31 : vector<1x16x128xf32> to vector<16x128xf32>
    %33 = vector.shape_cast %30 : vector<16x128xf32> to vector<1x16x128xf32>
    tpu.vector_store %arg3[%c0_6, %c0_7, %c0_8], %33 {strides = array<i32>} : memref<1x16x128xf32, #tpu.memory_space<vmem>>, vector<1x16x128xf32>,
    return
  }
  func.func @transform_0(%arg0: i32, %arg1: i32) -> (i32, i32, i32) {
    %c0_i32 = arith.constant 0 : i32
    %c0_i32_0 = arith.constant 0 : i32
    return %arg0, %arg1, %c0_i32 : i32, i32, i32
  }
  func.func @transform_1(%arg0: i32, %arg1: i32) -> (i32, i32, i32) {
    %c0_i32 = arith.constant 0 : i32
    %c0_i32_0 = arith.constant 0 : i32
    return %arg0, %arg1, %c0_i32 : i32, i32, i32
  }
}

</mosaic_0001>

<bundles_post_ra>
// kernel: tile.19
= control target key start
LH: loop header
LB: loop body
LE: loop exit
PB: predicated region body
PF: predicated region fallthrough
CT: control target
= control target key end

     0   :  { %vm68_vm0 = vcmask 1047556   ;;  %s167_s9 = smov 64   ;;  %s168_s10 = smov 32   ;;  %vm70_vm1 = vcmask 261120   ;;  %vm89_vm2 = vcmask 1048320   ;;  %vm110_vm3 = vcmask 785920   ;;  %s259_s0 = inlined_call_operand.vmem [shape: f32[16,4,32], index: 0, kind: input, shape index: {}]   ;;  %s260_s1 = inlined_call_operand.vmem [shape: f32[16,128], index: 1, kind: output, shape index: {}]  }
   0x1   :  { %v152_v0 = vld [vmem:[%s259_s0 + $0x1c] sm:$0xf]  ;;  %v153_v1 = vld [vmem:[%s259_s0 + $0x18] sm:$0xf]  ;;  %v154_v2 = vld [vmem:[%s259_s0 + $0x14] sm:$0xf] }
   0x2   :  { %39 = vst [vmem:[#allocation0 + $0x38] sm:$0xf] %v152_v0  ;;  %v155_v3 = vld [vmem:[%s259_s0 + $0x10] sm:$0xf]  ;;  %v156_v4 = vld [vmem:[%s259_s0 + $0xc] sm:$0xf] }
   0x3   :  { %43 = vst [vmem:[#allocation0 + $0x30] sm:$0xf] %v153_v1  ;;  %v157_v5 = vld [vmem:[%s259_s0 + $0x8] sm:$0xf]  ;;  %v158_v6 = vld [vmem:[%s259_s0 + $0x4] sm:$0xf] }
   0x4   :  { %47 = vst [vmem:[#allocation0 + $0x28] sm:$0xf] %v154_v2  ;;  %v64_v7 = vld [vmem:[%s259_s0] sm:$0xf]  ;;  %v144_v8 = vld [vmem:[%s259_s0 + $0x3c] sm:$0xf] }
   0x5   :  { %51 = vst [vmem:[#allocation0 + $0x20] sm:$0xf] %v155_v3  ;;  %v145_v9 = vld [vmem:[%s259_s0 + $0x38] sm:$0xf]  ;;  %v146_v10 = vld [vmem:[%s259_s0 + $0x34] sm:$0xf] }
   0x6   :  { %55 = vst [vmem:[#allocation0 + $0x18] sm:$0xf] %v156_v4  ;;  %v147_v11 = vld [vmem:[%s259_s0 + $0x30] sm:$0xf]  ;;  %v148_v12 = vld [vmem:[%s259_s0 + $0x2c] sm:$0xf] }
   0x7   :  { %59 = vst [vmem:[#allocation0 + $0x10] sm:$0xf] %v157_v5  ;;  %v149_v13 = vld [vmem:[%s259_s0 + $0x28] sm:$0xf]  ;;  %v150_v15 = vld [vmem:[%s259_s0 + $0x24] sm:$0xf] }
   0x8   :  { %63 = vst [vmem:[#allocation0 + $0x8] sm:$0xf] %v158_v6  ;;  %v151_v17 = vld [vmem:[%s259_s0 + $0x20] sm:$0xf]  ;;  %s166_s0 = smov 96   ;;  %vm131_vm4 = vcmask 523520  }
   0x9   :  { %65 = vst [vmem:[#allocation0] sm:$0xf] %v64_v7 }
   0xa   :  { %7 = vst [vmem:[#allocation0 + $0x78] sm:$0xf] %v144_v8 }
   0xb   :  { %11 = vst [vmem:[#allocation0 + $0x70] sm:$0xf] %v145_v9 }
   0xc   :  { %v84_v14 = vld [vmem:[#allocation0 + $0x3] ss:$8 sm:$0xf0]   ;;  %15 = vst [vmem:[#allocation0 + $0x68] sm:$0xf] %v146_v10 }
   0xd   :  { %v105_v16 = vld [vmem:[#allocation0 + $0x2] ss:$8 sm:$0xf0]   ;;  %19 = vst [vmem:[#allocation0 + $0x60] sm:$0xf] %v147_v11 }
   0xe   :  { %23 = vst [vmem:[#allocation0 + $0x58] sm:$0xf] %v148_v12  ;;  %v126_v18 = vld [vmem:[#allocation0 + $0x1] ss:$8 sm:$0xf0]  }
   0xf   :  { %27 = vst [vmem:[#allocation0 + $0x50] sm:$0xf] %v149_v13  ;;  %v67_v35 = vld [vmem:[#allocation0] ss:$8 sm:$0xf0]  }
  0x10   :  { %v82_v19 = vld [vmem:[#allocation0 + $0x3] ss:$8 sm:$0xf]   ;;  %v103_v20 = vld [vmem:[#allocation0 + $0x2] ss:$8 sm:$0xf]  }
  0x11   :  { %v86_v21 = vsel %vm68_vm0, %v84_v14, %v82_v19  ;;  %v107_v22 = vsel %vm68_vm0, %v105_v16, %v103_v20  ;;  %v124_v23 = vld [vmem:[#allocation0 + $0x1] ss:$8 sm:$0xf]   ;;  %31 = vst [vmem:[#allocation0 + $0x48] sm:$0xf] %v150_v15 }
  0x12   :  { %87 = vrot.lane.b32.xlu0 %v86_v21, %s166_s0  ;;  %108 = vrot.lane.b32.xlu1 %v107_v22, %s167_s9  ;;  %v128_v24 = vsel %vm68_vm0, %v126_v18, %v124_v23  ;;  %35 = vst [vmem:[#allocation0 + $0x40] sm:$0xf] %v151_v17  ;;  %v66_v34 = vld [vmem:[#allocation0] ss:$8 sm:$0xf]  }
  0x13   :  { %129 = vrot.lane.b32.xlu2 %v128_v24, %s168_s10  ;;  %v69_v36 = vsel %vm68_vm0, %v67_v35, %v66_v34 }
  0x14   :  { %v94_v25 = vld [vmem:[#allocation0 + $0x43] ss:$8 sm:$0xf0]   ;;  %v115_v26 = vld [vmem:[#allocation0 + $0x42] ss:$8 sm:$0xf0]  }
  0x15   :  { %v136_v27 = vld [vmem:[#allocation0 + $0x41] ss:$8 sm:$0xf0]   ;;  %71 = vst.msk [vmem:[%s260_s1] sm:$0xff] %vm70_vm1, %v69_v36  }
  0x16   :  { %v75_v38 = vld [vmem:[#allocation0 + $0x40] ss:$8 sm:$0xf0]  }
  0x19   :  { %v92_v28 = vld [vmem:[#allocation0 + $0x43] ss:$8 sm:$0xf]   ;;  %v113_v29 = vld [vmem:[#allocation0 + $0x42] ss:$8 sm:$0xf]  }
  0x1a   :  { %v96_v30 = vsel %vm68_vm0, %v94_v25, %v92_v28  ;;  %v117_v31 = vsel %vm68_vm0, %v115_v26, %v113_v29  ;;  %v134_v32 = vld [vmem:[#allocation0 + $0x41] ss:$8 sm:$0xf]   ;;  %v73_v37 = vld [vmem:[#allocation0 + $0x40] ss:$8 sm:$0xf]  }
  0x1b   :  { %97 = vrot.lane.b32.xlu0 %v96_v30, %s166_s0  ;;  %118 = vrot.lane.b32.xlu1 %v117_v31, %s167_s9  ;;  %v138_v33 = vsel %vm68_vm0, %v136_v27, %v134_v32  ;;  %v77_v40 = vsel %vm68_vm0, %v75_v38, %v73_v37 }
  0x1c   :  { %139 = vrot.lane.b32.xlu2 %v138_v33, %s168_s10  ;;  %159 = vst.msk [vmem:[%s260_s1 + $0x8] sm:$0xff] %vm70_vm1, %v77_v40  }
  0x6d   :  { %v130_v39 = vpop.permute.xlu2 %129  }
  0x76   :  { %v140_v41 = vpop.permute.xlu2 %139  }
  0x84   :  { %v88_v42 = vpop.permute.xlu0 %87   ;;  %v109_v43 = vpop.permute.xlu1 %108  }
  0x85   :  { %90 = vst.msk [vmem:[%s260_s1] sm:$0xff] %vm89_vm2, %v88_v42  }
  0x86   :  { %111 = vst.msk [vmem:[%s260_s1] sm:$0xff] %vm110_vm3, %v109_v43  }
  0x87   :  { %132 = vst.msk [vmem:[%s260_s1] sm:$0xff] %vm131_vm4, %v130_v39  }
  0x8d   :  { %v98_v44 = vpop.permute.xlu0 %97   ;;  %v119_v45 = vpop.permute.xlu1 %118  }
  0x8e   :  { %160 = vst.msk [vmem:[%s260_s1 + $0x8] sm:$0xff] %vm89_vm2, %v98_v44  }
  0x8f   :  { %161 = vst.msk [vmem:[%s260_s1 + $0x8] sm:$0xff] %vm110_vm3, %v119_v45  }
  0x90   :  { %162 = vst.msk [vmem:[%s260_s1 + $0x8] sm:$0xff] %vm131_vm4, %v140_v41  }

// kernel: pretrain_esm_forward.21
= control target key start
LH: loop header
LB: loop body
LE: loop exit
PB: predicated region body
PF: predicated region fallthrough
CT: control target
= control target key end

     0   :  { %v170_v6 = vmov 128.0   ;;  %s229_s0 = inlined_call_operand.vmem [shape: bf16[32,128], index: 0, kind: input, shape index: {}]   ;;  %s230_s1 = inlined_call_operand.vmem [shape: f32[1,128], index: 1, kind: input, shape index: {}]   ;;  %s231_s2 = inlined_call_operand.vmem [shape: f32[1,128], index: 2, kind: input, shape index: {}]   ;;  %s232_s3 = inlined_call_operand.vmem [shape: bf16[32,128], index: 3, kind: output, shape index: {}]  }
   0x1   :  { %v155_v0 = vld [vmem:[%s229_s0 + $0x8] sm:$0xff]   ;;  %v138_v1 = vld [vmem:[%s229_s0] sm:$0xff]   ;;  %160 = vrcp.f32 %v170_v6 }
   0x2   :  { %v143_v2 = vunpack.c.l.bf16 %v155_v0  ;;  %v139_v3 = vunpack.c.l.bf16 %v138_v1  ;;  %v144_v4 = vunpack.c.h.bf16 %v155_v0  ;;  %v140_v5 = vunpack.c.h.bf16 %v138_v1  ;;  %v158_v0 = vld [vmem:[%s230_s1] ss:$0 sm:$0xff] }
   0x4   :  { %26 = vadd.xlane.f32.xlu1 %v143_v2  ;;  %22 = vadd.xlane.f32.xlu0 %v139_v3 }
   0x7   :  { %v161_v7 = vpop.eup %160 }
   0x8   :  { %v31_v8 = vmul.f32 128.0, %v161_v7  ;;  %vm35_vm0 = vweird.f32 %v161_v7 }
   0xa   :  { %v32_v9 = vsub.f32 1.0, %v31_v8 }
   0xc   :  { %28 = vadd.xlane.f32.xlu1 %v144_v4  ;;  %24 = vadd.xlane.f32.xlu0 %v140_v5  ;;  %v33_v10 = vmul.f32 %v161_v7, %v32_v9 }
   0xe   :  { %v34_v11 = vadd.f32 %v161_v7, %v33_v10 }
  0x10   :  { %v36_v12 = vsel %vm35_vm0, %v161_v7, %v34_v11  ;;  %v159_v7 = vld [vmem:[%s231_s2] ss:$0 sm:$0xff] }
  0x77   :  { %v27_v13 = vpop.xlane.xlu1 %26  ;;  %v23_v14 = vpop.xlane.xlu0 %22 }
  0x78   :  { %v39_v15 = vmul.f32 %v36_v12, %v27_v13  ;;  %v37_v16 = vmul.f32 %v36_v12, %v23_v14 }
  0x7a   :  { %v197_v17 = vsub.f32 %v143_v2, %v39_v15  ;;  %v199_v18 = vsub.f32 %v139_v3, %v37_v16 }
  0x7c   :  { %v47_v19 = vmul.f32 %v197_v17, %v197_v17  ;;  %v45_v20 = vmul.f32 %v199_v18, %v199_v18 }
  0x7e   :  { %53 = vadd.xlane.f32.xlu0 %v47_v19  ;;  %49 = vadd.xlane.f32.xlu2 %v45_v20 }
  0x7f   :  { %v29_v21 = vpop.xlane.xlu1 %28  ;;  %v25_v22 = vpop.xlane.xlu0 %24 }
  0x80   :  { %v40_v23 = vmul.f32 %v36_v12, %v29_v21  ;;  %v38_v24 = vmul.f32 %v36_v12, %v25_v22 }
  0x82   :  { %v205_v25 = vsub.f32 %v144_v4, %v40_v23  ;;  %v207_v26 = vsub.f32 %v140_v5, %v38_v24 }
  0x84   :  { %v48_v27 = vmul.f32 %v205_v25, %v205_v25  ;;  %v46_v28 = vmul.f32 %v207_v26, %v207_v26 }
  0x86   :  { %55 = vadd.xlane.f32.xlu1 %v48_v27  ;;  %51 = vadd.xlane.f32.xlu2 %v46_v28 }
  0xf1   :  { %v50_v29 = vpop.xlane.xlu2 %49  ;;  %v54_v30 = vpop.xlane.xlu0 %53 }
  0xf2   :  { %v57_v31 = vmul.f32 %v50_v29, %v36_v12  ;;  %v59_v32 = vmul.f32 %v54_v30, %v36_v12 }
  0xf4   :  { %v61_v33 = vadd.f32 1e-05, %v57_v31  ;;  %v63_v34 = vadd.f32 1e-05, %v59_v32 }
  0xf6   :  { %162 = vrsqrt.f32 %v61_v33  ;;  %vm91_vm3 = vweird.f32 %v63_v34  ;;  %vm71_vm4 = vweird.f32 %v61_v33 }
  0xf7   :  { %164 = vrsqrt.f32 %v63_v34 }
  0xf9   :  { %v56_v35 = vpop.xlane.xlu1 %55  ;;  %v52_v36 = vpop.xlane.xlu2 %51 }
  0xfa   :  { %v60_v37 = vmul.f32 %v56_v35, %v36_v12  ;;  %v58_v38 = vmul.f32 %v52_v36, %v36_v12 }
  0xfc   :  { %v163_v39 = vpop.eup %162  ;;  %v64_v40 = vadd.f32 1e-05, %v60_v37  ;;  %v62_v41 = vadd.f32 1e-05, %v58_v38 }
  0xfd   :  { %v165_v42 = vpop.eup %164  ;;  %v66_v43 = vmul.f32 %v163_v39, %v61_v33  ;;  %vm72_vm2 = vweird.f32 %v163_v39 }
  0xfe   :  { %v86_v44 = vmul.f32 %v165_v42, %v63_v34  ;;  %166 = vrsqrt.f32 %v64_v40  ;;  %vm92_vm1 = vweird.f32 %v165_v42  ;;  %vm73_vm6 = vmor %vm71_vm4, %vm72_vm2  ;;  %vm101_vm9 = vweird.f32 %v64_v40 }
  0xff   :  { %v67_v45 = vmul.f32 %v163_v39, %v66_v43  ;;  %168 = vrsqrt.f32 %v62_v41  ;;  %vm93_vm5 = vmor %vm91_vm3, %vm92_vm1  ;;  %vm81_vm11 = vweird.f32 %v62_v41 }
 0x100   :  { %v87_v46 = vmul.f32 %v165_v42, %v86_v44 }
 0x101   :  { %v68_v47 = vmul.f32 0.5, %v67_v45 }
 0x102   :  { %v88_v48 = vmul.f32 0.5, %v87_v46 }
 0x103   :  { %v69_v49 = vsub.f32 1.5, %v68_v47 }
 0x104   :  { %v167_v50 = vpop.eup %166  ;;  %v89_v51 = vsub.f32 1.5, %v88_v48 }
 0x105   :  { %v169_v52 = vpop.eup %168  ;;  %v96_v53 = vmul.f32 %v167_v50, %v64_v40  ;;  %v70_v54 = vmul.f32 %v163_v39, %v69_v49  ;;  %vm102_vm7 = vweird.f32 %v167_v50 }
 0x106   :  { %v90_v55 = vmul.f32 %v165_v42, %v89_v51  ;;  %v76_v56 = vmul.f32 %v169_v52, %v62_v41  ;;  %vm82_vm8 = vweird.f32 %v169_v52  ;;  %vm103_vm10 = vmor %vm101_vm9, %vm102_vm7 }
 0x107   :  { %v97_v57 = vmul.f32 %v167_v50, %v96_v53  ;;  %v74_v61 = vsel %vm73_vm6, %v163_v39, %v70_v54  ;;  %vm83_vm12 = vmor %vm81_vm11, %vm82_vm8 }
 0x108   :  { %v77_v58 = vmul.f32 %v169_v52, %v76_v56  ;;  %v94_v59 = vsel %vm93_vm5, %v165_v42, %v90_v55  ;;  %v105_v3 = vmul.f32 %v74_v61, %v199_v18 }
 0x109   :  { %v98_v60 = vmul.f32 0.5, %v97_v57  ;;  %v107_v1 = vmul.f32 %v94_v59, %v197_v17 }
 0x10a   :  { %v78_v62 = vmul.f32 0.5, %v77_v58  ;;  %v113_v11 = vmul.f32 %v158_v0, %v105_v3 }
 0x10b   :  { %v99_v63 = vsub.f32 1.5, %v98_v60  ;;  %v115_v8 = vmul.f32 %v158_v0, %v107_v1 }
 0x10c   :  { %v79_v2 = vsub.f32 1.5, %v78_v62  ;;  %v121_v17 = vadd.f32 %v159_v7, %v113_v11 }
 0x10d   :  { %v100_v4 = vmul.f32 %v167_v50, %v99_v63  ;;  %v123_v15 = vadd.f32 %v159_v7, %v115_v8 }
 0x10e   :  { %v80_v5 = vmul.f32 %v169_v52, %v79_v2 }
 0x10f   :  { %v104_v6 = vsel %vm103_vm10, %v167_v50, %v100_v4 }
 0x110   :  { %v108_v9 = vmul.f32 %v104_v6, %v205_v25  ;;  %v84_v10 = vsel %vm83_vm12, %v169_v52, %v80_v5 }
 0x111   :  { %v106_v12 = vmul.f32 %v84_v10, %v207_v26 }
 0x112   :  { %v116_v13 = vmul.f32 %v158_v0, %v108_v9 }
 0x113   :  { %v114_v14 = vmul.f32 %v158_v0, %v106_v12 }
 0x114   :  { %v124_v16 = vadd.f32 %v159_v7, %v116_v13 }
 0x115   :  { %v122_v18 = vadd.f32 %v159_v7, %v114_v14 }
 0x116   :  { %v153_v19 = vpack.c.bf16 %v124_v16, %v123_v15 }
 0x117   :  { %v148_v20 = vpack.c.bf16 %v122_v18, %v121_v17 }
 0x118   :  { %156 = vst [vmem:[%s232_s3 + $0x8] sm:$0xff] %v153_v19  }
 0x119   :  { %149 = vst [vmem:[%s232_s3] sm:$0xff] %v148_v20  }

// kernel: pretrain_esm_forward.23
= control target key start
LH: loop header
LB: loop body
LE: loop exit
PB: predicated region body
PF: predicated region fallthrough
CT: control target
= control target key end

     0   :  { %s866_s21 = smov 0   ;;  %s868_s22 = smov 0   ;;  %s919_s0 = inlined_call_operand.vmem [shape: bf16[2,16,384], index: 0, kind: input, shape index: {}]   ;;  %s920_s1 = inlined_call_operand.vmem [shape: bf16[16,128], index: 1, kind: input, shape index: {}]   ;;  %s921_s2 = inlined_call_operand.vmem [shape: bf16[16,128], index: 2, kind: input, shape index: {}]   ;;  %s922_s3 = inlined_call_operand.vmem [shape: bf16[16,128], index: 3, kind: input, shape index: {}]   ;;  %s923_s4 = inlined_call_operand.vmem [shape: bf16[2,16,128], index: 4, kind: output, shape index: {0}]   ;;  %s924_s5 = inlined_call_operand.vmem [shape: bf16[2,16,128], index: 5, kind: output, shape index: {1}]   ;;  %s925_s6 = inlined_call_operand.vmem [shape: bf16[2,16,128], index: 6, kind: output, shape index: {2}]  }
   0x1   :  { %s870_s23 = smov 0  }
   0x2 LB: > { %s29_s24 = sadd.s32 1, %s823_s22  ;;  %p723_p0 = scmp.ge.s32.totalorder %s827_s23, 1  ;;  %s827_s23 = sphi %s870_s23, %s17_s23   ;;  %s823_s22 = sphi %s868_s22, %s927_s22   ;;  %s819_s21 = sphi %s866_s21, %s926_s21  }
   0x3   : > { %p31_p1 = scmp.ge.s32.totalorder %s29_s24, 2  ;;  %p276_p2 = scmp.lt.s32.totalorder %s827_s23, 3 }
   0x5   : > { %s929_s24 = smov (%p31_p1, %s29_s24), 0  ;;  %p277_p3 = pnand %p723_p0, %p276_p2 }
   0x6   : > { %p349_p4 = scmp.lt.s32.totalorder (!%p277_p3), %s819_s21, 1  ;;  %s829_s9 = smov (!%p277_p3), 16  }
   0x7   : > { %280 = sbr.rel (%p277_p3) target bundleno = 156 (0x9c), region = 36  ;;  %s830_s10 = smov (!%p277_p3), 112  }
   0xc   : > { %s931_s21 = smov (!%p349_p4, %s819_s21), 1  ;;  %v737_v12 = vld [vmem:[%s920_s1] sm:$0xff]  }
   0xd   : > { %s758_s25 = smul.u32 24, %s931_s21  ;;  %s884_s26 = sshll.u32 %s931_s21, 3  ;;  %v741_v13 = vld [vmem:[%s921_s2] sm:$0xff]   ;;  %v738_v15 = vunpack.c.l.bf16 %v737_v12  ;;  %v739_v16 = vunpack.c.h.bf16 %v737_v12 }
   0xe   : > { %s405_s8 = scalar_lea.vmem %s925_s6, %s884_s26  ;;  %v742_v17 = vunpack.c.l.bf16 %v741_v13  ;;  %v743_v18 = vunpack.c.h.bf16 %v741_v13  ;;  %v745_v24 = vld [vmem:[%s922_s3] sm:$0xff]   ;;  %s385_s19 = scalar_lea.vmem %s923_s4, %s884_s26 }
   0xf   : > { %s357_s29 = scalar_lea.vmem %s919_s0, %s758_s25  ;;  %v746_v29 = vunpack.c.l.bf16 %v745_v24  ;;  %v747_v30 = vunpack.c.h.bf16 %v745_v24  ;;  %s395_s25 = scalar_lea.vmem %s924_s5, %s884_s26 }
  0x10   : > { %v407_v0 = vld [vmem:[%s357_s29] sm:$0xff]  ;;  %v408_v1 = vld [vmem:[%s357_s29 + $0x8] sm:$0xf]  ;;  %v409_v2 = vld [vmem:[%s357_s29 + $0xc] sm:$0xff] }
  0x11   : > { %v410_v3 = vld [vmem:[%s357_s29 + $0x14] sm:$0xf]  ;;  %v423_v4 = vunpack.c.l.bf16 %v407_v0  ;;  %v424_v5 = vunpack.c.l.bf16 %v409_v2  ;;  %v427_v6 = vrot.slane %v407_v0, 4  ;;  %v428_v7 = vrot.slane %v409_v2, 4  ;;  %479 = vst [vmem:[%s405_s8] sm:$0xf] %v408_v1 }
  0x12   : > { %480 = vst [vmem:[%s405_s8 + $0x4] sm:$0xf] %v410_v3 }
  0x13   : > { %v785_v8 = vpack.i.bf16 %v424_v5, %v423_v4  ;;  %v431_v9 = vunpack.c.l.bf16 %v427_v6  ;;  %v432_v10 = vunpack.c.l.bf16 %v428_v7  ;;  %v434_v25 = vmul.f32 %v739_v16, %v424_v5 }
  0x14   : > { %v433_v27 = vmul.f32 %v738_v15, %v423_v4 }
  0x15   : > { %786 = vrot.lane.b32.xlu0 %v785_v8, %s829_s9  ;;  %v795_v11 = vpack.i.bf16 %v432_v10, %v431_v9  ;;  %v458_v31 = vmul.f32 %v739_v16, %v432_v10  ;;  %v457_v33 = vmul.f32 %v738_v15, %v431_v9 }
  0x17   : > { %796 = vrot.lane.b32.xlu1 %v795_v11, %s829_s9 }
  0x1d   : > { %791 = vrot.lane.b32.xlu0 %v785_v8, %s830_s10 }
  0x1f   : > { %801 = vrot.lane.b32.xlu1 %v795_v11, %s830_s10 }
  0x87   : > { %v787_v14 = vpop.permute.xlu0 %786 }
  0x88   : > { %v789_v19 = vunpack.i.h.bf16 %v787_v14  ;;  %v788_v20 = vunpack.i.l.bf16 %v787_v14 }
  0x89   : > { %v797_v21 = vpop.permute.xlu1 %796 }
  0x8a   : > { %v799_v22 = vunpack.i.h.bf16 %v797_v21  ;;  %v798_v23 = vunpack.i.l.bf16 %v797_v21  ;;  %v440_v26 = vmul.f32 %v789_v19, %v743_v18  ;;  %v439_v28 = vmul.f32 %v788_v20, %v742_v17 }
  0x8c   : > { %v464_v32 = vmul.f32 %v799_v22, %v743_v18  ;;  %v463_v34 = vmul.f32 %v798_v23, %v742_v17  ;;  %v442_v38 = vadd.f32 %v440_v26, %v434_v25  ;;  %v441_v39 = vadd.f32 %v439_v28, %v433_v27 }
  0x8e   : > { %v466_v45 = vadd.f32 %v464_v32, %v458_v31  ;;  %v465_v46 = vadd.f32 %v463_v34, %v457_v33 }
  0x8f   : > { %v792_v35 = vpop.permute.xlu0 %791 }
  0x90   : > { %v794_v36 = vunpack.i.h.bf16 %v792_v35  ;;  %v793_v37 = vunpack.i.l.bf16 %v792_v35 }
  0x91   : > { %v802_v40 = vpop.permute.xlu1 %801 }
  0x92   : > { %v448_v41 = vmul.f32 %v794_v36, %v747_v30  ;;  %v447_v42 = vmul.f32 %v793_v37, %v746_v29  ;;  %v804_v43 = vunpack.i.h.bf16 %v802_v40  ;;  %v803_v44 = vunpack.i.l.bf16 %v802_v40 }
  0x94   : > { %v449_v47 = vadd.f32 %v447_v42, %v441_v39  ;;  %v450_v48 = vadd.f32 %v448_v41, %v442_v38  ;;  %v472_v49 = vmul.f32 %v804_v43, %v747_v30  ;;  %v471_v50 = vmul.f32 %v803_v44, %v746_v29 }
  0x96   : > { %v451_v51 = vmul.f32 0.17677669, %v449_v47  ;;  %v452_v52 = vmul.f32 0.17677669, %v450_v48  ;;  %v473_v53 = vadd.f32 %v471_v50, %v465_v46  ;;  %v474_v54 = vadd.f32 %v472_v49, %v466_v45 }
  0x98   : > { %v751_v55 = vpack.c.bf16 %v452_v52, %v451_v51  ;;  %v756_v56 = vpack.c.bf16 %v474_v54, %v473_v53 }
  0x9a   : > { %752 = vst [vmem:[%s385_s19] sm:$0xff] %v751_v55  }
  0x9b   : > { %757 = vst [vmem:[%s395_s25] sm:$0xff] %v756_v56  }
  0x9c PF: > { %s17_s23 = sadd.s32 1, %s827_s23   ;;  %s926_s21 = smov %s823_s22 }
  0x9d   : > { %p14_p5 = scmp.ge.s32.totalorder %s17_s23, 4   ;;  %s927_s22 = smov %s929_s24 }
  0x9f   :  { %16 = sbr.rel (!%p14_p5) target bundleno = 2 (0x2), region = 99 }

// kernel: pretrain_esm_forward.22
= control target key start
LH: loop header
LB: loop body
LE: loop exit
PB: predicated region body
PF: predicated region fallthrough
CT: control target
= control target key end

     0   :  { %s689_s1 = inlined_call_operand.vmem [shape: bf16[128,384], index: 1, kind: input, shape index: {}]   ;;  %s690_s0 = inlined_call_operand.vmem [shape: bf16[32,128], index: 0, kind: input, shape index: {}]   ;;  %s691_s2 = inlined_call_operand.vmem [shape: f32[1,384], index: 2, kind: input, shape index: {}]   ;;  %s692_s3 = inlined_call_operand.vmem [shape: bf16[32,384], index: 3, kind: output, shape index: {}]  }
   0x1   :  { %v448_v0 = vld [vmem:[%s689_s1 + $0xa8] sm:$0xf]  ;;  %v482_v1 = vld [vmem:[%s689_s1 + $0xb0] sm:$0xf0]  ;;  %v481_v2 = vld [vmem:[%s689_s1 + $0xac] sm:$0xf] }
   0x2   :  { %v449_v3 = vor.u32 %v482_v1, %v448_v0  ;;  %v450_v4 = vld [vmem:[%s689_s1 + $0xb4] sm:$0xf0]  ;;  %v456_v5 = vld [vmem:[%s689_s1 + $0xb0] sm:$0xf]  ;;  %v483_v6 = vld [vmem:[%s689_s1 + $0xb8] sm:$0xf0] }
   0x3   :  { %v453_v7 = vor.u32 %v481_v2, %v450_v4  ;;  %v457_v8 = vor.u32 %v483_v6, %v456_v5  ;;  %v436_v9 = vld [vmem:[%s689_s1 + $0x90] sm:$0xf]  ;;  %v479_v10 = vld [vmem:[%s689_s1 + $0x98] sm:$0xf0]  ;;  %v478_v11 = vld [vmem:[%s689_s1 + $0x94] sm:$0xf] }
   0x4   :  { %218 = vmatpush.bf16.msra.mxu0 %v449_v3  ;;  %v437_v12 = vor.u32 %v479_v10, %v436_v9  ;;  %v438_v13 = vld [vmem:[%s689_s1 + $0x9c] sm:$0xf0]  ;;  %v444_v14 = vld [vmem:[%s689_s1 + $0x98] sm:$0xf]  ;;  %v480_v15 = vld [vmem:[%s689_s1 + $0xa0] sm:$0xf0]  ;;  %484 = vmatpush.bf16.msra.mxu3 %v449_v3 }
   0x5   :  { %237 = vmatpush.bf16.msra.mxu1 %v453_v7  ;;  %256 = vmatpush.bf16.msra.mxu2 %v457_v8  ;;  %v441_v16 = vor.u32 %v478_v11, %v438_v13  ;;  %v445_v17 = vor.u32 %v480_v15, %v444_v14  ;;  %v424_v18 = vld [vmem:[%s689_s1 + $0x78] sm:$0xf]  ;;  %v476_v19 = vld [vmem:[%s689_s1 + $0x80] sm:$0xf0]  ;;  %v475_v20 = vld [vmem:[%s689_s1 + $0x7c] sm:$0xf] }
   0x6   :  { %v426_v21 = vld [vmem:[%s689_s1 + $0x84] sm:$0xf0]  ;;  %v432_v22 = vld [vmem:[%s689_s1 + $0x80] sm:$0xf]  ;;  %v477_v23 = vld [vmem:[%s689_s1 + $0x88] sm:$0xf0]  ;;  %v425_v24 = vor.u32 %v476_v19, %v424_v18 }
   0x7   :  { %v429_v25 = vor.u32 %v475_v20, %v426_v21  ;;  %v433_v26 = vor.u32 %v477_v23, %v432_v22  ;;  %v412_v27 = vld [vmem:[%s689_s1 + $0x60] sm:$0xf]  ;;  %v473_v28 = vld [vmem:[%s689_s1 + $0x68] sm:$0xf0]  ;;  %v472_v29 = vld [vmem:[%s689_s1 + $0x64] sm:$0xf] }
   0x8   :  { %219 = vmatpush.bf16.msra.mxu0 %v437_v12  ;;  %485 = vmatpush.bf16.msra.mxu3 %v437_v12  ;;  %v414_v30 = vld [vmem:[%s689_s1 + $0x6c] sm:$0xf0]  ;;  %v420_v31 = vld [vmem:[%s689_s1 + $0x68] sm:$0xf]  ;;  %v474_v32 = vld [vmem:[%s689_s1 + $0x70] sm:$0xf0]  ;;  %v413_v33 = vor.u32 %v473_v28, %v412_v27 }
   0x9   :  { %238 = vmatpush.bf16.msra.mxu1 %v441_v16  ;;  %257 = vmatpush.bf16.msra.mxu2 %v445_v17  ;;  %v417_v34 = vor.u32 %v472_v29, %v414_v30  ;;  %v421_v35 = vor.u32 %v474_v32, %v420_v31  ;;  %v400_v36 = vld [vmem:[%s689_s1 + $0x48] sm:$0xf]  ;;  %v470_v37 = vld [vmem:[%s689_s1 + $0x50] sm:$0xf0]  ;;  %v469_v38 = vld [vmem:[%s689_s1 + $0x4c] sm:$0xf] }
   0xa   :  { %v402_v39 = vld [vmem:[%s689_s1 + $0x54] sm:$0xf0]  ;;  %v408_v40 = vld [vmem:[%s689_s1 + $0x50] sm:$0xf]  ;;  %v471_v41 = vld [vmem:[%s689_s1 + $0x58] sm:$0xf0]  ;;  %v401_v42 = vor.u32 %v470_v37, %v400_v36 }
   0xb   :  { %v405_v43 = vor.u32 %v469_v38, %v402_v39  ;;  %v409_v44 = vor.u32 %v471_v41, %v408_v40  ;;  %v388_v45 = vld [vmem:[%s689_s1 + $0x30] sm:$0xf]  ;;  %v467_v46 = vld [vmem:[%s689_s1 + $0x38] sm:$0xf0]  ;;  %v466_v47 = vld [vmem:[%s689_s1 + $0x34] sm:$0xf] }
   0xc   :  { %220 = vmatpush.bf16.msra.mxu0 %v425_v24  ;;  %486 = vmatpush.bf16.msra.mxu3 %v425_v24  ;;  %v390_v48 = vld [vmem:[%s689_s1 + $0x3c] sm:$0xf0]  ;;  %v396_v49 = vld [vmem:[%s689_s1 + $0x38] sm:$0xf]  ;;  %v468_v50 = vld [vmem:[%s689_s1 + $0x40] sm:$0xf0]  ;;  %v389_v51 = vor.u32 %v467_v46, %v388_v45 }
   0xd   :  { %239 = vmatpush.bf16.msra.mxu1 %v429_v25  ;;  %258 = vmatpush.bf16.msra.mxu2 %v433_v26  ;;  %v393_v52 = vor.u32 %v466_v47, %v390_v48  ;;  %v397_v53 = vor.u32 %v468_v50, %v396_v49  ;;  %v376_v54 = vld [vmem:[%s689_s1 + $0x18] sm:$0xf]  ;;  %v464_v55 = vld [vmem:[%s689_s1 + $0x20] sm:$0xf0]  ;;  %v463_v56 = vld [vmem:[%s689_s1 + $0x1c] sm:$0xf] }
   0xe   :  { %v378_v57 = vld [vmem:[%s689_s1 + $0x24] sm:$0xf0]  ;;  %v384_v58 = vld [vmem:[%s689_s1 + $0x20] sm:$0xf]  ;;  %v465_v59 = vld [vmem:[%s689_s1 + $0x28] sm:$0xf0]  ;;  %v377_v60 = vor.u32 %v464_v55, %v376_v54 }
   0xf   :  { %v381_v61 = vor.u32 %v463_v56, %v378_v57  ;;  %v385_v62 = vor.u32 %v465_v59, %v384_v58  ;;  %v364_v63 = vld [vmem:[%s689_s1] sm:$0xf]  ;;  %v461_v0 = vld [vmem:[%s689_s1 + $0x8] sm:$0xf0]  ;;  %v460_v1 = vld [vmem:[%s689_s1 + $0x4] sm:$0xf] }
  0x10   :  { %221 = vmatpush.bf16.msra.mxu0 %v413_v33  ;;  %487 = vmatpush.bf16.msra.mxu3 %v413_v33  ;;  %v366_v2 = vld [vmem:[%s689_s1 + $0xc] sm:$0xf0]  ;;  %v372_v3 = vld [vmem:[%s689_s1 + $0x8] sm:$0xf]  ;;  %v462_v4 = vld [vmem:[%s689_s1 + $0x10] sm:$0xf0]  ;;  %v365_v5 = vor.u32 %v461_v0, %v364_v63 }
  0x11   :  { %240 = vmatpush.bf16.msra.mxu1 %v417_v34  ;;  %259 = vmatpush.bf16.msra.mxu2 %v421_v35  ;;  %v369_v6 = vor.u32 %v460_v1, %v366_v2  ;;  %v373_v7 = vor.u32 %v462_v4, %v372_v3  ;;  %v458_v8 = vld [vmem:[%s690_s0] sm:$0xff]  ;;  %v459_v9 = vld [vmem:[%s690_s0 + $0x8] sm:$0xff] }
  0x12   :  { %v314_v10 = vld [vmem:[%s691_s2] sm:$0x7] }
  0x13   :  { %v316_v11 = vperm.slane %v314_v10, 0  ;;  %v317_v12 = vperm.slane %v314_v10, 1  ;;  %v318_v18 = vperm.slane %v314_v10, 2 }
  0x14   :  { %222 = vmatpush.bf16.msra.mxu0 %v401_v42  ;;  %488 = vmatpush.bf16.msra.mxu3 %v401_v42 }
  0x15   :  { %241 = vmatpush.bf16.msra.mxu1 %v405_v43  ;;  %260 = vmatpush.bf16.msra.mxu2 %v409_v44 }
  0x18   :  { %223 = vmatpush.bf16.msra.mxu0 %v389_v51  ;;  %489 = vmatpush.bf16.msra.mxu3 %v389_v51 }
  0x19   :  { %242 = vmatpush.bf16.msra.mxu1 %v393_v52  ;;  %261 = vmatpush.bf16.msra.mxu2 %v397_v53 }
  0x1c   :  { %224 = vmatpush.bf16.msra.mxu0 %v377_v60  ;;  %490 = vmatpush.bf16.msra.mxu3 %v377_v60 }
  0x1d   :  { %243 = vmatpush.bf16.msra.mxu1 %v381_v61  ;;  %262 = vmatpush.bf16.msra.mxu2 %v385_v62 }
  0x20   :  { %225 = vmatpush.bf16.msra.mxu0 %v365_v5  ;;  %491 = vmatpush.bf16.msra.mxu3 %v365_v5 }
  0x21   :  { %244 = vmatpush.bf16.msra.mxu1 %v369_v6  ;;  %263 = vmatpush.bf16.msra.mxu2 %v373_v7 }
  0x23   :  { %226 = vmatmul.bf16.vlgmr.msra.gmra.mxu0 %v458_v8  ;;  %231 = vmatmul.bf16.vlgmr.msra.gmra.mxu3 %v459_v9 }
  0x24   :  { %245 = vmatmul.bf16.vlgmr.msra.gmra.mxu1 %v458_v8  ;;  %264 = vmatmul.bf16.vlgmr.msra.gmra.mxu2 %v458_v8 }
  0x34   :  { %250 = vmatmul.bf16.gmra.mxu1 %v459_v9  ;;  %269 = vmatmul.bf16.gmra.mxu2 %v459_v9 }
  0xa0   :  { %v227_v13 = vpop.f32.mrf.mxu0 }
  0xa1   :  { %v322_v14 = vadd.f32 %v316_v11, %v227_v13  ;;  %v246_v15 = vpop.f32.mrf.mxu1 }
  0xa2   :  { %v323_v16 = vadd.f32 %v317_v12, %v246_v15 }
  0xa4   :  { %v334_v17 = vpack.c.bf16 %v323_v16, %v322_v14 }
  0xa6   :  { %342 = vst [vmem:[%s692_s3] sm:$0xff] %v334_v17  ;;  %v232_v27 = vpop.f32.mrf.mxu3 }
  0xa7   :  { %v265_v19 = vpop.f32.mrf.mxu2  ;;  %v328_v29 = vadd.f32 %v316_v11, %v232_v27 }
  0xa8   :  { %v324_v20 = vadd.f32 %v318_v18, %v265_v19  ;;  %v229_v21 = vpop.f32.mrf.mxu0 }
  0xa9   :  { %v325_v22 = vadd.f32 %v316_v11, %v229_v21  ;;  %v248_v23 = vpop.f32.mrf.mxu1 }
  0xaa   :  { %v335_v24 = vpack.c.bf16 %v324_v20, %v324_v20  ;;  %v326_v25 = vadd.f32 %v317_v12, %v248_v23 }
  0xac   :  { %343 = vst [vmem:[%s692_s3 + $0x8] sm:$0xf] %v335_v24  ;;  %v336_v26 = vpack.c.bf16 %v326_v25, %v325_v22 }
  0xae   :  { %344 = vst [vmem:[%s692_s3 + $0xc] sm:$0xff] %v336_v26  ;;  %v234_v35 = vpop.f32.mrf.mxu3 }
  0xaf   :  { %v267_v28 = vpop.f32.mrf.mxu2  ;;  %v331_v39 = vadd.f32 %v316_v11, %v234_v35 }
  0xb0   :  { %v327_v30 = vadd.f32 %v318_v18, %v267_v28 }
  0xb1   :  { %v251_v31 = vpop.f32.mrf.mxu1 }
  0xb2   :  { %v337_v32 = vpack.c.bf16 %v327_v30, %v327_v30  ;;  %v329_v33 = vadd.f32 %v317_v12, %v251_v31 }
  0xb4   :  { %345 = vst [vmem:[%s692_s3 + $0x14] sm:$0xf] %v337_v32  ;;  %v338_v34 = vpack.c.bf16 %v329_v33, %v328_v29 }
  0xb6   :  { %346 = vst [vmem:[%s692_s3 + $0x18] sm:$0xff] %v338_v34 }
  0xb7   :  { %v270_v36 = vpop.f32.mrf.mxu2 }
  0xb8   :  { %v330_v37 = vadd.f32 %v318_v18, %v270_v36 }
  0xb9   :  { %v253_v38 = vpop.f32.mrf.mxu1 }
  0xba   :  { %v339_v40 = vpack.c.bf16 %v330_v37, %v330_v37  ;;  %v332_v41 = vadd.f32 %v317_v12, %v253_v38 }
  0xbc   :  { %347 = vst [vmem:[%s692_s3 + $0x20] sm:$0xf] %v339_v40  ;;  %v340_v42 = vpack.c.bf16 %v332_v41, %v331_v39 }
  0xbe   :  { %348 = vst [vmem:[%s692_s3 + $0x24] sm:$0xff] %v340_v42 }
  0xbf   :  { %v272_v43 = vpop.f32.mrf.mxu2 }
  0xc0   :  { %v333_v44 = vadd.f32 %v318_v18, %v272_v43 }
  0xc2   :  { %v341_v45 = vpack.c.bf16 %v333_v44, %v333_v44 }
  0xc4   :  { %349 = vst [vmem:[%s692_s3 + $0x2c] sm:$0xf] %v341_v45 }

// kernel: pretrain_esm_forward.24
= control target key start
LH: loop header
LB: loop body
LE: loop exit
PB: predicated region body
PF: predicated region fallthrough
CT: control target
= control target key end

     0   :  { %s1272_s15 = smov 0   ;;  %s1274_s16 = smov 0   ;;  %s1521_s0 = inlined_call_operand.vmem [shape: bf16[2,16,128], index: 0, kind: input, shape index: {}]   ;;  %s1522_s1 = inlined_call_operand.vmem [shape: bf16[2,16,128], index: 1, kind: input, shape index: {}]   ;;  %s1523_s2 = inlined_call_operand.vmem [shape: bf16[2,16,128], index: 2, kind: input, shape index: {}]   ;;  %s1524_s3 = inlined_call_operand.vmem [shape: f32[2,1,16], index: 3, kind: input, shape index: {}]   ;;  %s1525_s4 = inlined_call_operand.vmem [shape: bf16[2,16,128], index: 4, kind: output, shape index: {}]  }
   0x1   :  { %s1276_s17 = smov 0  }
   0x2 LB: > { %s33_s18 = sadd.s32 1, %s1232_s16  ;;  %p1086_p0 = scmp.ge.s32.totalorder %s1236_s17, 1  ;;  %s1236_s17 = sphi %s1276_s17, %s14_s17   ;;  %s1232_s16 = sphi %s1274_s16, %s1527_s16   ;;  %s1228_s15 = sphi %s1272_s15, %s1526_s15  }
   0x3   : > { %p35_p1 = scmp.ge.s32.totalorder %s33_s18, 2  ;;  %p237_p2 = scmp.lt.s32.totalorder %s1236_s17, 3 }
   0x5   : > { %s1529_s18 = smov (%p35_p1, %s33_s18), 0  ;;  %p238_p3 = pnand %p1086_p0, %p237_p2 }
   0x6   : > { %p296_p4 = scmp.lt.s32.totalorder (!%p238_p3), %s1228_s15, 1  ;;  %s1238_s29 = smov (!%p238_p3), 96  }
   0x7   : > { %241 = sbr.rel (%p238_p3) target bundleno = 1365 (0x555), region = 36  ;;  %s1240_s30 = smov (!%p238_p3), 64  }
   0x8   : > { %s1243_s5 = smov (!%p238_p3), 32  }
   0xc   : > { %s1531_s15 = smov (!%p296_p4, %s1228_s15), 1  ;;  %vm373_vm0 = vcmask 261120   ;;  %vm346_vm1 = vcmask 31744   ;;  %v1239_v3 = vmov -inf   ;;  %vm396_vm2 = vcmask 130048  }
   0xd   : > { %s1290_s19 = sshll.u32 %s1531_s15, 3  ;;  %s330_s22 = scalar_lea.vmem %s1524_s3, %s1531_s15  ;;  %347 = vst.msk [vmem:[#allocation2] sm:$0xff] %vm346_vm1, %v1239_v3  ;;  %v1241_v11 = vmov 0   ;;  %v1242_v12 = vmov 0.0   ;;  %vm439_vm3 = vcmask 7168   ;;  %v1244_v58 = vmov 1  }
   0xe   : > { %s313_s25 = scalar_lea.vmem %s1522_s1, %s1290_s19  ;;  %s303_s28 = scalar_lea.vmem %s1521_s0, %s1290_s19  ;;  %348 = vst.msk [vmem:[#allocation2 + $0x8] sm:$0xff] %vm346_vm1, %v1239_v3  ;;  %v1308_v4 = vld [vmem:[%s330_s22] ss:$0 sm:$0xff]  ;;  %1157 = vset.pattern.permute.xlu1 %v1241_v11  ;;  %1158 = vset.pattern.permute.xlu2 %v1241_v11  ;;  %vm554_vm4 = vcmask 15368   ;;  %vm675_vm5 = vcmask 23568   ;;  %vm796_vm6 = vcmask 31768  }
   0xf   : > { %v1122_v0 = vld [vmem:[%s313_s25] sm:$0xff]  ;;  %1159 = vset.pattern.permute.xlu0 %v1241_v11  ;;  %351 = vst [vmem:[#allocation4] sm:$0xff] %v1242_v12  ;;  %s323_s8 = scalar_lea.vmem %s1523_s2, %s1290_s19  ;;  %vm602_vm7 = vcmask 523520   ;;  %vm723_vm8 = vcmask 785920   ;;  %vm844_vm9 = vcmask 1048320   ;;  %s1495_s11 = scalar_lea.vmem %s1525_s4, %s1290_s19  ;;  %vm872_vm10 = vcmask 257024  }
  0x10   : > { %v378_v1 = vsel %vm373_vm0, %v1122_v0, 0  ;;  %v1121_v2 = vld [vmem:[%s303_s28] sm:$0xff]  ;;  %488 = vrot.lane.b32.xlu1 %v1122_v0, %s1238_s29  ;;  %349 = vst.msk [vmem:[#allocation3] sm:$0xff] %vm346_vm1, %v1242_v12  ;;  %vm895_vm11 = vcmask 519424   ;;  %vm918_vm12 = vcmask 781824   ;;  %vm941_vm13 = vcmask 1044224  }
  0x11   : > { %387 = vmatpush.bf16.xpose.msra.mxu0 %v378_v1  ;;  %350 = vst.msk [vmem:[#allocation3 + $0x8] sm:$0xff] %vm346_vm1, %v1242_v12  ;;  %v1331_v23 = vld [vmem:[%s323_s8] sm:$0xff] }
  0x12   : > { %352 = vst [vmem:[#allocation4 + $0x8] sm:$0xff] %v1242_v12  ;;  %473 = vmatpush.bf16.msra.mxu1 %v1331_v23 }
  0x14   : > { %v394_v13 = vld [vmem:[#allocation2] sm:$0xff] }
  0x15   : > { %v395_v17 = vld [vmem:[#allocation2 + $0x8] sm:$0xff] }
  0x18   : > { %1103 = vmatmul.msk.bf16.vlgmr.msra.gmra.mxu0 %vm373_vm0, %v1121_v2 }
  0x82   : > { %v489_v21 = vpop.permute.xlu1 %488 }
  0x83   : > { %v494_v22 = vsel %vm373_vm0, %v489_v21, 0 }
  0x84   : > { %503 = vmatpush.bf16.xpose.msra.mxu2 %v494_v22 }
  0x95   : > { %v389_v5 = vpop.f32.mrf.mxu0 }
  0x96   : > { %v390_v6 = vadd.f32 %v1308_v4, %v389_v5 }
  0x98   : > { %v397_v7 = vsel %vm396_vm2, %v390_v6, -inf }
  0x99   : > { %398 = vmax.xlane.f32.xlu0 %v397_v7 }
  0x9d   : > { %v391_v8 = vpop.f32.mrf.mxu0 }
  0x9e   : > { %v392_v9 = vadd.f32 %v1308_v4, %v391_v8 }
  0xa0   : > { %v400_v10 = vsel %vm396_vm2, %v392_v9, -inf }
  0xa1   : > { %401 = vmax.xlane.f32.xlu0 %v400_v10 }
  0xb5   : > { %609 = vrot.lane.b32.xlu0 %v1122_v0, %s1240_s30 }
 0x10c   : > { %v399_v14 = vpop.xlane.xlu0 %398 }
 0x10d   : > { %v403_v15 = vmax.f32 %v394_v13, %v399_v14 }
 0x10f   : > { %v405_v16 = vsub.f32 %v394_v13, %v403_v15  ;;  %484 = vst.msk [vmem:[#allocation2] sm:$0xff] %vm439_vm3, %v403_v15  ;;  %413 = vperm.xlu1 %1157, %v403_v15  }
 0x111   : > { %v407_v43 = vmul.f32 1.442695, %v405_v16 }
 0x114   : > { %v402_v18 = vpop.xlane.xlu0 %401 }
 0x115   : > { %v404_v19 = vmax.f32 %v395_v17, %v402_v18 }
 0x116   : > { %v510_v63 = vld [vmem:[#allocation2] sm:$0xff] }
 0x117   : > { %v406_v20 = vsub.f32 %v395_v17, %v404_v19  ;;  %485 = vst.msk [vmem:[#allocation2 + $0x8] sm:$0xff] %vm439_vm3, %v404_v19  ;;  %607 = vrot.lane.b32.xlu1 %v1121_v2, %s1240_s30  ;;  %418 = vperm.xlu2 %1158, %v404_v19  }
 0x118   : > { %1160 = vset.pattern.permute.xlu1 %v1244_v58 }
 0x119   : > { %v409_v54 = vmul.f32 1.442695, %v406_v20 }
 0x11e   : > { %v511_v8 = vld [vmem:[#allocation2 + $0x8] sm:$0xff] }
 0x11f   : > { %728 = vrot.lane.b32.xlu1 %v1121_v2, %s1243_s5  ;;  %486 = vrot.lane.b32.xlu2 %v1121_v2, %s1238_s29 }
 0x127   : > { %730 = vrot.lane.b32.xlu2 %v1122_v0, %s1243_s5  ;;  %v610_v25 = vpop.permute.xlu0 %609 }
 0x128   : > { %v615_v26 = vsel %vm373_vm0, %v610_v25, 0  ;;  %v1245_v25 = vmov 2  }
 0x129   : > { %624 = vmatpush.bf16.xpose.msrb.mxu1 %v615_v26  ;;  %v427_v26 = vld [vmem:[#allocation3] sm:$0xff] }
 0x171   : > { %v419_v24 = vpop.permute.xlu2 %418 }
 0x172   : > { %v422_v28 = vsub.f32 %v392_v9, %v419_v24 }
 0x174   : > { %v425_v29 = vmul.f32 1.442695, %v422_v28 }
 0x176   : > { %1178 = vpow2.f32 %v425_v29 }
 0x179   : > { %v487_v27 = vpop.permute.xlu2 %486 }
 0x17a   : > { %1109 = vmatmul.msk.bf16.vlgmr.msra.gmra.mxu2 %vm373_vm0, %v487_v27 }
 0x17c   : > { %v1337_v36 = vpop.eup %1178 }
 0x17d   : > { %v434_v19 = vsel %vm396_vm2, %v1337_v36, 0.0 }
 0x181   : > { %v414_v30 = vpop.permute.xlu1 %413  ;;  %v731_v31 = vpop.permute.xlu2 %730 }
 0x182   : > { %v421_v32 = vsub.f32 %v390_v6, %v414_v30  ;;  %v736_v33 = vsel %vm373_vm0, %v731_v31, 0 }
 0x183   : > { %745 = vmatpush.bf16.xpose.msrb.mxu0 %v736_v33 }
 0x184   : > { %v423_v34 = vmul.f32 1.442695, %v421_v32 }
 0x186   : > { %1180 = vpow2.f32 %v423_v34 }
 0x187   : > { %1182 = vpow2.f32 %v407_v43  ;;  %v1246_v43 = vmov 3  }
 0x188   : > { %1184 = vpow2.f32 %v409_v54 }
 0x189   : > { %v608_v35 = vpop.permute.xlu1 %607 }
 0x18c   : > { %v1181_v37 = vpop.eup %1180 }
 0x18d   : > { %v456_v38 = vpack.c.bf16 %v1337_v36, %v1181_v37  ;;  %v1353_v48 = vpop.eup %1182  ;;  %v431_v59 = vsel %vm396_vm2, %v1181_v37, 0.0 }
 0x18e   : > { %v1366_v55 = vpop.eup %1184  ;;  %v429_v27 = vmul.f32 %v1353_v48, %v427_v26 }
 0x18f   : > { %1108 = vmatmul.msk.bf16.vlgmr.msra.gmra.mxu1 %vm396_vm2, %v456_v38 }
 0x191   : > { %v729_v39 = vpop.permute.xlu1 %728 }
 0x192   : > { %1113 = vmatmul.msk.bf16.vlgmr.msrb.gmra.mxu0 %vm373_vm0, %v729_v39 }
 0x19f   : > { %1111 = vmatmul.msk.bf16.vlgmr.msrb.gmra.mxu1 %vm373_vm0, %v608_v35 }
 0x1fd   : > { %v505_v40 = vpop.f32.mrf.mxu2 }
 0x1fe   : > { %v1344_v41 = vadd.f32 %v1308_v4, %v505_v40 }
 0x200   : > { %v512_v42 = vsel %vm396_vm2, %v1344_v41, -inf }
 0x201   : > { %513 = vmax.xlane.f32.xlu0 %v512_v42 }
 0x205   : > { %v507_v47 = vpop.f32.mrf.mxu2 }
 0x206   : > { %v1357_v49 = vadd.f32 %v1308_v4, %v507_v47 }
 0x208   : > { %v515_v52 = vsel %vm396_vm2, %v1357_v49, -inf }
 0x20c   : > { %v475_v56 = vpop.f32.mrf.mxu1 }
 0x20f   : > { %v747_v44 = vpop.f32.mrf.mxu0 }
 0x210   : > { %v1349_v45 = vadd.f32 %v1308_v4, %v747_v44 }
 0x212   : > { %v754_v46 = vsel %vm396_vm2, %v1349_v45, -inf }
 0x213   : > { %755 = vmax.xlane.f32.xlu2 %v754_v46 }
 0x214   : > { %v477_v57 = vpop.f32.mrf.mxu1 }
 0x215   : > { %446 = vperm.xlu0 %1159, %v1353_v48  }
 0x217   : > { %v749_v50 = vpop.f32.mrf.mxu0 }
 0x218   : > { %v1360_v51 = vadd.f32 %v1308_v4, %v749_v50  ;;  %v428_v50 = vld [vmem:[#allocation3 + $0x8] sm:$0xff] }
 0x21a   : > { %v757_v53 = vsel %vm396_vm2, %v1360_v51, -inf }
 0x21b   : > { %516 = vmax.xlane.f32.xlu2 %v515_v52  ;;  %758 = vmax.xlane.f32.xlu1 %v757_v53 }
 0x21c   : > { %v626_v60 = vpop.f32.mrf.mxu1 }
 0x21d   : > { %1161 = vset.pattern.permute.xlu0 %v1244_v58  ;;  %v1373_v61 = vadd.f32 %v1308_v4, %v626_v60 }
 0x21f   : > { %v633_v62 = vsel %vm396_vm2, %v1373_v61, -inf }
 0x224   : > { %v628_v20 = vpop.f32.mrf.mxu1 }
 0x225   : > { %v1391_v21 = vadd.f32 %v1308_v4, %v628_v20 }
 0x227   : > { %v636_v24 = vsel %vm396_vm2, %v1391_v21, -inf }
 0x233   : > { %451 = vperm.xlu2 %1158, %v1366_v55  }
 0x23b   : > { %1163 = vset.pattern.permute.xlu2 %v1245_v25 }
 0x25c   : > { %432 = vadd.xlane.f32.xlu2 %v431_v59 }
 0x264   : > { %634 = vmax.xlane.f32.xlu2 %v633_v62 }
 0x274   : > { %v514_v0 = vpop.xlane.xlu0 %513 }
 0x275   : > { %v518_v1 = vmax.f32 %v510_v63, %v514_v0 }
 0x277   : > { %605 = vst.msk [vmem:[#allocation2] sm:$0xff] %vm554_vm4, %v518_v1  ;;  %528 = vperm.xlu1 %1160, %v518_v1   ;;  %v520_v10 = vsub.f32 %v510_v63, %v518_v1 }
 0x279   : > { %v522_v12 = vmul.f32 1.442695, %v520_v10 }
 0x27b   : > { %1186 = vpow2.f32 %v522_v12 }
 0x27c   : > { %572 = vrot.lane.b32.xlu2 %v1331_v23, %s1238_s29 }
 0x27e   : > { %v631_v30 = vld [vmem:[#allocation2] sm:$0xff] }
 0x27f   : > { %1162 = vset.pattern.permute.xlu1 %v1245_v25 }
 0x281   : > { %v1385_v18 = vpop.eup %1186 }
 0x286   : > { %v756_v2 = vpop.xlane.xlu2 %755 }
 0x287   : > { %v447_v3 = vpop.permute.xlu0 %446 }
 0x288   : > { %v454_v5 = vmul.f32 0.0, %v447_v3 }
 0x28a   : > { %v480_v6 = vadd.f32 %v475_v56, %v454_v5 }
 0x28c   : > { %482 = vst.msk [vmem:[#allocation4] sm:$0xff] %vm373_vm0, %v480_v6 }
 0x28e   : > { %v517_v7 = vpop.xlane.xlu2 %516  ;;  %v759_v36 = vpop.xlane.xlu1 %758 }
 0x28f   : > { %v519_v9 = vmax.f32 %v511_v8, %v517_v7 }
 0x291   : > { %606 = vst.msk [vmem:[#allocation2 + $0x8] sm:$0xff] %vm554_vm4, %v519_v9  ;;  %533 = vperm.xlu0 %1161, %v519_v9   ;;  %v521_v16 = vsub.f32 %v511_v8, %v519_v9 }
 0x293   : > { %v524_v17 = vmul.f32 1.442695, %v521_v16 }
 0x295   : > { %1188 = vpow2.f32 %v524_v17 }
 0x296   : > { %v452_v13 = vpop.permute.xlu2 %451 }
 0x297   : > { %v455_v14 = vmul.f32 0.0, %v452_v13 }
 0x298   : > { %v632_v53 = vld [vmem:[#allocation2 + $0x8] sm:$0xff] }
 0x299   : > { %v481_v15 = vadd.f32 %v477_v57, %v455_v14  ;;  %814 = vrot.lane.b32.xlu0 %v1331_v23, %s1243_s5 }
 0x29b   : > { %483 = vst.msk [vmem:[#allocation4 + $0x8] sm:$0xff] %vm373_vm0, %v481_v15  ;;  %v1393_v22 = vpop.eup %1188 }
 0x2a1   : > { %435 = vadd.xlane.f32.xlu1 %v434_v19  ;;  %561 = vperm.xlu0 %1161, %v1385_v18  }
 0x2a9   : > { %637 = vmax.xlane.f32.xlu1 %v636_v24  ;;  %566 = vperm.xlu0 %1161, %v1393_v22  }
 0x2b1   : > { %1169 = vset.pattern.permute.xlu0 %v1246_v43 }
 0x2cf   : > { %v433_v28 = vpop.xlane.xlu2 %432 }
 0x2d0   : > { %v437_v29 = vadd.f32 %v433_v28, %v429_v27 }
 0x2d2   : > { %440 = vst.msk [vmem:[#allocation3] sm:$0xff] %vm439_vm3, %v437_v29 }
 0x2d7   : > { %v635_v4 = vpop.xlane.xlu2 %634 }
 0x2d8   : > { %v639_v31 = vmax.f32 %v631_v30, %v635_v4 }
 0x2da   : > { %v641_v32 = vsub.f32 %v631_v30, %v639_v31  ;;  %726 = vst.msk [vmem:[#allocation2] sm:$0xff] %vm675_vm5, %v639_v31  ;;  %649 = vperm.xlu1 %1162, %v639_v31  }
 0x2dc   : > { %v643_v3 = vmul.f32 1.442695, %v641_v32 }
 0x2df   : > { %v573_v35 = vpop.permute.xlu2 %572 }
 0x2e0   : > { %585 = vmatpush.bf16.msra.mxu3 %v573_v35 }
 0x2e1   : > { %v1403_v33 = vld [vmem:[#allocation2] sm:$0xff] }
 0x2e2   : > { %693 = vrot.lane.b32.xlu1 %v1331_v23, %s1240_s30  ;;  %v1408_v34 = vmax.f32 %v1403_v33, %v756_v2 }
 0x2e3   : > { %1165 = vset.pattern.permute.xlu1 %v1246_v43 }
 0x2e4   : > { %847 = vst.msk [vmem:[#allocation2] sm:$0xff] %vm796_vm6, %v1408_v34  ;;  %v762_v20 = vsub.f32 %v1403_v33, %v1408_v34 }
 0x2e6   : > { %v764_v29 = vmul.f32 1.442695, %v762_v20 }
 0x2e9   : > { %v529_v37 = vpop.permute.xlu1 %528 }
 0x2ea   : > { %v536_v38 = vsub.f32 %v1344_v41, %v529_v37  ;;  %v430_v41 = vmul.f32 %v1366_v55, %v428_v50 }
 0x2ec   : > { %v538_v39 = vmul.f32 1.442695, %v536_v38 }
 0x2ee   : > { %1190 = vpow2.f32 %v538_v39 }
 0x2f4   : > { %v1191_v46 = vpop.eup %1190 }
 0x2f5   : > { %v546_v63 = vsel %vm396_vm2, %v1191_v46, 0.0 }
 0x303   : > { %v534_v40 = vpop.permute.xlu0 %533 }
 0x304   : > { %v537_v42 = vsub.f32 %v1357_v49, %v534_v40 }
 0x306   : > { %v540_v23 = vmul.f32 1.442695, %v537_v42 }
 0x308   : > { %1192 = vpow2.f32 %v540_v23 }
 0x30b   : > { %v815_v44 = vpop.permute.xlu0 %814 }
 0x30c   : > { %827 = vmatpush.bf16.msrb.mxu2 %v815_v44 }
 0x30e   : > { %v1193_v47 = vpop.eup %1192 }
 0x30f   : > { %v571_v48 = vpack.c.bf16 %v1193_v47, %v1191_v46  ;;  %v549_v0 = vsel %vm396_vm2, %v1193_v47, 0.0  ;;  %v557_v47 = vld [vmem:[#allocation4] sm:$0xff] }
 0x311   : > { %1110 = vmatmul.msk.bf16.vlgmr.msra.gmra.mxu3 %vm396_vm2, %v571_v48 }
 0x314   : > { %v436_v52 = vpop.xlane.xlu1 %435 }
 0x315   : > { %v438_v49 = vadd.f32 %v436_v52, %v430_v41 }
 0x317   : > { %441 = vst.msk [vmem:[#allocation3 + $0x8] sm:$0xff] %vm439_vm3, %v438_v49 }
 0x31c   : > { %v638_v54 = vpop.xlane.xlu1 %637 }
 0x31d   : > { %v640_v56 = vmax.f32 %v632_v53, %v638_v54  ;;  %v558_v54 = vld [vmem:[#allocation4 + $0x8] sm:$0xff] }
 0x31f   : > { %v642_v57 = vsub.f32 %v632_v53, %v640_v56  ;;  %727 = vst.msk [vmem:[#allocation2 + $0x8] sm:$0xff] %vm675_vm5, %v640_v56  ;;  %654 = vperm.xlu2 %1163, %v640_v56  }
 0x321   : > { %v645_v2 = vmul.f32 1.442695, %v642_v57 }
 0x323   : > { %1194 = vpow2.f32 %v645_v2 }
 0x324   : > { %1196 = vpow2.f32 %v643_v3 }
 0x326   : > { %v1420_v59 = vld [vmem:[#allocation2 + $0x8] sm:$0xff] }
 0x327   : > { %1164 = vset.pattern.permute.xlu2 %v1246_v43  ;;  %v1424_v60 = vmax.f32 %v1420_v59, %v759_v36 }
 0x328   : > { %770 = vperm.xlu2 %1164, %v1408_v34  }
 0x329   : > { %v763_v55 = vsub.f32 %v1420_v59, %v1424_v60  ;;  %848 = vst.msk [vmem:[#allocation2 + $0x8] sm:$0xff] %vm796_vm6, %v1424_v60  ;;  %775 = vperm.xlu1 %1165, %v1424_v60   ;;  %v1436_v5 = vpop.eup %1194 }
 0x32a   : > { %v1439_v6 = vpop.eup %1196 }
 0x330   : > { %1167 = vset.pattern.permute.xlu2 %v1245_v25 }
 0x331   : > { %1166 = vset.pattern.permute.xlu1 %v1245_v25 }
 0x34c   : > { %v650_v62 = vpop.permute.xlu1 %649 }
 0x34d   : > { %v657_v7 = vsub.f32 %v1373_v61, %v650_v62 }
 0x34f   : > { %v659_v8 = vmul.f32 1.442695, %v657_v7 }
 0x351   : > { %547 = vadd.xlane.f32.xlu2 %v546_v63  ;;  %1198 = vpow2.f32 %v659_v8 }
 0x353   : > { %550 = vadd.xlane.f32.xlu1 %v549_v0 }
 0x354   : > { %v694_v1 = vpop.permute.xlu1 %693 }
 0x355   : > { %706 = vmatpush.bf16.msrb.mxu3 %v694_v1 }
 0x357   : > { %v1199_v13 = vpop.eup %1198 }
 0x358   : > { %v667_v38 = vsel %vm396_vm2, %v1199_v13, 0.0 }
 0x369   : > { %687 = vperm.xlu2 %1167, %v1436_v5  }
 0x36c   : > { %682 = vperm.xlu1 %1166, %v1439_v6  }
 0x371   : > { %1168 = vset.pattern.permute.xlu2 %v1246_v43 }
 0x374   : > { %1171 = vset.pattern.permute.xlu1 %v1244_v58 }
 0x379   : > { %v655_v9 = vpop.permute.xlu2 %654 }
 0x37a   : > { %v658_v10 = vsub.f32 %v1391_v21, %v655_v9 }
 0x37c   : > { %v661_v12 = vmul.f32 1.442695, %v658_v10 }
 0x37e   : > { %1200 = vpow2.f32 %v661_v12 }
 0x382   : > { %v771_v17 = vpop.permute.xlu2 %770 }
 0x383   : > { %v778_v61 = vsub.f32 %v1349_v45, %v771_v17  ;;  %v542_v45 = vld [vmem:[#allocation3] sm:$0xff] }
 0x384   : > { %v1201_v14 = vpop.eup %1200  ;;  %v544_v33 = vmul.f32 %v1385_v18, %v542_v45 }
 0x385   : > { %v692_v15 = vpack.c.bf16 %v1201_v14, %v1199_v13  ;;  %v670_v16 = vsel %vm396_vm2, %v1201_v14, 0.0  ;;  %v780_v21 = vmul.f32 1.442695, %v778_v61 }
 0x387   : > { %1112 = vmatmul.msk.bf16.vlgmr.msrb.gmra.mxu3 %vm396_vm2, %v692_v15  ;;  %1202 = vpow2.f32 %v780_v21 }
 0x38d   : > { %v1203_v4 = vpop.eup %1202 }
 0x38e   : > { %v788_v60 = vsel %vm396_vm2, %v1203_v4, 0.0 }
 0x392   : > { %671 = vadd.xlane.f32.xlu2 %v670_v16 }
 0x394   : > { %v587_v19 = vpop.f32.mrf.mxu3 }
 0x395   : > { %594 = vrot.lane.b32.xlu0 %v587_v19, %s1243_s5 }
 0x39b   : > { %v776_v24 = vpop.permute.xlu1 %775 }
 0x39c   : > { %v779_v26 = vsub.f32 %v1360_v51, %v776_v24  ;;  %v589_v27 = vpop.f32.mrf.mxu3  ;;  %v543_v51 = vld [vmem:[#allocation3 + $0x8] sm:$0xff] }
 0x39d   : > { %596 = vrot.lane.b32.xlu0 %v589_v27, %s1243_s5  ;;  %v545_v36 = vmul.f32 %v1393_v22, %v543_v51  ;;  %v562_v22 = vpop.permute.xlu0 %561 }
 0x39e   : > { %v782_v28 = vmul.f32 1.442695, %v779_v26  ;;  %v569_v50 = vmul.f32 %v562_v22, %v557_v47 }
 0x3a0   : > { %1204 = vpow2.f32 %v782_v28 }
 0x3a1   : > { %1206 = vpow2.f32 %v764_v29 }
 0x3a5   : > { %v567_v23 = vpop.permute.xlu0 %566 }
 0x3a6   : > { %v1205_v30 = vpop.eup %1204  ;;  %v570_v56 = vmul.f32 %v567_v23, %v558_v54 }
 0x3a7   : > { %v813_v31 = vpack.c.bf16 %v1205_v30, %v1203_v4  ;;  %v1454_v32 = vpop.eup %1206  ;;  %v791_v40 = vsel %vm396_vm2, %v1205_v30, 0.0 }
 0x3a9   : > { %1114 = vmatmul.msk.bf16.vlgmr.msrb.gmra.mxu2 %vm396_vm2, %v813_v31 }
 0x3aa   : > { %803 = vperm.xlu2 %1168, %v1454_v32  }
 0x3b2   : > { %1170 = vset.pattern.permute.xlu2 %v1241_v11  ;;  %v766_v11 = vmul.f32 1.442695, %v763_v55 }
 0x3b4   : > { %1208 = vpow2.f32 %v766_v11 }
 0x3ba   : > { %v1209_v18 = vpop.eup %1208 }
 0x3c4   : > { %v548_v34 = vpop.xlane.xlu2 %547 }
 0x3c5   : > { %v552_v35 = vadd.f32 %v548_v34, %v544_v33 }
 0x3c6   : > { %v551_v37 = vpop.xlane.xlu1 %550 }
 0x3c7   : > { %555 = vst.msk [vmem:[#allocation3] sm:$0xff] %vm554_vm4, %v552_v35  ;;  %v553_v39 = vadd.f32 %v551_v37, %v545_v36  ;;  %668 = vadd.xlane.f32.xlu0 %v667_v38 }
 0x3c9   : > { %556 = vst.msk [vmem:[#allocation3 + $0x8] sm:$0xff] %vm554_vm4, %v553_v39 }
 0x3cc   : > { %v1469_v42 = vpop.permute.xlu2 %687 }
 0x3ce   : > { %v663_v55 = vld [vmem:[#allocation3] sm:$0xff] }
 0x3cf   : > { %792 = vadd.xlane.f32.xlu0 %v791_v40  ;;  %v665_v62 = vmul.f32 %v1439_v6, %v663_v55 }
 0x3d0   : > { %v664_v44 = vld [vmem:[#allocation3 + $0x8] sm:$0xff] }
 0x3d1   : > { %v666_v46 = vmul.f32 %v1436_v5, %v664_v44 }
 0x3de   : > { %v683_v7 = vpop.permute.xlu1 %682 }
 0x3e3   : > { %808 = vperm.xlu0 %1169, %v1209_v18  }
 0x3eb   : > { %1172 = vset.pattern.permute.xlu0 %v1245_v25 }
 0x405   : > { %v672_v48 = vpop.xlane.xlu2 %671 }
 0x406   : > { %v674_v41 = vadd.f32 %v672_v48, %v666_v46 }
 0x407   : > { %v595_v52 = vpop.permute.xlu0 %594 }
 0x408   : > { %677 = vst.msk [vmem:[#allocation3 + $0x8] sm:$0xff] %vm675_vm5, %v674_v41  ;;  %v600_v49 = vadd.f32 %v595_v52, %v569_v50 }
 0x40a   : > { %603 = vst.msk [vmem:[#allocation4] sm:$0xff] %vm602_vm7, %v600_v49  ;;  %v708_v53 = vpop.f32.mrf.mxu3 }
 0x40b   : > { %715 = vrot.lane.b32.xlu1 %v708_v53, %s1240_s30 }
 0x40d   : > { %v804_v26 = vpop.permute.xlu2 %803 }
 0x40f   : > { %v597_v57 = vpop.permute.xlu0 %596  ;;  %v785_v1 = vld [vmem:[#allocation3 + $0x8] sm:$0xff] }
 0x410   : > { %v601_v59 = vadd.f32 %v597_v57, %v570_v56  ;;  %v787_v2 = vmul.f32 %v1209_v18, %v785_v1 }
 0x411   : > { %v678_v8 = vld [vmem:[#allocation4] sm:$0xff] }
 0x412   : > { %604 = vst.msk [vmem:[#allocation4 + $0x8] sm:$0xff] %vm602_vm7, %v601_v59  ;;  %v690_v9 = vmul.f32 %v683_v7, %v678_v8  ;;  %v710_v20 = vpop.f32.mrf.mxu3 }
 0x419   : > { %v679_v28 = vld [vmem:[#allocation4 + $0x8] sm:$0xff] }
 0x41a   : > { %v691_v29 = vmul.f32 %v1469_v42, %v679_v28 }
 0x42c   : > { %v829_v21 = vpop.f32.mrf.mxu2 }
 0x434   : > { %v831_v24 = vpop.f32.mrf.mxu2 }
 0x435   : > { %789 = vadd.xlane.f32.xlu1 %v788_v60 }
 0x43a   : > { %v669_v63 = vpop.xlane.xlu0 %668 }
 0x43b   : > { %v673_v0 = vadd.f32 %v669_v63, %v665_v62 }
 0x43d   : > { %676 = vst.msk [vmem:[#allocation3] sm:$0xff] %vm675_vm5, %v673_v0 }
 0x442   : > { %v793_v3 = vpop.xlane.xlu0 %792 }
 0x443   : > { %v795_v5 = vadd.f32 %v793_v3, %v787_v2 }
 0x444   : > { %v784_v13 = vld [vmem:[#allocation3] sm:$0xff] }
 0x445   : > { %798 = vst.msk [vmem:[#allocation3 + $0x8] sm:$0xff] %vm796_vm6, %v795_v5  ;;  %v786_v6 = vmul.f32 %v1454_v32, %v784_v13 }
 0x44c   : > { %v924_v19 = vld [vmem:[#allocation3 + $0x8] sm:$0xff] }
 0x47d   : > { %v716_v10 = vpop.permute.xlu1 %715 }
 0x47e   : > { %v721_v12 = vadd.f32 %v716_v10, %v690_v9 }
 0x480   : > { %724 = vst.msk [vmem:[#allocation4] sm:$0xff] %vm723_vm8, %v721_v12 }
 0x4a8   : > { %v790_v14 = vpop.xlane.xlu1 %789 }
 0x4a9   : > { %v794_v15 = vadd.f32 %v790_v14, %v786_v6 }
 0x4ab   : > { %797 = vst.msk [vmem:[#allocation3] sm:$0xff] %vm796_vm6, %v794_v15 }
 0x4b2   : > { %v900_v16 = vld [vmem:[#allocation3] sm:$0xff] }
 0x4b3   : > { %1210 = vrcp.f32 %v900_v16 }
 0x4b4   : > { %1212 = vrcp.f32 %v924_v19 }
 0x4b9   : > { %v1211_v17 = vpop.eup %1210 }
 0x4ba   : > { %906 = vperm.xlu0 %1172, %v1211_v17   ;;  %883 = vperm.xlu1 %1171, %v1211_v17   ;;  %v1213_v61 = vpop.eup %1212 }
 0x4bb   : > { %860 = vperm.xlu2 %1170, %v1211_v17  }
 0x4c2   : > { %1176 = vset.pattern.permute.xlu0 %v1246_v43 }
 0x4c3   : > { %717 = vrot.lane.b32.xlu2 %v710_v20, %s1240_s30  ;;  %934 = vperm.xlu0 %1176, %v1213_v61  }
 0x4cb   : > { %836 = vrot.lane.b32.xlu2 %v829_v21, %s1238_s29 }
 0x4d3   : > { %865 = vperm.xlu2 %1170, %v1213_v61  }
 0x4db   : > { %1173 = vset.pattern.permute.xlu2 %v1244_v58  ;;  %v799_v58 = vld [vmem:[#allocation4] sm:$0xff] }
 0x4dc   : > { %888 = vperm.xlu2 %1173, %v1213_v61   ;;  %v811_v31 = vmul.f32 %v804_v26, %v799_v58 }
 0x4e4   : > { %838 = vrot.lane.b32.xlu2 %v831_v24, %s1238_s29 }
 0x4e5   : > { %1174 = vset.pattern.permute.xlu2 %v1245_v25  ;;  %v809_v25 = vpop.permute.xlu0 %808 }
 0x4ec   : > { %911 = vperm.xlu2 %1174, %v1213_v61  }
 0x4f4   : > { %1175 = vset.pattern.permute.xlu2 %v1246_v43 }
 0x4f5   : > { %929 = vperm.xlu2 %1175, %v1211_v17  }
 0x515   : > { %v861_v27 = vpop.permute.xlu2 %860 }
 0x51d   : > { %v718_v4 = vpop.permute.xlu2 %717 }
 0x51e   : > { %v722_v30 = vadd.f32 %v718_v4, %v691_v29 }
 0x520   : > { %725 = vst.msk [vmem:[#allocation4 + $0x8] sm:$0xff] %vm723_vm8, %v722_v30 }
 0x525   : > { %v837_v32 = vpop.permute.xlu2 %836 }
 0x526   : > { %v842_v45 = vadd.f32 %v837_v32, %v811_v31 }
 0x527   : > { %v800_v18 = vld [vmem:[#allocation4 + $0x8] sm:$0xff] }
 0x528   : > { %845 = vst.msk [vmem:[#allocation4] sm:$0xff] %vm844_vm9, %v842_v45  ;;  %v812_v22 = vmul.f32 %v809_v25, %v800_v18 }
 0x52c   : > { %v884_v51 = vpop.permute.xlu1 %883  ;;  %v907_v34 = vpop.permute.xlu0 %906 }
 0x52d   : > { %v866_v43 = vpop.permute.xlu2 %865 }
 0x52f   : > { %v852_v33 = vld [vmem:[#allocation4] sm:$0xff] }
 0x530   : > { %v868_v35 = vmul.f32 %v861_v27, %v852_v33  ;;  %v891_v36 = vmul.f32 %v884_v51, %v852_v33  ;;  %v914_v37 = vmul.f32 %v907_v34, %v852_v33 }
 0x532   : > { %v870_v38 = vpack.c.bf16 %v868_v35, %v868_v35  ;;  %v893_v39 = vpack.c.bf16 %v891_v36, %v891_v36  ;;  %v916_v40 = vpack.c.bf16 %v914_v37, %v914_v37 }
 0x534   : > { %873 = vst.msk [vmem:[%s1495_s11] sm:$0xf] %vm872_vm10, %v870_v38 }
 0x535   : > { %896 = vst.msk [vmem:[%s1495_s11] sm:$0xf] %vm895_vm11, %v893_v39  ;;  %v935_v47 = vpop.permute.xlu0 %934 }
 0x536   : > { %919 = vst.msk [vmem:[%s1495_s11] sm:$0xf] %vm918_vm12, %v916_v40  ;;  %v889_v11 = vpop.permute.xlu2 %888 }
 0x53e   : > { %v839_v42 = vpop.permute.xlu2 %838 }
 0x53f   : > { %v843_v23 = vadd.f32 %v839_v42, %v812_v22 }
 0x541   : > { %846 = vst.msk [vmem:[#allocation4 + $0x8] sm:$0xff] %vm844_vm9, %v843_v23 }
 0x546   : > { %v912_v44 = vpop.permute.xlu2 %911 }
 0x548   : > { %v853_v46 = vld [vmem:[#allocation4 + $0x8] sm:$0xff] }
 0x549   : > { %v869_v48 = vmul.f32 %v866_v43, %v853_v46  ;;  %v892_v50 = vmul.f32 %v889_v11, %v853_v46  ;;  %v915_v41 = vmul.f32 %v912_v44, %v853_v46  ;;  %v938_v52 = vmul.f32 %v935_v47, %v853_v46 }
 0x54b   : > { %v871_v49 = vpack.c.bf16 %v869_v48, %v869_v48  ;;  %v894_v53 = vpack.c.bf16 %v892_v50, %v892_v50  ;;  %v917_v54 = vpack.c.bf16 %v915_v41, %v915_v41  ;;  %v940_v56 = vpack.c.bf16 %v938_v52, %v938_v52 }
 0x54d   : > { %874 = vst.msk [vmem:[%s1495_s11 + $0x4] sm:$0xf] %vm872_vm10, %v871_v49 }
 0x54e   : > { %897 = vst.msk [vmem:[%s1495_s11 + $0x4] sm:$0xf] %vm895_vm11, %v894_v53 }
 0x54f   : > { %920 = vst.msk [vmem:[%s1495_s11 + $0x4] sm:$0xf] %vm918_vm12, %v917_v54  ;;  %v930_v57 = vpop.permute.xlu2 %929 }
 0x550   : > { %943 = vst.msk [vmem:[%s1495_s11 + $0x4] sm:$0xf] %vm941_vm13, %v940_v56  ;;  %v937_v59 = vmul.f32 %v930_v57, %v852_v33 }
 0x552   : > { %v939_v60 = vpack.c.bf16 %v937_v59, %v937_v59 }
 0x554   : > { %942 = vst.msk [vmem:[%s1495_s11] sm:$0xf] %vm941_vm13, %v939_v60 }
 0x555 PF: > { %s14_s17 = sadd.s32 1, %s1236_s17   ;;  %s1526_s15 = smov %s1232_s16 }
 0x556   : > { %p11_p5 = scmp.ge.s32.totalorder %s14_s17, 4   ;;  %s1527_s16 = smov %s1529_s18 }
 0x558   :  { %13 = sbr.rel (!%p11_p5) target bundleno = 2 (0x2), region = 83 }

// kernel: pretrain_esm_forward.25
= control target key start
LH: loop header
LB: loop body
LE: loop exit
PB: predicated region body
PF: predicated region fallthrough
CT: control target
= control target key end

     0   :  { %s324_s1 = inlined_call_operand.vmem [shape: bf16[128,128], index: 1, kind: input, shape index: {}]   ;;  %s325_s2 = inlined_call_operand.vmem [shape: f32[1,128], index: 2, kind: input, shape index: {}]   ;;  %s326_s0 = inlined_call_operand.vmem [shape: bf16[32,128], index: 0, kind: input, shape index: {}]   ;;  %s327_s3 = inlined_call_operand.vmem [shape: bf16[32,128], index: 3, kind: input, shape index: {}]   ;;  %s328_s4 = inlined_call_operand.vmem [shape: bf16[32,128], index: 4, kind: output, shape index: {}]  }
   0x1   :  { %v224_v0 = vld [vmem:[%s324_s1 + $0x38] sm:$0xff]  ;;  %v223_v1 = vld [vmem:[%s324_s1 + $0x30] sm:$0xff]  ;;  %v222_v2 = vld [vmem:[%s324_s1 + $0x28] sm:$0xff] }
   0x2   :  { %109 = vmatpush.bf16.msra.mxu0 %v224_v0  ;;  %245 = vmatpush.bf16.msra.mxu1 %v224_v0  ;;  %v221_v3 = vld [vmem:[%s324_s1 + $0x20] sm:$0xff]  ;;  %v220_v4 = vld [vmem:[%s324_s1 + $0x18] sm:$0xff]  ;;  %v219_v5 = vld [vmem:[%s324_s1 + $0x10] sm:$0xff] }
   0x3   :  { %v218_v6 = vld [vmem:[%s324_s1 + $0x8] sm:$0xff]  ;;  %v217_v7 = vld [vmem:[%s324_s1] sm:$0xff] }
   0x4   :  { %v215_v8 = vld [vmem:[%s326_s0] sm:$0xff]  ;;  %v216_v9 = vld [vmem:[%s326_s0 + $0x8] sm:$0xff] }
   0x5   :  { %v253_v12 = vld [vmem:[%s325_s2] ss:$0 sm:$0xff]  ;;  %v243_v14 = vld [vmem:[%s327_s3 + $0x8] sm:$0xff]  }
   0x6   :  { %110 = vmatpush.bf16.msra.mxu0 %v223_v1  ;;  %246 = vmatpush.bf16.msra.mxu1 %v223_v1  ;;  %v226_v13 = vld [vmem:[%s327_s3] sm:$0xff]   ;;  %v231_v16 = vunpack.c.l.bf16 %v243_v14  ;;  %v232_v20 = vunpack.c.h.bf16 %v243_v14 }
   0x7   :  { %v227_v15 = vunpack.c.l.bf16 %v226_v13  ;;  %v228_v19 = vunpack.c.h.bf16 %v226_v13 }
   0xa   :  { %111 = vmatpush.bf16.msra.mxu0 %v222_v2  ;;  %247 = vmatpush.bf16.msra.mxu1 %v222_v2 }
   0xe   :  { %112 = vmatpush.bf16.msra.mxu0 %v221_v3  ;;  %248 = vmatpush.bf16.msra.mxu1 %v221_v3 }
  0x12   :  { %113 = vmatpush.bf16.msra.mxu0 %v220_v4  ;;  %249 = vmatpush.bf16.msra.mxu1 %v220_v4 }
  0x16   :  { %114 = vmatpush.bf16.msra.mxu0 %v219_v5  ;;  %250 = vmatpush.bf16.msra.mxu1 %v219_v5 }
  0x1a   :  { %115 = vmatpush.bf16.msra.mxu0 %v218_v6  ;;  %251 = vmatpush.bf16.msra.mxu1 %v218_v6 }
  0x1e   :  { %116 = vmatpush.bf16.msra.mxu0 %v217_v7  ;;  %252 = vmatpush.bf16.msra.mxu1 %v217_v7 }
  0x21   :  { %117 = vmatmul.bf16.vlgmr.msra.gmra.mxu0 %v215_v8  ;;  %122 = vmatmul.bf16.vlgmr.msra.gmra.mxu1 %v216_v9 }
  0x9e   :  { %v118_v10 = vpop.f32.mrf.mxu0  ;;  %v123_v11 = vpop.f32.mrf.mxu1 }
  0x9f   :  { %v147_v17 = vadd.f32 %v253_v12, %v118_v10  ;;  %v149_v18 = vadd.f32 %v253_v12, %v123_v11 }
  0xa1   :  { %v159_v25 = vadd.f32 %v227_v15, %v147_v17  ;;  %v161_v26 = vadd.f32 %v231_v16, %v149_v18 }
  0xa6   :  { %v120_v21 = vpop.f32.mrf.mxu0  ;;  %v125_v22 = vpop.f32.mrf.mxu1 }
  0xa7   :  { %v148_v23 = vadd.f32 %v253_v12, %v120_v21  ;;  %v150_v24 = vadd.f32 %v253_v12, %v125_v22 }
  0xa9   :  { %v160_v27 = vadd.f32 %v228_v19, %v148_v23  ;;  %v162_v28 = vadd.f32 %v232_v20, %v150_v24 }
  0xab   :  { %v236_v29 = vpack.c.bf16 %v160_v27, %v159_v25  ;;  %v241_v30 = vpack.c.bf16 %v162_v28, %v161_v26 }
  0xad   :  { %237 = vst [vmem:[%s328_s4] sm:$0xff] %v236_v29  }
  0xae   :  { %244 = vst [vmem:[%s328_s4 + $0x8] sm:$0xff] %v241_v30  }

// kernel: pretrain_esm_forward.27
= control target key start
LH: loop header
LB: loop body
LE: loop exit
PB: predicated region body
PF: predicated region fallthrough
CT: control target
= control target key end

     0   :  { %s617_s1 = inlined_call_operand.vmem [shape: bf16[128,256], index: 1, kind: input, shape index: {}]   ;;  %s618_s0 = inlined_call_operand.vmem [shape: bf16[32,128], index: 0, kind: input, shape index: {}]   ;;  %s619_s2 = inlined_call_operand.vmem [shape: f32[1,256], index: 2, kind: input, shape index: {}]   ;;  %s620_s3 = inlined_call_operand.vmem [shape: bf16[32,256], index: 3, kind: output, shape index: {}]  }
   0x1   :  { %v375_v0 = vld [vmem:[%s617_s1 + $0x70] sm:$0xf]  ;;  %v398_v1 = vld [vmem:[%s617_s1 + $0x74] sm:$0xf0]  ;;  %v397_v2 = vld [vmem:[%s617_s1 + $0x74] sm:$0xf] }
   0x2   :  { %v376_v3 = vor.u32 %v398_v1, %v375_v0  ;;  %v377_v4 = vld [vmem:[%s617_s1 + $0x78] sm:$0xf0]  ;;  %v367_v5 = vld [vmem:[%s617_s1 + $0x60] sm:$0xf]  ;;  %v396_v6 = vld [vmem:[%s617_s1 + $0x64] sm:$0xf0] }
   0x3   :  { %v380_v7 = vor.u32 %v397_v2, %v377_v4  ;;  %v395_v8 = vld [vmem:[%s617_s1 + $0x64] sm:$0xf]  ;;  %v369_v9 = vld [vmem:[%s617_s1 + $0x68] sm:$0xf0]  ;;  %v368_v10 = vor.u32 %v396_v6, %v367_v5  ;;  %v359_v12 = vld [vmem:[%s617_s1 + $0x50] sm:$0xf] }
   0x4   :  { %146 = vmatpush.bf16.msra.mxu0 %v376_v3  ;;  %399 = vmatpush.bf16.msra.mxu2 %v376_v3  ;;  %v372_v11 = vor.u32 %v395_v8, %v369_v9  ;;  %v394_v13 = vld [vmem:[%s617_s1 + $0x54] sm:$0xf0]  ;;  %v393_v14 = vld [vmem:[%s617_s1 + $0x54] sm:$0xf]  ;;  %v361_v15 = vld [vmem:[%s617_s1 + $0x58] sm:$0xf0] }
   0x5   :  { %165 = vmatpush.bf16.msra.mxu1 %v380_v7  ;;  %407 = vmatpush.bf16.msra.mxu3 %v380_v7  ;;  %v360_v16 = vor.u32 %v394_v13, %v359_v12  ;;  %v364_v17 = vor.u32 %v393_v14, %v361_v15  ;;  %v351_v18 = vld [vmem:[%s617_s1 + $0x40] sm:$0xf]  ;;  %v392_v19 = vld [vmem:[%s617_s1 + $0x44] sm:$0xf0]  ;;  %v391_v20 = vld [vmem:[%s617_s1 + $0x44] sm:$0xf] }
   0x6   :  { %v353_v21 = vld [vmem:[%s617_s1 + $0x48] sm:$0xf0]  ;;  %v352_v22 = vor.u32 %v392_v19, %v351_v18  ;;  %v343_v24 = vld [vmem:[%s617_s1 + $0x30] sm:$0xf]  ;;  %v390_v25 = vld [vmem:[%s617_s1 + $0x34] sm:$0xf0] }
   0x7   :  { %v356_v23 = vor.u32 %v391_v20, %v353_v21  ;;  %v389_v26 = vld [vmem:[%s617_s1 + $0x34] sm:$0xf]  ;;  %v345_v27 = vld [vmem:[%s617_s1 + $0x38] sm:$0xf0]  ;;  %v344_v28 = vor.u32 %v390_v25, %v343_v24  ;;  %v335_v30 = vld [vmem:[%s617_s1 + $0x20] sm:$0xf] }
   0x8   :  { %147 = vmatpush.bf16.msra.mxu0 %v368_v10  ;;  %400 = vmatpush.bf16.msra.mxu2 %v368_v10  ;;  %v348_v29 = vor.u32 %v389_v26, %v345_v27  ;;  %v388_v31 = vld [vmem:[%s617_s1 + $0x24] sm:$0xf0]  ;;  %v387_v32 = vld [vmem:[%s617_s1 + $0x24] sm:$0xf]  ;;  %v337_v33 = vld [vmem:[%s617_s1 + $0x28] sm:$0xf0] }
   0x9   :  { %166 = vmatpush.bf16.msra.mxu1 %v372_v11  ;;  %408 = vmatpush.bf16.msra.mxu3 %v372_v11  ;;  %v336_v34 = vor.u32 %v388_v31, %v335_v30  ;;  %v340_v35 = vor.u32 %v387_v32, %v337_v33  ;;  %v327_v36 = vld [vmem:[%s617_s1 + $0x10] sm:$0xf]  ;;  %v386_v37 = vld [vmem:[%s617_s1 + $0x14] sm:$0xf0]  ;;  %v385_v38 = vld [vmem:[%s617_s1 + $0x14] sm:$0xf] }
   0xa   :  { %v329_v39 = vld [vmem:[%s617_s1 + $0x18] sm:$0xf0]  ;;  %v328_v40 = vor.u32 %v386_v37, %v327_v36  ;;  %v319_v42 = vld [vmem:[%s617_s1] sm:$0xf]  ;;  %v384_v43 = vld [vmem:[%s617_s1 + $0x4] sm:$0xf0] }
   0xb   :  { %v332_v41 = vor.u32 %v385_v38, %v329_v39  ;;  %v383_v44 = vld [vmem:[%s617_s1 + $0x4] sm:$0xf]  ;;  %v321_v45 = vld [vmem:[%s617_s1 + $0x8] sm:$0xf0]  ;;  %v320_v46 = vor.u32 %v384_v43, %v319_v42  ;;  %v211_v50 = vld [vmem:[%s619_s2] sm:$0x3] }
   0xc   :  { %148 = vmatpush.bf16.msra.mxu0 %v360_v16  ;;  %401 = vmatpush.bf16.msra.mxu2 %v360_v16  ;;  %v324_v47 = vor.u32 %v383_v44, %v321_v45  ;;  %v381_v48 = vld [vmem:[%s618_s0] sm:$0xff]  ;;  %v382_v49 = vld [vmem:[%s618_s0 + $0x8] sm:$0xff]  ;;  %v213_v51 = vperm.slane %v211_v50, 0  ;;  %v214_v52 = vperm.slane %v211_v50, 1 }
   0xd   :  { %167 = vmatpush.bf16.msra.mxu1 %v364_v17  ;;  %409 = vmatpush.bf16.msra.mxu3 %v364_v17 }
  0x10   :  { %149 = vmatpush.bf16.msra.mxu0 %v352_v22  ;;  %402 = vmatpush.bf16.msra.mxu2 %v352_v22 }
  0x11   :  { %168 = vmatpush.bf16.msra.mxu1 %v356_v23  ;;  %410 = vmatpush.bf16.msra.mxu3 %v356_v23 }
  0x14   :  { %150 = vmatpush.bf16.msra.mxu0 %v344_v28  ;;  %403 = vmatpush.bf16.msra.mxu2 %v344_v28 }
  0x15   :  { %169 = vmatpush.bf16.msra.mxu1 %v348_v29  ;;  %411 = vmatpush.bf16.msra.mxu3 %v348_v29 }
  0x18   :  { %151 = vmatpush.bf16.msra.mxu0 %v336_v34  ;;  %404 = vmatpush.bf16.msra.mxu2 %v336_v34 }
  0x19   :  { %170 = vmatpush.bf16.msra.mxu1 %v340_v35  ;;  %412 = vmatpush.bf16.msra.mxu3 %v340_v35 }
  0x1c   :  { %152 = vmatpush.bf16.msra.mxu0 %v328_v40  ;;  %405 = vmatpush.bf16.msra.mxu2 %v328_v40 }
  0x1d   :  { %171 = vmatpush.bf16.msra.mxu1 %v332_v41  ;;  %413 = vmatpush.bf16.msra.mxu3 %v332_v41 }
  0x20   :  { %153 = vmatpush.bf16.msra.mxu0 %v320_v46  ;;  %406 = vmatpush.bf16.msra.mxu2 %v320_v46 }
  0x21   :  { %172 = vmatpush.bf16.msra.mxu1 %v324_v47  ;;  %414 = vmatpush.bf16.msra.mxu3 %v324_v47 }
  0x23   :  { %154 = vmatmul.bf16.vlgmr.msra.gmra.mxu0 %v381_v48  ;;  %159 = vmatmul.bf16.vlgmr.msra.gmra.mxu2 %v382_v49 }
  0x24   :  { %173 = vmatmul.bf16.vlgmr.msra.gmra.mxu1 %v381_v48  ;;  %178 = vmatmul.bf16.vlgmr.msra.gmra.mxu3 %v382_v49 }
  0xa0   :  { %v155_v53 = vpop.f32.mrf.mxu0 }
  0xa1   :  { %v556_v54 = vadd.f32 %v213_v51, %v155_v53  ;;  %v174_v55 = vpop.f32.mrf.mxu1 }
  0xa2   :  { %v558_v56 = vadd.f32 %v214_v52, %v174_v55 }
  0xa3   :  { %v225_v57 = vmul.f32 %v556_v54, %v556_v54 }
  0xa4   :  { %v226_v58 = vmul.f32 %v558_v56, %v558_v56 }
  0xa5   :  { %v233_v59 = vmul.f32 %v225_v57, %v556_v54 }
  0xa6   :  { %v234_v60 = vmul.f32 %v226_v58, %v558_v56  ;;  %v160_v61 = vpop.f32.mrf.mxu2 }
  0xa7   :  { %v241_v62 = vmul.f32 0.044715, %v233_v59  ;;  %v566_v63 = vadd.f32 %v213_v51, %v160_v61  ;;  %v179_v0 = vpop.f32.mrf.mxu3 }
  0xa8   :  { %v242_v1 = vmul.f32 0.044715, %v234_v60  ;;  %v568_v2 = vadd.f32 %v214_v52, %v179_v0  ;;  %v157_v3 = vpop.f32.mrf.mxu0 }
  0xa9   :  { %v249_v4 = vadd.f32 %v241_v62, %v556_v54  ;;  %v229_v5 = vmul.f32 %v566_v63, %v566_v63  ;;  %v573_v6 = vadd.f32 %v213_v51, %v157_v3  ;;  %v176_v7 = vpop.f32.mrf.mxu1 }
  0xaa   :  { %v250_v8 = vadd.f32 %v242_v1, %v558_v56  ;;  %v230_v9 = vmul.f32 %v568_v2, %v568_v2  ;;  %v578_v10 = vadd.f32 %v214_v52, %v176_v7 }
  0xab   :  { %v257_v11 = vmul.f32 0.7978846, %v249_v4  ;;  %v237_v12 = vmul.f32 %v229_v5, %v566_v63  ;;  %v227_v13 = vmul.f32 %v573_v6, %v573_v6 }
  0xac   :  { %v258_v14 = vmul.f32 0.7978846, %v250_v8  ;;  %v238_v15 = vmul.f32 %v230_v9, %v568_v2  ;;  %v228_v16 = vmul.f32 %v578_v10, %v578_v10 }
  0xad   :  { %415 = vtanh.f32 %v257_v11  ;;  %v245_v17 = vmul.f32 0.044715, %v237_v12  ;;  %v235_v18 = vmul.f32 %v227_v13, %v573_v6 }
  0xae   :  { %417 = vtanh.f32 %v258_v14  ;;  %v246_v19 = vmul.f32 0.044715, %v238_v15  ;;  %v236_v20 = vmul.f32 %v228_v16, %v578_v10  ;;  %v162_v21 = vpop.f32.mrf.mxu2 }
  0xaf   :  { %v253_v22 = vadd.f32 %v245_v17, %v566_v63  ;;  %v243_v23 = vmul.f32 0.044715, %v235_v18  ;;  %v589_v24 = vadd.f32 %v213_v51, %v162_v21  ;;  %v181_v25 = vpop.f32.mrf.mxu3 }
  0xb0   :  { %v254_v26 = vadd.f32 %v246_v19, %v568_v2  ;;  %v244_v27 = vmul.f32 0.044715, %v236_v20  ;;  %v224_v28 = vadd.f32 %v214_v52, %v181_v25 }
  0xb1   :  { %v261_v29 = vmul.f32 0.7978846, %v253_v22  ;;  %v251_v30 = vadd.f32 %v243_v23, %v573_v6  ;;  %v231_v31 = vmul.f32 %v589_v24, %v589_v24 }
  0xb2   :  { %v262_v32 = vmul.f32 0.7978846, %v254_v26  ;;  %v252_v33 = vadd.f32 %v244_v27, %v578_v10  ;;  %v232_v34 = vmul.f32 %v224_v28, %v224_v28 }
  0xb3   :  { %v416_v35 = vpop.eup %415  ;;  %419 = vtanh.f32 %v261_v29  ;;  %v259_v36 = vmul.f32 0.7978846, %v251_v30  ;;  %v239_v37 = vmul.f32 %v231_v31, %v589_v24 }
  0xb4   :  { %v418_v38 = vpop.eup %417  ;;  %v273_v39 = vadd.f32 1.0, %v416_v35  ;;  %421 = vtanh.f32 %v262_v32  ;;  %v260_v40 = vmul.f32 0.7978846, %v252_v33  ;;  %v240_v41 = vmul.f32 %v232_v34, %v224_v28 }
  0xb5   :  { %v274_v42 = vadd.f32 1.0, %v418_v38  ;;  %423 = vtanh.f32 %v259_v36  ;;  %v247_v43 = vmul.f32 0.044715, %v239_v37 }
  0xb6   :  { %v281_v44 = vmul.f32 0.5, %v273_v39  ;;  %425 = vtanh.f32 %v260_v40  ;;  %v248_v45 = vmul.f32 0.044715, %v240_v41 }
  0xb7   :  { %v282_v46 = vmul.f32 0.5, %v274_v42  ;;  %v255_v47 = vadd.f32 %v247_v43, %v589_v24 }
  0xb8   :  { %v289_v48 = vmul.f32 %v281_v44, %v556_v54  ;;  %v256_v49 = vadd.f32 %v248_v45, %v224_v28 }
  0xb9   :  { %v420_v50 = vpop.eup %419  ;;  %v290_v51 = vmul.f32 %v282_v46, %v558_v56  ;;  %v263_v52 = vmul.f32 0.7978846, %v255_v47 }
  0xba   :  { %v422_v53 = vpop.eup %421  ;;  %v277_v55 = vadd.f32 1.0, %v420_v50  ;;  %v264_v57 = vmul.f32 0.7978846, %v256_v49 }
  0xbb   :  { %v424_v58 = vpop.eup %423  ;;  %v297_v59 = vpack.c.bf16 %v290_v51, %v289_v48  ;;  %v278_v60 = vadd.f32 1.0, %v422_v53  ;;  %427 = vtanh.f32 %v263_v52 }
  0xbc   :  { %v426_v61 = vpop.eup %425  ;;  %v285_v62 = vmul.f32 0.5, %v277_v55  ;;  %v275_v0 = vadd.f32 1.0, %v424_v58  ;;  %429 = vtanh.f32 %v264_v57 }
  0xbd   :  { %301 = vst [vmem:[%s620_s3] sm:$0xff] %v297_v59  ;;  %v286_v54 = vmul.f32 0.5, %v278_v60  ;;  %v276_v1 = vadd.f32 1.0, %v426_v61 }
  0xbe   :  { %v293_v56 = vmul.f32 %v285_v62, %v566_v63  ;;  %v283_v3 = vmul.f32 0.5, %v275_v0 }
  0xbf   :  { %v294_v4 = vmul.f32 %v286_v54, %v568_v2  ;;  %v284_v5 = vmul.f32 0.5, %v276_v1 }
  0xc0   :  { %v291_v7 = vmul.f32 %v283_v3, %v573_v6 }
  0xc1   :  { %v428_v8 = vpop.eup %427  ;;  %v299_v9 = vpack.c.bf16 %v294_v4, %v293_v56  ;;  %v292_v11 = vmul.f32 %v284_v5, %v578_v10 }
  0xc2   :  { %v430_v12 = vpop.eup %429  ;;  %v279_v13 = vadd.f32 1.0, %v428_v8 }
  0xc3   :  { %303 = vst [vmem:[%s620_s3 + $0x10] sm:$0xff] %v299_v9  ;;  %v298_v14 = vpack.c.bf16 %v292_v11, %v291_v7  ;;  %v280_v15 = vadd.f32 1.0, %v430_v12 }
  0xc4   :  { %v287_v16 = vmul.f32 0.5, %v279_v13 }
  0xc5   :  { %302 = vst [vmem:[%s620_s3 + $0x8] sm:$0xff] %v298_v14  ;;  %v288_v63 = vmul.f32 0.5, %v280_v15 }
  0xc6   :  { %v295_v2 = vmul.f32 %v287_v16, %v589_v24 }
  0xc7   :  { %v296_v6 = vmul.f32 %v288_v63, %v224_v28 }
  0xc9   :  { %v300_v17 = vpack.c.bf16 %v296_v6, %v295_v2 }
  0xcb   :  { %304 = vst [vmem:[%s620_s3 + $0x18] sm:$0xff] %v300_v17 }

// kernel: pretrain_esm_forward.33
= control target key start
LH: loop header
LB: loop body
LE: loop exit
PB: predicated region body
PF: predicated region fallthrough
CT: control target
= control target key end

     0   :  { %9 = vsyncpa [#allocation4], 0  ;;  %s300_s18 = smov [#allocation3]   ;;  %s301_s20 = smov 64   ;;  %s352_s0 = inlined_call_operand.vmem [shape: bf16[32,128], index: 0, kind: input, shape index: {}]   ;;  %s353_s1 = inlined_call_operand.hbm [shape: bf16[128,128], index: 1, kind: input, shape index: {}]   ;;  %s354_s2 = inlined_call_operand.vmem [shape: f32[1,128], index: 2, kind: input, shape index: {}]   ;;  %s355_s3 = inlined_call_operand.vmem [shape: bf16[32,128], index: 3, kind: input, shape index: {}]   ;;  %s356_s4 = inlined_call_operand.vmem [shape: bf16[32,128], index: 4, kind: output, shape index: {}]  }
   0x1   :  { %s16_s17 = sshll.u32 %s353_s1, 4  ;;  %s18_s19 = sshll.u32 %s300_s18, 4  ;;  %s17_s17 = int_to_ptr.hbm [resolvable:$true] %s16_s17  ;;  %s19_s19 = int_to_ptr.vmem [resolvable:$true] %s18_s19 }
   0x2   :  { %s302_s21 = smov 4  }
   0x3   :  { %24 = dma.hbm_to_vmem [thread:$0]  %s17_s17, 1024, %s19_s19, [#allocation4], %s301_s20, %s301_s20, %s302_s21  }
   0x4   :  { %298 = dma.done.wait [#allocation4], 1024  }
   0x5   :  { %299 = vsyncadd [#allocation4], 4294966272  ;;  %v241_v0 = vld [vmem:[#allocation3 + $0x38] sm:$0xff]  ;;  %v240_v1 = vld [vmem:[#allocation3 + $0x30] sm:$0xff] }
   0x6   :  { %125 = vmatpush.bf16.msra.mxu0 %v241_v0  ;;  %262 = vmatpush.bf16.msra.mxu1 %v241_v0  ;;  %v239_v2 = vld [vmem:[#allocation3 + $0x28] sm:$0xff]  ;;  %v238_v3 = vld [vmem:[#allocation3 + $0x20] sm:$0xff]  ;;  %v237_v4 = vld [vmem:[#allocation3 + $0x18] sm:$0xff] }
   0x7   :  { %v236_v5 = vld [vmem:[#allocation3 + $0x10] sm:$0xff]  ;;  %v235_v6 = vld [vmem:[#allocation3 + $0x8] sm:$0xff]  ;;  %v234_v7 = vld [vmem:[#allocation3] sm:$0xff] }
   0x8   :  { %v232_v8 = vld [vmem:[%s352_s0] sm:$0xff]  ;;  %v233_v9 = vld [vmem:[%s352_s0 + $0x8] sm:$0xff] }
   0x9   :  { %v273_v12 = vld [vmem:[%s354_s2] ss:$0 sm:$0xff]  ;;  %v260_v14 = vld [vmem:[%s355_s3 + $0x8] sm:$0xff]  }
   0xa   :  { %126 = vmatpush.bf16.msra.mxu0 %v240_v1  ;;  %263 = vmatpush.bf16.msra.mxu1 %v240_v1  ;;  %v243_v13 = vld [vmem:[%s355_s3] sm:$0xff]   ;;  %v248_v16 = vunpack.c.l.bf16 %v260_v14  ;;  %v249_v20 = vunpack.c.h.bf16 %v260_v14 }
   0xb   :  { %v244_v15 = vunpack.c.l.bf16 %v243_v13  ;;  %v245_v19 = vunpack.c.h.bf16 %v243_v13 }
   0xe   :  { %127 = vmatpush.bf16.msra.mxu0 %v239_v2  ;;  %264 = vmatpush.bf16.msra.mxu1 %v239_v2 }
  0x12   :  { %128 = vmatpush.bf16.msra.mxu0 %v238_v3  ;;  %265 = vmatpush.bf16.msra.mxu1 %v238_v3 }
  0x16   :  { %129 = vmatpush.bf16.msra.mxu0 %v237_v4  ;;  %266 = vmatpush.bf16.msra.mxu1 %v237_v4 }
  0x1a   :  { %130 = vmatpush.bf16.msra.mxu0 %v236_v5  ;;  %267 = vmatpush.bf16.msra.mxu1 %v236_v5 }
  0x1e   :  { %131 = vmatpush.bf16.msra.mxu0 %v235_v6  ;;  %268 = vmatpush.bf16.msra.mxu1 %v235_v6 }
  0x22   :  { %132 = vmatpush.bf16.msra.mxu0 %v234_v7  ;;  %269 = vmatpush.bf16.msra.mxu1 %v234_v7 }
  0x25   :  { %133 = vmatmul.bf16.vlgmr.msra.gmra.mxu0 %v232_v8  ;;  %138 = vmatmul.bf16.vlgmr.msra.gmra.mxu1 %v233_v9 }
  0xa2   :  { %v134_v10 = vpop.f32.mrf.mxu0  ;;  %v139_v11 = vpop.f32.mrf.mxu1 }
  0xa3   :  { %v163_v17 = vadd.f32 %v273_v12, %v134_v10  ;;  %v165_v18 = vadd.f32 %v273_v12, %v139_v11 }
  0xa5   :  { %v175_v25 = vadd.f32 %v244_v15, %v163_v17  ;;  %v177_v26 = vadd.f32 %v248_v16, %v165_v18 }
  0xaa   :  { %v136_v21 = vpop.f32.mrf.mxu0  ;;  %v141_v22 = vpop.f32.mrf.mxu1 }
  0xab   :  { %v164_v23 = vadd.f32 %v273_v12, %v136_v21  ;;  %v166_v24 = vadd.f32 %v273_v12, %v141_v22 }
  0xad   :  { %v176_v27 = vadd.f32 %v245_v19, %v164_v23  ;;  %v178_v28 = vadd.f32 %v249_v20, %v166_v24 }
  0xaf   :  { %v253_v29 = vpack.c.bf16 %v176_v27, %v175_v25  ;;  %v258_v30 = vpack.c.bf16 %v178_v28, %v177_v26 }
  0xb1   :  { %254 = vst [vmem:[%s356_s4] sm:$0xff] %v253_v29  }
  0xb2   :  { %261 = vst [vmem:[%s356_s4 + $0x8] sm:$0xff] %v258_v30  }
  0xb3   :  { %191 = vsyncpa [#allocation4], 1 }

// kernel: pretrain_esm_forward.28
= control target key start
LH: loop header
LB: loop body
LE: loop exit
PB: predicated region body
PF: predicated region fallthrough
CT: control target
= control target key end

     0   :  { %s515_s1 = inlined_call_operand.vmem [shape: bf16[256,128], index: 1, kind: input, shape index: {}]   ;;  %s516_s0 = inlined_call_operand.vmem [shape: bf16[32,256], index: 0, kind: input, shape index: {}]   ;;  %s517_s2 = inlined_call_operand.vmem [shape: f32[1,128], index: 2, kind: input, shape index: {}]   ;;  %s518_s3 = inlined_call_operand.vmem [shape: bf16[32,128], index: 3, kind: input, shape index: {}]   ;;  %s519_s4 = inlined_call_operand.vmem [shape: bf16[32,128], index: 4, kind: output, shape index: {}]  }
   0x1   :  { %v357_v0 = vld [vmem:[%s515_s1 + $0x38] sm:$0xff]  ;;  %v356_v2 = vld [vmem:[%s515_s1 + $0x30] sm:$0xff]  ;;  %v355_v4 = vld [vmem:[%s515_s1 + $0x28] sm:$0xff] }
   0x2   :  { %v365_v1 = vld [vmem:[%s515_s1 + $0x78] sm:$0xff]  ;;  %181 = vmatpush.bf16.msra.mxu0 %v357_v0  ;;  %386 = vmatpush.bf16.msra.mxu2 %v357_v0  ;;  %v364_v3 = vld [vmem:[%s515_s1 + $0x70] sm:$0xff]  ;;  %v363_v5 = vld [vmem:[%s515_s1 + $0x68] sm:$0xff] }
   0x3   :  { %200 = vmatpush.bf16.msra.mxu1 %v365_v1  ;;  %394 = vmatpush.bf16.msra.mxu3 %v365_v1  ;;  %v354_v6 = vld [vmem:[%s515_s1 + $0x20] sm:$0xff]  ;;  %v353_v8 = vld [vmem:[%s515_s1 + $0x18] sm:$0xff]  ;;  %v352_v10 = vld [vmem:[%s515_s1 + $0x10] sm:$0xff] }
   0x4   :  { %v362_v7 = vld [vmem:[%s515_s1 + $0x60] sm:$0xff]  ;;  %v361_v9 = vld [vmem:[%s515_s1 + $0x58] sm:$0xff]  ;;  %v360_v11 = vld [vmem:[%s515_s1 + $0x50] sm:$0xff] }
   0x5   :  { %v351_v12 = vld [vmem:[%s515_s1 + $0x8] sm:$0xff]  ;;  %v350_v14 = vld [vmem:[%s515_s1] sm:$0xff]  ;;  %v276_v18 = vld [vmem:[%s516_s0 + $0x10] sm:$0xf] }
   0x6   :  { %182 = vmatpush.bf16.msra.mxu0 %v356_v2  ;;  %387 = vmatpush.bf16.msra.mxu2 %v356_v2  ;;  %v359_v13 = vld [vmem:[%s515_s1 + $0x48] sm:$0xff]  ;;  %v358_v15 = vld [vmem:[%s515_s1 + $0x40] sm:$0xff]  ;;  %v349_v19 = vld [vmem:[%s516_s0 + $0x14] sm:$0xf0] }
   0x7   :  { %201 = vmatpush.bf16.msra.mxu1 %v364_v3  ;;  %395 = vmatpush.bf16.msra.mxu3 %v364_v3  ;;  %v268_v16 = vld [vmem:[%s516_s0] sm:$0xf]  ;;  %v347_v17 = vld [vmem:[%s516_s0 + $0x4] sm:$0xf0]  ;;  %v346_v20 = vld [vmem:[%s516_s0 + $0x4] sm:$0xf]  ;;  %v277_v25 = vor.u32 %v349_v19, %v276_v18 }
   0x8   :  { %v270_v21 = vld [vmem:[%s516_s0 + $0x8] sm:$0xf0]  ;;  %v348_v22 = vld [vmem:[%s516_s0 + $0x14] sm:$0xf]  ;;  %v278_v23 = vld [vmem:[%s516_s0 + $0x18] sm:$0xf0]  ;;  %v269_v24 = vor.u32 %v347_v17, %v268_v16 }
   0x9   :  { %v273_v26 = vor.u32 %v346_v20, %v270_v21  ;;  %v281_v27 = vor.u32 %v348_v22, %v278_v23  ;;  %v402_v31 = vld [vmem:[%s517_s2] ss:$0 sm:$0xff]  ;;  %v384_v42 = vld [vmem:[%s518_s3 + $0x8] sm:$0xff]  }
   0xa   :  { %183 = vmatpush.bf16.msra.mxu0 %v355_v4  ;;  %388 = vmatpush.bf16.msra.mxu2 %v355_v4  ;;  %v367_v33 = vld [vmem:[%s518_s3] sm:$0xff]   ;;  %v372_v47 = vunpack.c.l.bf16 %v384_v42  ;;  %v373_v52 = vunpack.c.h.bf16 %v384_v42 }
   0xb   :  { %202 = vmatpush.bf16.msra.mxu1 %v363_v5  ;;  %396 = vmatpush.bf16.msra.mxu3 %v363_v5  ;;  %v368_v38 = vunpack.c.l.bf16 %v367_v33  ;;  %v369_v40 = vunpack.c.h.bf16 %v367_v33 }
   0xe   :  { %184 = vmatpush.bf16.msra.mxu0 %v354_v6  ;;  %389 = vmatpush.bf16.msra.mxu2 %v354_v6 }
   0xf   :  { %203 = vmatpush.bf16.msra.mxu1 %v362_v7  ;;  %397 = vmatpush.bf16.msra.mxu3 %v362_v7 }
  0x12   :  { %185 = vmatpush.bf16.msra.mxu0 %v353_v8  ;;  %390 = vmatpush.bf16.msra.mxu2 %v353_v8 }
  0x13   :  { %204 = vmatpush.bf16.msra.mxu1 %v361_v9  ;;  %398 = vmatpush.bf16.msra.mxu3 %v361_v9 }
  0x16   :  { %186 = vmatpush.bf16.msra.mxu0 %v352_v10  ;;  %391 = vmatpush.bf16.msra.mxu2 %v352_v10 }
  0x17   :  { %205 = vmatpush.bf16.msra.mxu1 %v360_v11  ;;  %399 = vmatpush.bf16.msra.mxu3 %v360_v11 }
  0x1a   :  { %187 = vmatpush.bf16.msra.mxu0 %v351_v12  ;;  %392 = vmatpush.bf16.msra.mxu2 %v351_v12 }
  0x1b   :  { %206 = vmatpush.bf16.msra.mxu1 %v359_v13  ;;  %400 = vmatpush.bf16.msra.mxu3 %v359_v13 }
  0x1e   :  { %188 = vmatpush.bf16.msra.mxu0 %v350_v14  ;;  %393 = vmatpush.bf16.msra.mxu2 %v350_v14 }
  0x1f   :  { %207 = vmatpush.bf16.msra.mxu1 %v358_v15  ;;  %401 = vmatpush.bf16.msra.mxu3 %v358_v15 }
  0x21   :  { %189 = vmatmul.bf16.vlgmr.msra.gmra.mxu0 %v269_v24  ;;  %194 = vmatmul.bf16.vlgmr.msra.gmra.mxu2 %v277_v25 }
  0x22   :  { %208 = vmatmul.bf16.vlgmr.msra.gmra.mxu1 %v273_v26  ;;  %213 = vmatmul.bf16.vlgmr.msra.gmra.mxu3 %v281_v27 }
  0x9e   :  { %v190_v28 = vpop.f32.mrf.mxu0 }
  0x9f   :  { %v209_v29 = vpop.f32.mrf.mxu1 }
  0xa0   :  { %v210_v30 = vadd.f32 %v209_v29, %v190_v28 }
  0xa2   :  { %v238_v37 = vadd.f32 %v402_v31, %v210_v30 }
  0xa4   :  { %v195_v32 = vpop.f32.mrf.mxu2  ;;  %v250_v44 = vadd.f32 %v368_v38, %v238_v37 }
  0xa5   :  { %v214_v34 = vpop.f32.mrf.mxu3 }
  0xa6   :  { %v192_v35 = vpop.f32.mrf.mxu0  ;;  %v215_v41 = vadd.f32 %v214_v34, %v195_v32 }
  0xa7   :  { %v211_v36 = vpop.f32.mrf.mxu1 }
  0xa8   :  { %v212_v39 = vadd.f32 %v211_v36, %v192_v35  ;;  %v240_v49 = vadd.f32 %v402_v31, %v215_v41 }
  0xaa   :  { %v239_v43 = vadd.f32 %v402_v31, %v212_v39  ;;  %v252_v54 = vadd.f32 %v372_v47, %v240_v49 }
  0xac   :  { %v251_v45 = vadd.f32 %v369_v40, %v239_v43  ;;  %v197_v46 = vpop.f32.mrf.mxu2 }
  0xad   :  { %v216_v48 = vpop.f32.mrf.mxu3 }
  0xae   :  { %v377_v50 = vpack.c.bf16 %v251_v45, %v250_v44  ;;  %v217_v51 = vadd.f32 %v216_v48, %v197_v46 }
  0xb0   :  { %378 = vst [vmem:[%s519_s4] sm:$0xff] %v377_v50   ;;  %v241_v53 = vadd.f32 %v402_v31, %v217_v51 }
  0xb2   :  { %v253_v55 = vadd.f32 %v373_v52, %v241_v53 }
  0xb4   :  { %v382_v56 = vpack.c.bf16 %v253_v55, %v252_v54 }
  0xb6   :  { %385 = vst [vmem:[%s519_s4 + $0x8] sm:$0xff] %v382_v56  }

// kernel: pretrain_esm_forward.37
= control target key start
LH: loop header
LB: loop body
LE: loop exit
PB: predicated region body
PF: predicated region fallthrough
CT: control target
= control target key end

     0   :  { %v155_v6 = vmov 128.0   ;;  %s210_s0 = inlined_call_operand.vmem [shape: bf16[32,128], index: 0, kind: input, shape index: {}]   ;;  %s211_s1 = inlined_call_operand.vmem [shape: f32[1,128], index: 1, kind: input, shape index: {}]   ;;  %s212_s2 = inlined_call_operand.vmem [shape: f32[1,128], index: 2, kind: input, shape index: {}]   ;;  %s213_s3 = inlined_call_operand.vmem [shape: f32[32,128], index: 3, kind: output, shape index: {}]  }
   0x1   :  { %v141_v0 = vld [vmem:[%s210_s0 + $0x8] sm:$0xff]   ;;  %v134_v1 = vld [vmem:[%s210_s0] sm:$0xff]   ;;  %145 = vrcp.f32 %v155_v6 }
   0x2   :  { %v139_v2 = vunpack.c.l.bf16 %v141_v0  ;;  %v135_v3 = vunpack.c.l.bf16 %v134_v1  ;;  %v140_v4 = vunpack.c.h.bf16 %v141_v0  ;;  %v136_v5 = vunpack.c.h.bf16 %v134_v1  ;;  %v143_v55 = vld [vmem:[%s211_s1] ss:$0 sm:$0xff] }
   0x3   :  { %v144_v60 = vld [vmem:[%s212_s2] ss:$0 sm:$0xff] }
   0x4   :  { %26 = vadd.xlane.f32.xlu1 %v139_v2  ;;  %22 = vadd.xlane.f32.xlu0 %v135_v3 }
   0x7   :  { %v146_v7 = vpop.eup %145 }
   0x8   :  { %v31_v8 = vmul.f32 128.0, %v146_v7  ;;  %vm35_vm0 = vweird.f32 %v146_v7 }
   0xa   :  { %v32_v9 = vsub.f32 1.0, %v31_v8 }
   0xc   :  { %28 = vadd.xlane.f32.xlu1 %v140_v4  ;;  %24 = vadd.xlane.f32.xlu0 %v136_v5  ;;  %v33_v10 = vmul.f32 %v146_v7, %v32_v9 }
   0xe   :  { %v34_v11 = vadd.f32 %v146_v7, %v33_v10 }
  0x10   :  { %v36_v12 = vsel %vm35_vm0, %v146_v7, %v34_v11 }
  0x77   :  { %v27_v13 = vpop.xlane.xlu1 %26  ;;  %v23_v14 = vpop.xlane.xlu0 %22 }
  0x78   :  { %v39_v15 = vmul.f32 %v36_v12, %v27_v13  ;;  %v37_v16 = vmul.f32 %v36_v12, %v23_v14 }
  0x7a   :  { %v43_v17 = vsub.f32 %v139_v2, %v39_v15  ;;  %v41_v18 = vsub.f32 %v135_v3, %v37_v16 }
  0x7c   :  { %v47_v19 = vmul.f32 %v43_v17, %v43_v17  ;;  %v45_v20 = vmul.f32 %v41_v18, %v41_v18 }
  0x7e   :  { %53 = vadd.xlane.f32.xlu0 %v47_v19  ;;  %49 = vadd.xlane.f32.xlu2 %v45_v20 }
  0x7f   :  { %v29_v21 = vpop.xlane.xlu1 %28  ;;  %v25_v22 = vpop.xlane.xlu0 %24 }
  0x80   :  { %v40_v23 = vmul.f32 %v36_v12, %v29_v21  ;;  %v38_v24 = vmul.f32 %v36_v12, %v25_v22 }
  0x82   :  { %v182_v25 = vsub.f32 %v140_v4, %v40_v23  ;;  %v184_v26 = vsub.f32 %v136_v5, %v38_v24 }
  0x84   :  { %v48_v27 = vmul.f32 %v182_v25, %v182_v25  ;;  %v46_v28 = vmul.f32 %v184_v26, %v184_v26 }
  0x86   :  { %55 = vadd.xlane.f32.xlu1 %v48_v27  ;;  %51 = vadd.xlane.f32.xlu2 %v46_v28 }
  0xf1   :  { %v50_v29 = vpop.xlane.xlu2 %49  ;;  %v54_v30 = vpop.xlane.xlu0 %53 }
  0xf2   :  { %v57_v31 = vmul.f32 %v50_v29, %v36_v12  ;;  %v59_v32 = vmul.f32 %v54_v30, %v36_v12 }
  0xf4   :  { %v61_v33 = vadd.f32 1e-05, %v57_v31  ;;  %v63_v34 = vadd.f32 1e-05, %v59_v32 }
  0xf6   :  { %147 = vrsqrt.f32 %v61_v33  ;;  %vm71_vm3 = vweird.f32 %v61_v33  ;;  %vm91_vm5 = vweird.f32 %v63_v34 }
  0xf7   :  { %149 = vrsqrt.f32 %v63_v34 }
  0xf9   :  { %v56_v35 = vpop.xlane.xlu1 %55  ;;  %v52_v36 = vpop.xlane.xlu2 %51 }
  0xfa   :  { %v60_v37 = vmul.f32 %v56_v35, %v36_v12  ;;  %v58_v38 = vmul.f32 %v52_v36, %v36_v12 }
  0xfc   :  { %v148_v39 = vpop.eup %147  ;;  %v64_v40 = vadd.f32 1e-05, %v60_v37  ;;  %v62_v41 = vadd.f32 1e-05, %v58_v38 }
  0xfd   :  { %v150_v42 = vpop.eup %149  ;;  %v66_v43 = vmul.f32 %v148_v39, %v61_v33  ;;  %vm72_vm1 = vweird.f32 %v148_v39 }
  0xfe   :  { %v86_v44 = vmul.f32 %v150_v42, %v63_v34  ;;  %151 = vrsqrt.f32 %v64_v40  ;;  %vm92_vm2 = vweird.f32 %v150_v42  ;;  %vm73_vm4 = vmor %vm71_vm3, %vm72_vm1  ;;  %vm101_vm9 = vweird.f32 %v64_v40 }
  0xff   :  { %v67_v45 = vmul.f32 %v148_v39, %v66_v43  ;;  %153 = vrsqrt.f32 %v62_v41  ;;  %vm93_vm6 = vmor %vm91_vm5, %vm92_vm2  ;;  %vm81_vm11 = vweird.f32 %v62_v41 }
 0x100   :  { %v87_v46 = vmul.f32 %v150_v42, %v86_v44 }
 0x101   :  { %v68_v47 = vmul.f32 0.5, %v67_v45 }
 0x102   :  { %v88_v48 = vmul.f32 0.5, %v87_v46 }
 0x103   :  { %v69_v49 = vsub.f32 1.5, %v68_v47 }
 0x104   :  { %v152_v50 = vpop.eup %151  ;;  %v89_v51 = vsub.f32 1.5, %v88_v48 }
 0x105   :  { %v154_v52 = vpop.eup %153  ;;  %v70_v53 = vmul.f32 %v148_v39, %v69_v49  ;;  %v96_v54 = vmul.f32 %v152_v50, %v64_v40  ;;  %vm102_vm7 = vweird.f32 %v152_v50 }
 0x106   :  { %v90_v56 = vmul.f32 %v150_v42, %v89_v51  ;;  %v76_v57 = vmul.f32 %v154_v52, %v62_v41  ;;  %vm82_vm8 = vweird.f32 %v154_v52  ;;  %vm103_vm10 = vmor %vm101_vm9, %vm102_vm7 }
 0x107   :  { %v74_v58 = vsel %vm73_vm4, %v148_v39, %v70_v53  ;;  %v97_v59 = vmul.f32 %v152_v50, %v96_v54  ;;  %vm83_vm12 = vmor %vm81_vm11, %vm82_vm8 }
 0x108   :  { %v105_v61 = vmul.f32 %v74_v58, %v41_v18  ;;  %v94_v62 = vsel %vm93_vm6, %v150_v42, %v90_v56  ;;  %v77_v63 = vmul.f32 %v154_v52, %v76_v57 }
 0x109   :  { %v107_v0 = vmul.f32 %v94_v62, %v43_v17  ;;  %v98_v1 = vmul.f32 0.5, %v97_v59 }
 0x10a   :  { %v113_v2 = vmul.f32 %v143_v55, %v105_v61  ;;  %v78_v3 = vmul.f32 0.5, %v77_v63 }
 0x10b   :  { %v115_v4 = vmul.f32 %v143_v55, %v107_v0  ;;  %v99_v5 = vsub.f32 1.5, %v98_v1 }
 0x10c   :  { %v121_v6 = vadd.f32 %v144_v60, %v113_v2  ;;  %v79_v7 = vsub.f32 1.5, %v78_v3 }
 0x10d   :  { %v123_v8 = vadd.f32 %v144_v60, %v115_v4  ;;  %v100_v9 = vmul.f32 %v152_v50, %v99_v5 }
 0x10e   :  { %125 = vst [vmem:[%s213_s3] sm:$0xff] %v121_v6  ;;  %v80_v10 = vmul.f32 %v154_v52, %v79_v7 }
 0x10f   :  { %127 = vst [vmem:[%s213_s3 + $0x10] sm:$0xff] %v123_v8  ;;  %v104_v11 = vsel %vm103_vm10, %v152_v50, %v100_v9 }
 0x110   :  { %v108_v12 = vmul.f32 %v104_v11, %v182_v25  ;;  %v84_v13 = vsel %vm83_vm12, %v154_v52, %v80_v10 }
 0x111   :  { %v106_v14 = vmul.f32 %v84_v13, %v184_v26 }
 0x112   :  { %v116_v15 = vmul.f32 %v143_v55, %v108_v12 }
 0x113   :  { %v114_v16 = vmul.f32 %v143_v55, %v106_v14 }
 0x114   :  { %v124_v17 = vadd.f32 %v144_v60, %v116_v15 }
 0x115   :  { %v122_v18 = vadd.f32 %v144_v60, %v114_v16 }
 0x116   :  { %128 = vst [vmem:[%s213_s3 + $0x18] sm:$0xff] %v124_v17 }
 0x117   :  { %126 = vst [vmem:[%s213_s3 + $0x8] sm:$0xff] %v122_v18 }

// kernel: pretrain_esm_forward.35
= control target key start
LH: loop header
LB: loop body
LE: loop exit
PB: predicated region body
PF: predicated region fallthrough
CT: control target
= control target key end

     0   :  { %8 = vsyncpa [#allocation4], 0  ;;  %s477_s15 = smov [#allocation3]   ;;  %s478_s17 = smov 128   ;;  %s573_s0 = inlined_call_operand.vmem [shape: bf16[32,128], index: 0, kind: input, shape index: {}]   ;;  %s574_s1 = inlined_call_operand.hbm [shape: bf16[128,256], index: 1, kind: input, shape index: {}]   ;;  %s575_s2 = inlined_call_operand.vmem [shape: f32[1,256], index: 2, kind: input, shape index: {}]   ;;  %s576_s3 = inlined_call_operand.vmem [shape: bf16[32,256], index: 3, kind: output, shape index: {}]  }
   0x1   :  { %s15_s14 = sshll.u32 %s574_s1, 4  ;;  %s17_s16 = sshll.u32 %s477_s15, 4  ;;  %s16_s14 = int_to_ptr.hbm [resolvable:$true] %s15_s14  ;;  %s18_s16 = int_to_ptr.vmem [resolvable:$true] %s17_s16 }
   0x2   :  { %s479_s18 = smov 8  }
   0x3   :  { %23 = dma.hbm_to_vmem [thread:$0]  %s16_s14, 2048, %s18_s16, [#allocation4], %s478_s17, %s478_s17, %s479_s18  }
   0x4   :  { %475 = dma.done.wait [#allocation4], 2048  }
   0x5   :  { %476 = vsyncadd [#allocation4], 4294965248  ;;  %v392_v0 = vld [vmem:[#allocation3 + $0x70] sm:$0xf]  ;;  %v415_v1 = vld [vmem:[#allocation3 + $0x74] sm:$0xf0] }
   0x6   :  { %v414_v2 = vld [vmem:[#allocation3 + $0x74] sm:$0xf]  ;;  %v393_v3 = vor.u32 %v415_v1, %v392_v0  ;;  %v394_v4 = vld [vmem:[#allocation3 + $0x78] sm:$0xf0]  ;;  %v384_v5 = vld [vmem:[#allocation3 + $0x60] sm:$0xf] }
   0x7   :  { %v413_v6 = vld [vmem:[#allocation3 + $0x64] sm:$0xf0]  ;;  %v397_v7 = vor.u32 %v414_v2, %v394_v4  ;;  %v412_v8 = vld [vmem:[#allocation3 + $0x64] sm:$0xf]  ;;  %v386_v9 = vld [vmem:[#allocation3 + $0x68] sm:$0xf0] }
   0x8   :  { %162 = vmatpush.bf16.msra.mxu0 %v393_v3  ;;  %416 = vmatpush.bf16.msra.mxu2 %v393_v3  ;;  %v385_v10 = vor.u32 %v413_v6, %v384_v5  ;;  %v389_v11 = vor.u32 %v412_v8, %v386_v9  ;;  %v376_v12 = vld [vmem:[#allocation3 + $0x50] sm:$0xf]  ;;  %v411_v13 = vld [vmem:[#allocation3 + $0x54] sm:$0xf0]  ;;  %v410_v14 = vld [vmem:[#allocation3 + $0x54] sm:$0xf] }
   0x9   :  { %181 = vmatpush.bf16.msra.mxu1 %v397_v7  ;;  %424 = vmatpush.bf16.msra.mxu3 %v397_v7  ;;  %v378_v15 = vld [vmem:[#allocation3 + $0x58] sm:$0xf0]  ;;  %v377_v16 = vor.u32 %v411_v13, %v376_v12  ;;  %v368_v18 = vld [vmem:[#allocation3 + $0x40] sm:$0xf]  ;;  %v409_v19 = vld [vmem:[#allocation3 + $0x44] sm:$0xf0] }
   0xa   :  { %v381_v17 = vor.u32 %v410_v14, %v378_v15  ;;  %v408_v20 = vld [vmem:[#allocation3 + $0x44] sm:$0xf]  ;;  %v370_v21 = vld [vmem:[#allocation3 + $0x48] sm:$0xf0]  ;;  %v369_v22 = vor.u32 %v409_v19, %v368_v18  ;;  %v360_v24 = vld [vmem:[#allocation3 + $0x30] sm:$0xf] }
   0xb   :  { %v373_v23 = vor.u32 %v408_v20, %v370_v21  ;;  %v407_v25 = vld [vmem:[#allocation3 + $0x34] sm:$0xf0]  ;;  %v406_v26 = vld [vmem:[#allocation3 + $0x34] sm:$0xf]  ;;  %v362_v27 = vld [vmem:[#allocation3 + $0x38] sm:$0xf0] }
   0xc   :  { %163 = vmatpush.bf16.msra.mxu0 %v385_v10  ;;  %417 = vmatpush.bf16.msra.mxu2 %v385_v10  ;;  %v361_v28 = vor.u32 %v407_v25, %v360_v24  ;;  %v365_v29 = vor.u32 %v406_v26, %v362_v27  ;;  %v352_v30 = vld [vmem:[#allocation3 + $0x20] sm:$0xf]  ;;  %v405_v31 = vld [vmem:[#allocation3 + $0x24] sm:$0xf0]  ;;  %v404_v32 = vld [vmem:[#allocation3 + $0x24] sm:$0xf] }
   0xd   :  { %182 = vmatpush.bf16.msra.mxu1 %v389_v11  ;;  %425 = vmatpush.bf16.msra.mxu3 %v389_v11  ;;  %v354_v33 = vld [vmem:[#allocation3 + $0x28] sm:$0xf0]  ;;  %v353_v34 = vor.u32 %v405_v31, %v352_v30  ;;  %v344_v36 = vld [vmem:[#allocation3 + $0x10] sm:$0xf]  ;;  %v403_v37 = vld [vmem:[#allocation3 + $0x14] sm:$0xf0] }
   0xe   :  { %v357_v35 = vor.u32 %v404_v32, %v354_v33  ;;  %v402_v38 = vld [vmem:[#allocation3 + $0x14] sm:$0xf]  ;;  %v346_v39 = vld [vmem:[#allocation3 + $0x18] sm:$0xf0]  ;;  %v345_v40 = vor.u32 %v403_v37, %v344_v36  ;;  %v336_v42 = vld [vmem:[#allocation3] sm:$0xf] }
   0xf   :  { %v349_v41 = vor.u32 %v402_v38, %v346_v39  ;;  %v401_v43 = vld [vmem:[#allocation3 + $0x4] sm:$0xf0]  ;;  %v400_v44 = vld [vmem:[#allocation3 + $0x4] sm:$0xf]  ;;  %v338_v45 = vld [vmem:[#allocation3 + $0x8] sm:$0xf0] }
  0x10   :  { %164 = vmatpush.bf16.msra.mxu0 %v377_v16  ;;  %418 = vmatpush.bf16.msra.mxu2 %v377_v16  ;;  %v337_v46 = vor.u32 %v401_v43, %v336_v42  ;;  %v341_v47 = vor.u32 %v400_v44, %v338_v45  ;;  %v398_v48 = vld [vmem:[%s573_s0] sm:$0xff]  ;;  %v399_v49 = vld [vmem:[%s573_s0 + $0x8] sm:$0xff] }
  0x11   :  { %183 = vmatpush.bf16.msra.mxu1 %v381_v17  ;;  %426 = vmatpush.bf16.msra.mxu3 %v381_v17  ;;  %v227_v50 = vld [vmem:[%s575_s2] sm:$0x3] }
  0x12   :  { %v229_v51 = vperm.slane %v227_v50, 0  ;;  %v230_v52 = vperm.slane %v227_v50, 1 }
  0x14   :  { %165 = vmatpush.bf16.msra.mxu0 %v369_v22  ;;  %419 = vmatpush.bf16.msra.mxu2 %v369_v22 }
  0x15   :  { %184 = vmatpush.bf16.msra.mxu1 %v373_v23  ;;  %427 = vmatpush.bf16.msra.mxu3 %v373_v23 }
  0x18   :  { %166 = vmatpush.bf16.msra.mxu0 %v361_v28  ;;  %420 = vmatpush.bf16.msra.mxu2 %v361_v28 }
  0x19   :  { %185 = vmatpush.bf16.msra.mxu1 %v365_v29  ;;  %428 = vmatpush.bf16.msra.mxu3 %v365_v29 }
  0x1c   :  { %167 = vmatpush.bf16.msra.mxu0 %v353_v34  ;;  %421 = vmatpush.bf16.msra.mxu2 %v353_v34 }
  0x1d   :  { %186 = vmatpush.bf16.msra.mxu1 %v357_v35  ;;  %429 = vmatpush.bf16.msra.mxu3 %v357_v35 }
  0x20   :  { %168 = vmatpush.bf16.msra.mxu0 %v345_v40  ;;  %422 = vmatpush.bf16.msra.mxu2 %v345_v40 }
  0x21   :  { %187 = vmatpush.bf16.msra.mxu1 %v349_v41  ;;  %430 = vmatpush.bf16.msra.mxu3 %v349_v41 }
  0x24   :  { %169 = vmatpush.bf16.msra.mxu0 %v337_v46  ;;  %423 = vmatpush.bf16.msra.mxu2 %v337_v46 }
  0x25   :  { %188 = vmatpush.bf16.msra.mxu1 %v341_v47  ;;  %431 = vmatpush.bf16.msra.mxu3 %v341_v47 }
  0x27   :  { %170 = vmatmul.bf16.vlgmr.msra.gmra.mxu0 %v398_v48  ;;  %175 = vmatmul.bf16.vlgmr.msra.gmra.mxu2 %v399_v49 }
  0x28   :  { %189 = vmatmul.bf16.vlgmr.msra.gmra.mxu1 %v398_v48  ;;  %194 = vmatmul.bf16.vlgmr.msra.gmra.mxu3 %v399_v49 }
  0xa4   :  { %v171_v53 = vpop.f32.mrf.mxu0 }
  0xa5   :  { %v512_v54 = vadd.f32 %v229_v51, %v171_v53  ;;  %v190_v55 = vpop.f32.mrf.mxu1 }
  0xa6   :  { %v514_v56 = vadd.f32 %v230_v52, %v190_v55 }
  0xa7   :  { %v241_v57 = vmul.f32 %v512_v54, %v512_v54 }
  0xa8   :  { %v242_v58 = vmul.f32 %v514_v56, %v514_v56 }
  0xa9   :  { %v249_v59 = vmul.f32 %v241_v57, %v512_v54 }
  0xaa   :  { %v250_v60 = vmul.f32 %v242_v58, %v514_v56  ;;  %v176_v61 = vpop.f32.mrf.mxu2 }
  0xab   :  { %v257_v62 = vmul.f32 0.044715, %v249_v59  ;;  %v522_v63 = vadd.f32 %v229_v51, %v176_v61  ;;  %v195_v0 = vpop.f32.mrf.mxu3 }
  0xac   :  { %v258_v1 = vmul.f32 0.044715, %v250_v60  ;;  %v524_v2 = vadd.f32 %v230_v52, %v195_v0  ;;  %v173_v3 = vpop.f32.mrf.mxu0 }
  0xad   :  { %v265_v4 = vadd.f32 %v257_v62, %v512_v54  ;;  %v245_v5 = vmul.f32 %v522_v63, %v522_v63  ;;  %v529_v6 = vadd.f32 %v229_v51, %v173_v3  ;;  %v192_v7 = vpop.f32.mrf.mxu1 }
  0xae   :  { %v266_v8 = vadd.f32 %v258_v1, %v514_v56  ;;  %v246_v9 = vmul.f32 %v524_v2, %v524_v2  ;;  %v534_v10 = vadd.f32 %v230_v52, %v192_v7 }
  0xaf   :  { %v273_v11 = vmul.f32 0.7978846, %v265_v4  ;;  %v253_v12 = vmul.f32 %v245_v5, %v522_v63  ;;  %v243_v13 = vmul.f32 %v529_v6, %v529_v6 }
  0xb0   :  { %v274_v14 = vmul.f32 0.7978846, %v266_v8  ;;  %v254_v15 = vmul.f32 %v246_v9, %v524_v2  ;;  %v244_v16 = vmul.f32 %v534_v10, %v534_v10 }
  0xb1   :  { %435 = vtanh.f32 %v273_v11  ;;  %v261_v17 = vmul.f32 0.044715, %v253_v12  ;;  %v251_v18 = vmul.f32 %v243_v13, %v529_v6 }
  0xb2   :  { %437 = vtanh.f32 %v274_v14  ;;  %v262_v19 = vmul.f32 0.044715, %v254_v15  ;;  %v252_v20 = vmul.f32 %v244_v16, %v534_v10  ;;  %v178_v21 = vpop.f32.mrf.mxu2 }
  0xb3   :  { %v269_v22 = vadd.f32 %v261_v17, %v522_v63  ;;  %v259_v23 = vmul.f32 0.044715, %v251_v18  ;;  %v545_v24 = vadd.f32 %v229_v51, %v178_v21  ;;  %v197_v25 = vpop.f32.mrf.mxu3 }
  0xb4   :  { %v270_v26 = vadd.f32 %v262_v19, %v524_v2  ;;  %v260_v27 = vmul.f32 0.044715, %v252_v20  ;;  %v240_v28 = vadd.f32 %v230_v52, %v197_v25 }
  0xb5   :  { %v277_v29 = vmul.f32 0.7978846, %v269_v22  ;;  %v267_v30 = vadd.f32 %v259_v23, %v529_v6  ;;  %v247_v31 = vmul.f32 %v545_v24, %v545_v24 }
  0xb6   :  { %v278_v32 = vmul.f32 0.7978846, %v270_v26  ;;  %v268_v33 = vadd.f32 %v260_v27, %v534_v10  ;;  %v248_v34 = vmul.f32 %v240_v28, %v240_v28 }
  0xb7   :  { %v436_v35 = vpop.eup %435  ;;  %439 = vtanh.f32 %v277_v29  ;;  %v275_v36 = vmul.f32 0.7978846, %v267_v30  ;;  %v255_v37 = vmul.f32 %v247_v31, %v545_v24 }
  0xb8   :  { %v438_v38 = vpop.eup %437  ;;  %v289_v39 = vadd.f32 1.0, %v436_v35  ;;  %441 = vtanh.f32 %v278_v32  ;;  %v276_v40 = vmul.f32 0.7978846, %v268_v33  ;;  %v256_v41 = vmul.f32 %v248_v34, %v240_v28 }
  0xb9   :  { %v290_v42 = vadd.f32 1.0, %v438_v38  ;;  %443 = vtanh.f32 %v275_v36  ;;  %v263_v43 = vmul.f32 0.044715, %v255_v37 }
  0xba   :  { %v297_v44 = vmul.f32 0.5, %v289_v39  ;;  %445 = vtanh.f32 %v276_v40  ;;  %v264_v45 = vmul.f32 0.044715, %v256_v41 }
  0xbb   :  { %v298_v46 = vmul.f32 0.5, %v290_v42  ;;  %v271_v47 = vadd.f32 %v263_v43, %v545_v24 }
  0xbc   :  { %v305_v48 = vmul.f32 %v297_v44, %v512_v54  ;;  %v272_v49 = vadd.f32 %v264_v45, %v240_v28 }
  0xbd   :  { %v440_v50 = vpop.eup %439  ;;  %v306_v51 = vmul.f32 %v298_v46, %v514_v56  ;;  %v279_v52 = vmul.f32 0.7978846, %v271_v47 }
  0xbe   :  { %v442_v53 = vpop.eup %441  ;;  %v293_v55 = vadd.f32 1.0, %v440_v50  ;;  %v280_v57 = vmul.f32 0.7978846, %v272_v49 }
  0xbf   :  { %v444_v58 = vpop.eup %443  ;;  %v313_v59 = vpack.c.bf16 %v306_v51, %v305_v48  ;;  %v294_v60 = vadd.f32 1.0, %v442_v53  ;;  %447 = vtanh.f32 %v279_v52 }
  0xc0   :  { %v446_v61 = vpop.eup %445  ;;  %v301_v62 = vmul.f32 0.5, %v293_v55  ;;  %v291_v0 = vadd.f32 1.0, %v444_v58  ;;  %449 = vtanh.f32 %v280_v57 }
  0xc1   :  { %317 = vst [vmem:[%s576_s3] sm:$0xff] %v313_v59  ;;  %v302_v54 = vmul.f32 0.5, %v294_v60  ;;  %v292_v1 = vadd.f32 1.0, %v446_v61 }
  0xc2   :  { %v309_v56 = vmul.f32 %v301_v62, %v522_v63  ;;  %v299_v3 = vmul.f32 0.5, %v291_v0 }
  0xc3   :  { %v310_v4 = vmul.f32 %v302_v54, %v524_v2  ;;  %v300_v5 = vmul.f32 0.5, %v292_v1 }
  0xc4   :  { %v307_v7 = vmul.f32 %v299_v3, %v529_v6 }
  0xc5   :  { %v448_v8 = vpop.eup %447  ;;  %v315_v9 = vpack.c.bf16 %v310_v4, %v309_v56  ;;  %v308_v11 = vmul.f32 %v300_v5, %v534_v10 }
  0xc6   :  { %v450_v12 = vpop.eup %449  ;;  %v295_v13 = vadd.f32 1.0, %v448_v8 }
  0xc7   :  { %319 = vst [vmem:[%s576_s3 + $0x10] sm:$0xff] %v315_v9  ;;  %v314_v14 = vpack.c.bf16 %v308_v11, %v307_v7  ;;  %v296_v15 = vadd.f32 1.0, %v450_v12 }
  0xc8   :  { %v303_v16 = vmul.f32 0.5, %v295_v13 }
  0xc9   :  { %318 = vst [vmem:[%s576_s3 + $0x8] sm:$0xff] %v314_v14  ;;  %v304_v63 = vmul.f32 0.5, %v296_v15 }
  0xca   :  { %v311_v2 = vmul.f32 %v303_v16, %v545_v24 }
  0xcb   :  { %v312_v6 = vmul.f32 %v304_v63, %v240_v28 }
  0xcd   :  { %v316_v17 = vpack.c.bf16 %v312_v6, %v311_v2 }
  0xcf   :  { %320 = vst [vmem:[%s576_s3 + $0x18] sm:$0xff] %v316_v17 }
  0xd0   :  { %325 = vsyncpa [#allocation4], 1 }

// kernel: pretrain_esm_forward.36
= control target key start
LH: loop header
LB: loop body
LE: loop exit
PB: predicated region body
PF: predicated region fallthrough
CT: control target
= control target key end

     0   :  { %9 = vsyncpa [#allocation4], 0  ;;  %s449_s18 = smov [#allocation3]   ;;  %s450_s20 = smov 64   ;;  %s519_s0 = inlined_call_operand.vmem [shape: bf16[32,256], index: 0, kind: input, shape index: {}]   ;;  %s520_s1 = inlined_call_operand.hbm [shape: bf16[256,128], index: 1, kind: input, shape index: {}]   ;;  %s521_s2 = inlined_call_operand.vmem [shape: f32[1,128], index: 2, kind: input, shape index: {}]   ;;  %s522_s3 = inlined_call_operand.vmem [shape: bf16[32,128], index: 3, kind: input, shape index: {}]   ;;  %s523_s4 = inlined_call_operand.vmem [shape: bf16[32,128], index: 4, kind: output, shape index: {}]  }
   0x1   :  { %s16_s17 = sshll.u32 %s520_s1, 4  ;;  %s18_s19 = sshll.u32 %s449_s18, 4  ;;  %s17_s17 = int_to_ptr.hbm [resolvable:$true] %s16_s17  ;;  %s19_s19 = int_to_ptr.vmem [resolvable:$true] %s18_s19 }
   0x2   :  { %s451_s21 = smov 4  }
   0x3   :  { %24 = dma.hbm_to_vmem [thread:$0]  %s17_s17, 2048, %s19_s19, [#allocation4], %s450_s20, %s450_s20, %s451_s21  }
   0x4   :  { %447 = dma.done.wait [#allocation4], 2048  }
   0x5   :  { %448 = vsyncadd [#allocation4], 4294965248  ;;  %v374_v0 = vld [vmem:[#allocation3 + $0x38] sm:$0xff]  ;;  %v373_v2 = vld [vmem:[#allocation3 + $0x30] sm:$0xff] }
   0x6   :  { %v382_v1 = vld [vmem:[#allocation3 + $0x78] sm:$0xff]  ;;  %197 = vmatpush.bf16.msra.mxu0 %v374_v0  ;;  %403 = vmatpush.bf16.msra.mxu2 %v374_v0  ;;  %v381_v3 = vld [vmem:[#allocation3 + $0x70] sm:$0xff]  ;;  %v372_v4 = vld [vmem:[#allocation3 + $0x28] sm:$0xff] }
   0x7   :  { %216 = vmatpush.bf16.msra.mxu1 %v382_v1  ;;  %411 = vmatpush.bf16.msra.mxu3 %v382_v1  ;;  %v380_v5 = vld [vmem:[#allocation3 + $0x68] sm:$0xff]  ;;  %v371_v6 = vld [vmem:[#allocation3 + $0x20] sm:$0xff]  ;;  %v370_v8 = vld [vmem:[#allocation3 + $0x18] sm:$0xff] }
   0x8   :  { %v379_v7 = vld [vmem:[#allocation3 + $0x60] sm:$0xff]  ;;  %v378_v9 = vld [vmem:[#allocation3 + $0x58] sm:$0xff]  ;;  %v369_v10 = vld [vmem:[#allocation3 + $0x10] sm:$0xff] }
   0x9   :  { %v377_v11 = vld [vmem:[#allocation3 + $0x50] sm:$0xff]  ;;  %v368_v12 = vld [vmem:[#allocation3 + $0x8] sm:$0xff]  ;;  %v367_v14 = vld [vmem:[#allocation3] sm:$0xff] }
   0xa   :  { %198 = vmatpush.bf16.msra.mxu0 %v373_v2  ;;  %404 = vmatpush.bf16.msra.mxu2 %v373_v2  ;;  %v376_v13 = vld [vmem:[#allocation3 + $0x48] sm:$0xff]  ;;  %v375_v15 = vld [vmem:[#allocation3 + $0x40] sm:$0xff]  ;;  %v293_v18 = vld [vmem:[%s519_s0 + $0x10] sm:$0xf] }
   0xb   :  { %217 = vmatpush.bf16.msra.mxu1 %v381_v3  ;;  %412 = vmatpush.bf16.msra.mxu3 %v381_v3  ;;  %v285_v16 = vld [vmem:[%s519_s0] sm:$0xf]  ;;  %v364_v17 = vld [vmem:[%s519_s0 + $0x4] sm:$0xf0]  ;;  %v366_v19 = vld [vmem:[%s519_s0 + $0x14] sm:$0xf0] }
   0xc   :  { %v363_v20 = vld [vmem:[%s519_s0 + $0x4] sm:$0xf]  ;;  %v287_v21 = vld [vmem:[%s519_s0 + $0x8] sm:$0xf0]  ;;  %v365_v22 = vld [vmem:[%s519_s0 + $0x14] sm:$0xf]  ;;  %v286_v24 = vor.u32 %v364_v17, %v285_v16  ;;  %v294_v25 = vor.u32 %v366_v19, %v293_v18 }
   0xd   :  { %v295_v23 = vld [vmem:[%s519_s0 + $0x18] sm:$0xf0]  ;;  %v290_v26 = vor.u32 %v363_v20, %v287_v21  ;;  %v422_v31 = vld [vmem:[%s521_s2] ss:$0 sm:$0xff]  ;;  %v401_v42 = vld [vmem:[%s522_s3 + $0x8] sm:$0xff]  }
   0xe   :  { %199 = vmatpush.bf16.msra.mxu0 %v372_v4  ;;  %405 = vmatpush.bf16.msra.mxu2 %v372_v4  ;;  %v298_v27 = vor.u32 %v365_v22, %v295_v23  ;;  %v384_v33 = vld [vmem:[%s522_s3] sm:$0xff]   ;;  %v389_v47 = vunpack.c.l.bf16 %v401_v42  ;;  %v390_v52 = vunpack.c.h.bf16 %v401_v42 }
   0xf   :  { %218 = vmatpush.bf16.msra.mxu1 %v380_v5  ;;  %413 = vmatpush.bf16.msra.mxu3 %v380_v5  ;;  %v385_v38 = vunpack.c.l.bf16 %v384_v33  ;;  %v386_v40 = vunpack.c.h.bf16 %v384_v33 }
  0x12   :  { %200 = vmatpush.bf16.msra.mxu0 %v371_v6  ;;  %406 = vmatpush.bf16.msra.mxu2 %v371_v6 }
  0x13   :  { %219 = vmatpush.bf16.msra.mxu1 %v379_v7  ;;  %414 = vmatpush.bf16.msra.mxu3 %v379_v7 }
  0x16   :  { %201 = vmatpush.bf16.msra.mxu0 %v370_v8  ;;  %407 = vmatpush.bf16.msra.mxu2 %v370_v8 }
  0x17   :  { %220 = vmatpush.bf16.msra.mxu1 %v378_v9  ;;  %415 = vmatpush.bf16.msra.mxu3 %v378_v9 }
  0x1a   :  { %202 = vmatpush.bf16.msra.mxu0 %v369_v10  ;;  %408 = vmatpush.bf16.msra.mxu2 %v369_v10 }
  0x1b   :  { %221 = vmatpush.bf16.msra.mxu1 %v377_v11  ;;  %416 = vmatpush.bf16.msra.mxu3 %v377_v11 }
  0x1e   :  { %203 = vmatpush.bf16.msra.mxu0 %v368_v12  ;;  %409 = vmatpush.bf16.msra.mxu2 %v368_v12 }
  0x1f   :  { %222 = vmatpush.bf16.msra.mxu1 %v376_v13  ;;  %417 = vmatpush.bf16.msra.mxu3 %v376_v13 }
  0x22   :  { %204 = vmatpush.bf16.msra.mxu0 %v367_v14  ;;  %410 = vmatpush.bf16.msra.mxu2 %v367_v14 }
  0x23   :  { %223 = vmatpush.bf16.msra.mxu1 %v375_v15  ;;  %418 = vmatpush.bf16.msra.mxu3 %v375_v15 }
  0x25   :  { %205 = vmatmul.bf16.vlgmr.msra.gmra.mxu0 %v286_v24  ;;  %210 = vmatmul.bf16.vlgmr.msra.gmra.mxu2 %v294_v25 }
  0x26   :  { %224 = vmatmul.bf16.vlgmr.msra.gmra.mxu1 %v290_v26  ;;  %229 = vmatmul.bf16.vlgmr.msra.gmra.mxu3 %v298_v27 }
  0xa2   :  { %v206_v28 = vpop.f32.mrf.mxu0 }
  0xa3   :  { %v225_v29 = vpop.f32.mrf.mxu1 }
  0xa4   :  { %v226_v30 = vadd.f32 %v225_v29, %v206_v28 }
  0xa6   :  { %v254_v37 = vadd.f32 %v422_v31, %v226_v30 }
  0xa8   :  { %v211_v32 = vpop.f32.mrf.mxu2  ;;  %v266_v44 = vadd.f32 %v385_v38, %v254_v37 }
  0xa9   :  { %v230_v34 = vpop.f32.mrf.mxu3 }
  0xaa   :  { %v208_v35 = vpop.f32.mrf.mxu0  ;;  %v231_v41 = vadd.f32 %v230_v34, %v211_v32 }
  0xab   :  { %v227_v36 = vpop.f32.mrf.mxu1 }
  0xac   :  { %v228_v39 = vadd.f32 %v227_v36, %v208_v35  ;;  %v256_v49 = vadd.f32 %v422_v31, %v231_v41 }
  0xae   :  { %v255_v43 = vadd.f32 %v422_v31, %v228_v39  ;;  %v268_v54 = vadd.f32 %v389_v47, %v256_v49 }
  0xb0   :  { %v267_v45 = vadd.f32 %v386_v40, %v255_v43  ;;  %v213_v46 = vpop.f32.mrf.mxu2 }
  0xb1   :  { %v232_v48 = vpop.f32.mrf.mxu3 }
  0xb2   :  { %v394_v50 = vpack.c.bf16 %v267_v45, %v266_v44  ;;  %v233_v51 = vadd.f32 %v232_v48, %v213_v46 }
  0xb4   :  { %395 = vst [vmem:[%s523_s4] sm:$0xff] %v394_v50   ;;  %v257_v53 = vadd.f32 %v422_v31, %v233_v51 }
  0xb6   :  { %v269_v55 = vadd.f32 %v390_v52, %v257_v53 }
  0xb8   :  { %v399_v56 = vpack.c.bf16 %v269_v55, %v268_v54 }
  0xba   :  { %402 = vst [vmem:[%s523_s4 + $0x8] sm:$0xff] %v399_v56  }
  0xbb   :  { %282 = vsyncpa [#allocation4], 1 }

// kernel: pretrain_esm_forward.38
= control target key start
LH: loop header
LB: loop body
LE: loop exit
PB: predicated region body
PF: predicated region fallthrough
CT: control target
= control target key end

     0   :  { %s333_s1 = inlined_call_operand.vmem [shape: bf16[128,128], index: 1, kind: input, shape index: {}]   ;;  %s334_s2 = inlined_call_operand.vmem [shape: f32[1,128], index: 2, kind: input, shape index: {}]   ;;  %s335_s0 = inlined_call_operand.vmem [shape: bf16[32,128], index: 0, kind: input, shape index: {}]   ;;  %s336_s3 = inlined_call_operand.vmem [shape: bf16[32,128], index: 3, kind: output, shape index: {}]  }
   0x1   :  { %v245_v0 = vld [vmem:[%s333_s1 + $0x38] sm:$0xff]  ;;  %v244_v1 = vld [vmem:[%s333_s1 + $0x30] sm:$0xff]  ;;  %v243_v2 = vld [vmem:[%s333_s1 + $0x28] sm:$0xff] }
   0x2   :  { %106 = vmatpush.bf16.msra.mxu0 %v245_v0  ;;  %257 = vmatpush.bf16.msra.mxu1 %v245_v0  ;;  %v242_v3 = vld [vmem:[%s333_s1 + $0x20] sm:$0xff]  ;;  %v241_v4 = vld [vmem:[%s333_s1 + $0x18] sm:$0xff]  ;;  %v240_v5 = vld [vmem:[%s333_s1 + $0x10] sm:$0xff] }
   0x3   :  { %v239_v6 = vld [vmem:[%s333_s1 + $0x8] sm:$0xff]  ;;  %v238_v7 = vld [vmem:[%s333_s1] sm:$0xff] }
   0x4   :  { %v236_v8 = vld [vmem:[%s335_s0] sm:$0xff]  ;;  %v237_v9 = vld [vmem:[%s335_s0 + $0x8] sm:$0xff] }
   0x5   :  { %v265_v10 = vld [vmem:[%s334_s2] ss:$0 sm:$0xff] }
   0x6   :  { %107 = vmatpush.bf16.msra.mxu0 %v244_v1  ;;  %258 = vmatpush.bf16.msra.mxu1 %v244_v1 }
   0xa   :  { %108 = vmatpush.bf16.msra.mxu0 %v243_v2  ;;  %259 = vmatpush.bf16.msra.mxu1 %v243_v2 }
   0xe   :  { %109 = vmatpush.bf16.msra.mxu0 %v242_v3  ;;  %260 = vmatpush.bf16.msra.mxu1 %v242_v3 }
  0x12   :  { %110 = vmatpush.bf16.msra.mxu0 %v241_v4  ;;  %261 = vmatpush.bf16.msra.mxu1 %v241_v4 }
  0x16   :  { %111 = vmatpush.bf16.msra.mxu0 %v240_v5  ;;  %262 = vmatpush.bf16.msra.mxu1 %v240_v5 }
  0x1a   :  { %112 = vmatpush.bf16.msra.mxu0 %v239_v6  ;;  %263 = vmatpush.bf16.msra.mxu1 %v239_v6 }
  0x1e   :  { %113 = vmatpush.bf16.msra.mxu0 %v238_v7  ;;  %264 = vmatpush.bf16.msra.mxu1 %v238_v7 }
  0x21   :  { %114 = vmatmul.bf16.vlgmr.msra.gmra.mxu0 %v236_v8  ;;  %119 = vmatmul.bf16.vlgmr.msra.gmra.mxu1 %v237_v9 }
  0x9e   :  { %v115_v11 = vpop.f32.mrf.mxu0  ;;  %v120_v12 = vpop.f32.mrf.mxu1 }
  0x9f   :  { %v144_v13 = vadd.f32 %v265_v10, %v115_v11  ;;  %v146_v14 = vadd.f32 %v265_v10, %v120_v12 }
  0xa1   :  { %v148_v15 = vmul.f32 %v144_v13, %v144_v13  ;;  %v150_v16 = vmul.f32 %v146_v14, %v146_v14 }
  0xa3   :  { %v152_v17 = vmul.f32 %v148_v15, %v144_v13  ;;  %v154_v18 = vmul.f32 %v150_v16, %v146_v14 }
  0xa5   :  { %v156_v19 = vmul.f32 0.044715, %v152_v17  ;;  %v158_v20 = vmul.f32 0.044715, %v154_v18 }
  0xa6   :  { %v117_v21 = vpop.f32.mrf.mxu0  ;;  %v122_v22 = vpop.f32.mrf.mxu1 }
  0xa7   :  { %v160_v23 = vadd.f32 %v156_v19, %v144_v13  ;;  %v162_v24 = vadd.f32 %v158_v20, %v146_v14  ;;  %v145_v25 = vadd.f32 %v265_v10, %v117_v21  ;;  %v147_v26 = vadd.f32 %v265_v10, %v122_v22 }
  0xa9   :  { %v164_v27 = vmul.f32 0.7978846, %v160_v23  ;;  %v149_v28 = vmul.f32 %v145_v25, %v145_v25  ;;  %v151_v29 = vmul.f32 %v147_v26, %v147_v26  ;;  %v166_v30 = vmul.f32 0.7978846, %v162_v24 }
  0xab   :  { %v153_v31 = vmul.f32 %v149_v28, %v145_v25  ;;  %v155_v32 = vmul.f32 %v151_v29, %v147_v26  ;;  %266 = vtanh.f32 %v164_v27 }
  0xac   :  { %268 = vtanh.f32 %v166_v30 }
  0xad   :  { %v157_v33 = vmul.f32 0.044715, %v153_v31  ;;  %v159_v34 = vmul.f32 0.044715, %v155_v32 }
  0xaf   :  { %v161_v35 = vadd.f32 %v157_v33, %v145_v25  ;;  %v163_v36 = vadd.f32 %v159_v34, %v147_v26 }
  0xb1   :  { %v165_v37 = vmul.f32 0.7978846, %v161_v35  ;;  %v167_v38 = vmul.f32 0.7978846, %v163_v36  ;;  %v267_v39 = vpop.eup %266 }
  0xb2   :  { %v269_v40 = vpop.eup %268  ;;  %v172_v41 = vadd.f32 1.0, %v267_v39 }
  0xb3   :  { %270 = vtanh.f32 %v165_v37  ;;  %v174_v42 = vadd.f32 1.0, %v269_v40 }
  0xb4   :  { %272 = vtanh.f32 %v167_v38  ;;  %v176_v45 = vmul.f32 0.5, %v172_v41 }
  0xb5   :  { %v178_v47 = vmul.f32 0.5, %v174_v42 }
  0xb6   :  { %v180_v51 = vmul.f32 %v176_v45, %v144_v13 }
  0xb7   :  { %v182_v53 = vmul.f32 %v178_v47, %v146_v14 }
  0xb9   :  { %v271_v43 = vpop.eup %270 }
  0xba   :  { %v273_v44 = vpop.eup %272  ;;  %v173_v46 = vadd.f32 1.0, %v271_v43 }
  0xbb   :  { %v175_v48 = vadd.f32 1.0, %v273_v44 }
  0xbc   :  { %v177_v49 = vmul.f32 0.5, %v173_v46 }
  0xbd   :  { %v179_v50 = vmul.f32 0.5, %v175_v48 }
  0xbe   :  { %v181_v52 = vmul.f32 %v177_v49, %v145_v25 }
  0xbf   :  { %v183_v54 = vmul.f32 %v179_v50, %v147_v26 }
  0xc0   :  { %v249_v55 = vpack.c.bf16 %v181_v52, %v180_v51 }
  0xc1   :  { %v254_v56 = vpack.c.bf16 %v183_v54, %v182_v53 }
  0xc2   :  { %250 = vst [vmem:[%s336_s3] sm:$0xff] %v249_v55  }
  0xc3   :  { %256 = vst [vmem:[%s336_s3 + $0x8] sm:$0xff] %v254_v56  }

// kernel: pretrain_esm_forward.40
= control target key start
LH: loop header
LB: loop body
LE: loop exit
PB: predicated region body
PF: predicated region fallthrough
CT: control target
= control target key end

     0   :  { %8 = vsyncpa [#allocation4], 0  ;;  %s261_s15 = smov [#allocation3]   ;;  %s262_s17 = smov 64   ;;  %s308_s0 = inlined_call_operand.vmem [shape: bf16[32,128], index: 0, kind: input, shape index: {}]   ;;  %s309_s1 = inlined_call_operand.hbm [shape: bf16[128,128], index: 1, kind: input, shape index: {}]   ;;  %s310_s2 = inlined_call_operand.vmem [shape: f32[1,128], index: 2, kind: input, shape index: {}]   ;;  %s311_s3 = inlined_call_operand.vmem [shape: f32[32,128], index: 3, kind: output, shape index: {}]  }
   0x1   :  { %s15_s14 = sshll.u32 %s309_s1, 4  ;;  %s17_s16 = sshll.u32 %s261_s15, 4  ;;  %s16_s14 = int_to_ptr.hbm [resolvable:$true] %s15_s14  ;;  %s18_s16 = int_to_ptr.vmem [resolvable:$true] %s17_s16 }
   0x2   :  { %s263_s18 = smov 4  }
   0x3   :  { %23 = dma.hbm_to_vmem [thread:$0]  %s16_s14, 1024, %s18_s16, [#allocation4], %s262_s17, %s262_s17, %s263_s18  }
   0x4   :  { %259 = dma.done.wait [#allocation4], 1024  }
   0x5   :  { %260 = vsyncadd [#allocation4], 4294966272  ;;  %v222_v0 = vld [vmem:[#allocation3 + $0x38] sm:$0xff]  ;;  %v221_v1 = vld [vmem:[#allocation3 + $0x30] sm:$0xff] }
   0x6   :  { %122 = vmatpush.bf16.msra.mxu0 %v222_v0  ;;  %223 = vmatpush.bf16.msra.mxu1 %v222_v0  ;;  %v220_v2 = vld [vmem:[#allocation3 + $0x28] sm:$0xff]  ;;  %v219_v3 = vld [vmem:[#allocation3 + $0x20] sm:$0xff]  ;;  %v218_v4 = vld [vmem:[#allocation3 + $0x18] sm:$0xff] }
   0x7   :  { %v217_v5 = vld [vmem:[#allocation3 + $0x10] sm:$0xff]  ;;  %v216_v6 = vld [vmem:[#allocation3 + $0x8] sm:$0xff]  ;;  %v215_v7 = vld [vmem:[#allocation3] sm:$0xff] }
   0x8   :  { %v213_v8 = vld [vmem:[%s308_s0] sm:$0xff]  ;;  %v214_v9 = vld [vmem:[%s308_s0 + $0x8] sm:$0xff] }
   0x9   :  { %v234_v10 = vld [vmem:[%s310_s2] ss:$0 sm:$0xff] }
   0xa   :  { %123 = vmatpush.bf16.msra.mxu0 %v221_v1  ;;  %224 = vmatpush.bf16.msra.mxu1 %v221_v1 }
   0xe   :  { %124 = vmatpush.bf16.msra.mxu0 %v220_v2  ;;  %225 = vmatpush.bf16.msra.mxu1 %v220_v2 }
  0x12   :  { %125 = vmatpush.bf16.msra.mxu0 %v219_v3  ;;  %226 = vmatpush.bf16.msra.mxu1 %v219_v3 }
  0x16   :  { %126 = vmatpush.bf16.msra.mxu0 %v218_v4  ;;  %227 = vmatpush.bf16.msra.mxu1 %v218_v4 }
  0x1a   :  { %127 = vmatpush.bf16.msra.mxu0 %v217_v5  ;;  %228 = vmatpush.bf16.msra.mxu1 %v217_v5 }
  0x1e   :  { %128 = vmatpush.bf16.msra.mxu0 %v216_v6  ;;  %229 = vmatpush.bf16.msra.mxu1 %v216_v6 }
  0x22   :  { %129 = vmatpush.bf16.msra.mxu0 %v215_v7  ;;  %230 = vmatpush.bf16.msra.mxu1 %v215_v7 }
  0x25   :  { %130 = vmatmul.bf16.vlgmr.msra.gmra.mxu0 %v213_v8  ;;  %135 = vmatmul.bf16.vlgmr.msra.gmra.mxu1 %v214_v9 }
  0xa2   :  { %v131_v11 = vpop.f32.mrf.mxu0  ;;  %v136_v12 = vpop.f32.mrf.mxu1 }
  0xa3   :  { %v160_v13 = vadd.f32 %v234_v10, %v131_v11  ;;  %v162_v14 = vadd.f32 %v234_v10, %v136_v12 }
  0xa5   :  { %164 = vst [vmem:[%s311_s3] sm:$0xff] %v160_v13 }
  0xa6   :  { %166 = vst [vmem:[%s311_s3 + $0x10] sm:$0xff] %v162_v14 }
  0xaa   :  { %v133_v15 = vpop.f32.mrf.mxu0  ;;  %v138_v16 = vpop.f32.mrf.mxu1 }
  0xab   :  { %v161_v17 = vadd.f32 %v234_v10, %v133_v15  ;;  %v163_v18 = vadd.f32 %v234_v10, %v138_v16 }
  0xad   :  { %165 = vst [vmem:[%s311_s3 + $0x8] sm:$0xff] %v161_v17 }
  0xae   :  { %167 = vst [vmem:[%s311_s3 + $0x18] sm:$0xff] %v163_v18 }
  0xaf   :  { %172 = vsyncpa [#allocation4], 1 }

// kernel: pretrain_esm_forward.41
= control target key start
LH: loop header
LB: loop body
LE: loop exit
PB: predicated region body
PF: predicated region fallthrough
CT: control target
= control target key end

     0   :  { %s412_s6 = smov 0   ;;  %s414_s7 = smov 0   ;;  %s466_s0 = inlined_call_operand.vmem [shape: f32[2,16,128], index: 0, kind: input, shape index: {}]   ;;  %s467_s1 = inlined_call_operand.vmem [shape: f32[2,16,128], index: 1, kind: output, shape index: {}]  }
   0x1   :  { %s416_s8 = smov 0  }
   0x2 LB: > { %s23_s9 = sadd.s32 1, %s396_s7  ;;  %p337_p0 = scmp.ge.s32.totalorder %s400_s8, 1  ;;  %s400_s8 = sphi %s416_s8, %s11_s8   ;;  %s396_s7 = sphi %s414_s7, %s469_s7   ;;  %s392_s6 = sphi %s412_s6, %s468_s6  }
   0x3   : > { %p25_p1 = scmp.ge.s32.totalorder %s23_s9, 2  ;;  %p108_p2 = scmp.lt.s32.totalorder %s400_s8, 3 }
   0x5   : > { %s471_s9 = smov (%p25_p1, %s23_s9), 0  ;;  %p109_p3 = pnand %p337_p0, %p108_p2 }
   0x6   : > { %p137_p4 = scmp.lt.s32.totalorder (!%p109_p3), %s392_s6, 1 }
   0x7   : > { %112 = sbr.rel (%p109_p3) target bundleno = 389 (0x185), region = 24 }
   0xc   : > { %s473_s6 = smov (!%p137_p4, %s392_s6), 1  ;;  %v202_v2 = vlaneseq }
   0xd   : > { %s344_s10 = sshll.u32 %s473_s6, 4 }
   0xe   : > { %s144_s13 = scalar_lea.vmem %s466_s0, %s344_s10  ;;  %v438_v3 = vand.u32 127, %v202_v2  ;;  %s154_s16 = scalar_lea.vmem %s467_s1, %s344_s10 }
   0xf   : > { %v156_v0 = vld [vmem:[%s144_s13] sm:$0xff]  ;;  %v157_v1 = vld [vmem:[%s144_s13 + $0x8] sm:$0xff] }
  0x10   : > { %158 = vmax.xlane.f32.xlu0 %v156_v0  ;;  %vm237_vm7 = vcmp.eq.s32.totalorder %v438_v3, 1  ;;  %vm236_vm8 = vcmp.eq.s32.totalorder %v438_v3, 0 }
  0x18   : > { %160 = vmax.xlane.f32.xlu0 %v157_v1 }
  0x83   : > { %v159_v4 = vpop.xlane.xlu0 %158 }
  0x84   : > { %v162_v5 = vsub.f32 %v156_v0, %v159_v4  ;;  %vm204_vm0 = vcmp.eq.f32.partialorder %v156_v0, %v159_v4 }
  0x85   : > { %v206_v6 = vsel %vm204_vm0, %v438_v3, 128 }
  0x86   : > { %v209_v7 = vshra.s32 %v206_v6, 16  ;;  %v164_v8 = vmul.f32 1.442695, %v162_v5  ;;  %v208_v18 = vand.u32 65535, %v206_v6 }
  0x88   : > { %v211_v9 = vcvt.s32.f32 %v209_v7  ;;  %370 = vpow2.f32 %v164_v8  ;;  %v210_v20 = vcvt.s32.f32 %v208_v18 }
  0x8a   : > { %212 = vmin.xlane.f32.xlu1 %v211_v9 }
  0x8b   : > { %v161_v10 = vpop.xlane.xlu0 %160 }
  0x8c   : > { %v163_v11 = vsub.f32 %v157_v1, %v161_v10  ;;  %vm205_vm1 = vcmp.eq.f32.partialorder %v157_v1, %v161_v10 }
  0x8d   : > { %v207_v12 = vsel %vm205_vm1, %v438_v3, 128 }
  0x8e   : > { %v371_v13 = vpop.eup %370  ;;  %v166_v14 = vmul.f32 1.442695, %v163_v11  ;;  %v223_v15 = vshra.s32 %v207_v12, 16  ;;  %v222_v22 = vand.u32 65535, %v207_v12 }
  0x8f   : > { %168 = vadd.xlane.f32.xlu2 %v371_v13 }
  0x90   : > { %372 = vpow2.f32 %v166_v14  ;;  %v225_v16 = vcvt.s32.f32 %v223_v15  ;;  %v224_v24 = vcvt.s32.f32 %v222_v22 }
  0x92   : > { %226 = vmin.xlane.f32.xlu1 %v225_v16 }
  0x96   : > { %v373_v17 = vpop.eup %372 }
  0x97   : > { %170 = vadd.xlane.f32.xlu2 %v373_v17 }
  0xfd   : > { %v213_v19 = vpop.xlane.xlu1 %212 }
  0xfe   : > { %vm214_vm2 = vcmp.eq.f32.partialorder %v211_v9, %v213_v19  ;;  %v219_v34 = vcvt.f32.s32 %v213_v19 }
  0xff   : > { %v215_v21 = vsel %vm214_vm2, %v210_v20, inf }
 0x100   : > { %216 = vmin.xlane.f32.xlu0 %v215_v21  ;;  %v220_v38 = vshll.u32 %v219_v34, 16 }
 0x102   : > { %v169_v26 = vpop.xlane.xlu2 %168 }
 0x103   : > { %374 = vrcp.f32 %v169_v26  ;;  %v183_v39 = vand.u32 2147483648, %v169_v26  ;;  %vm177_vm5 = vweird.f32 %v169_v26  ;;  %v181_v41 = vand.u32 2147483647, %v169_v26 }
 0x105   : > { %v227_v23 = vpop.xlane.xlu1 %226  ;;  %v184_v45 = vor.u32 1.1754944e-38, %v183_v39  ;;  %vm182_vm9 = vcmp.eq.f32.partialorder %v181_v41, 8.507059e+37 }
 0x106   : > { %vm228_vm3 = vcmp.eq.f32.partialorder %v225_v16, %v227_v23  ;;  %v233_v46 = vcvt.f32.s32 %v227_v23 }
 0x107   : > { %v229_v25 = vsel %vm228_vm3, %v224_v24, inf }
 0x108   : > { %230 = vmin.xlane.f32.xlu1 %v229_v25  ;;  %v234_v53 = vshll.u32 %v233_v46, 16 }
 0x109   : > { %v375_v28 = vpop.eup %374 }
 0x10a   : > { %v171_v27 = vpop.xlane.xlu2 %170  ;;  %v173_v29 = vmul.f32 %v375_v28, %v169_v26  ;;  %vm178_vm4 = vweird.f32 %v375_v28 }
 0x10b   : > { %376 = vrcp.f32 %v171_v27  ;;  %vm179_vm6 = vmor %vm177_vm5, %vm178_vm4  ;;  %v198_v54 = vand.u32 2147483648, %v171_v27  ;;  %vm192_vm11 = vweird.f32 %v171_v27  ;;  %v196_v56 = vand.u32 2147483647, %v171_v27 }
 0x10c   : > { %v174_v30 = vsub.f32 1.0, %v173_v29 }
 0x10d   : > { %v199_v59 = vor.u32 1.1754944e-38, %v198_v54  ;;  %vm197_vm13 = vcmp.eq.f32.partialorder %v196_v56, 8.507059e+37 }
 0x10e   : > { %v175_v32 = vmul.f32 %v375_v28, %v174_v30 }
 0x110   : > { %v176_v35 = vadd.f32 %v375_v28, %v175_v32 }
 0x111   : > { %v377_v31 = vpop.eup %376 }
 0x112   : > { %v188_v33 = vmul.f32 %v377_v31, %v171_v27  ;;  %v180_v44 = vsel %vm179_vm6, %v375_v28, %v176_v35  ;;  %vm193_vm10 = vweird.f32 %v377_v31 }
 0x113   : > { %v185_v48 = vsel %vm182_vm9, %v184_v45, %v180_v44  ;;  %vm194_vm12 = vmor %vm192_vm11, %vm193_vm10 }
 0x114   : > { %v189_v36 = vsub.f32 1.0, %v188_v33 }
 0x116   : > { %v190_v43 = vmul.f32 %v377_v31, %v189_v36 }
 0x118   : > { %v191_v50 = vadd.f32 %v377_v31, %v190_v43 }
 0x11a   : > { %v195_v58 = vsel %vm194_vm12, %v377_v31, %v191_v50 }
 0x11b   : > { %v200_v61 = vsel %vm197_vm13, %v199_v59, %v195_v58 }
 0x173   : > { %v217_v37 = vpop.xlane.xlu0 %216 }
 0x174   : > { %v218_v40 = vcvt.f32.s32 %v217_v37 }
 0x176   : > { %v221_v42 = vadd.s32 %v220_v38, %v218_v40 }
 0x178   : > { %v238_v47 = vcvt.s32.f32 %v221_v42 }
 0x17a   : > { %v240_v49 = vsel %vm237_vm7, %v238_v47, 0.0 }
 0x17b   : > { %v242_v51 = vsel %vm236_vm8, %v185_v48, %v240_v49  ;;  %v231_v52 = vpop.xlane.xlu1 %230 }
 0x17c   : > { %244 = vst [vmem:[%s154_s16] sm:$0xff] %v242_v51  ;;  %v232_v55 = vcvt.f32.s32 %v231_v52 }
 0x17e   : > { %v235_v57 = vadd.s32 %v234_v53, %v232_v55 }
 0x180   : > { %v239_v60 = vcvt.s32.f32 %v235_v57 }
 0x182   : > { %v241_v62 = vsel %vm237_vm7, %v239_v60, 0.0 }
 0x183   : > { %v243_v63 = vsel %vm236_vm8, %v200_v61, %v241_v62 }
 0x184   : > { %245 = vst [vmem:[%s154_s16 + $0x8] sm:$0xff] %v243_v63 }
 0x185 PF: > { %s11_s8 = sadd.s32 1, %s400_s8   ;;  %s468_s6 = smov %s396_s7 }
 0x186   : > { %p8_p5 = scmp.ge.s32.totalorder %s11_s8, 4   ;;  %s469_s7 = smov %s471_s9 }
 0x188   :  { %10 = sbr.rel (!%p8_p5) target bundleno = 2 (0x2), region = 54 }

</bundles_post_ra>
